<compile_context>
chip_gen: v5e
topology: v5e:2x2
jax: 0.10.0
libtpu: 0.0.40
codegen_flags: <defaults>
</compile_context>

<pallas_src>
import functools

import jax
import jax.numpy as jnp
from jax import lax
from jax.experimental import pallas as pl
from jax.experimental.pallas import tpu as pltpu

# Mini-VGG config (stands in for cfg_chosen[vgg_name]); 4 'M' pools take the
# 16x16 input down to 1x1, so the classifier is Linear(cfg[-2]=32, 10),
# exactly as in the PyTorch module.
CFG_SMALL = [8, 'M', 16, 'M', 32, 'M', 32, 'M']
BN_EPS = 1e-5
NUM_CLASSES = 10


# ----------------------------- layer planning ------------------------------

def _layer_plan(cfg, in_channels, h, w):
    """Static per-layer shapes: ('conv', H, W, Cin, Cout) / ('pool', H, W, C)."""
    plan = []
    c = in_channels
    for v in cfg:
        if v == 'M':
            plan.append(('pool', h, w, c))
            h //= 2
            w //= 2
        else:
            plan.append(('conv', h, w, c, v))
            c = v
    return plan, h, w, c


# ------------------------------ fused kernel -------------------------------

def _make_vgg_kernel(plan):
    n_conv = sum(1 for e in plan if e[0] == 'conv')

    def kernel(*refs):
        # refs: x, (w, scale, bias) * n_conv, lin_wT, lin_b, out, 3 scratch
        x_ref = refs[0]
        conv_refs = refs[1:1 + 3 * n_conv]
        lin_w_ref = refs[1 + 3 * n_conv]
        lin_b_ref = refs[2 + 3 * n_conv]
        o_ref = refs[3 + 3 * n_conv]
        pad_ref, patch_ref, act_ref = refs[4 + 3 * n_conv:]

        cur = x_ref[0]  # (H*W, Cin) activation of the current layer (f32)
        li = 0
        for entry in plan:
            if entry[0] == 'conv':
                _, H, W, Cin, Cout = entry
                w_ref = conv_refs[3 * li]
                s_ref = conv_refs[3 * li + 1]
                b_ref = conv_refs[3 * li + 2]
                li += 1
                HW = H * W
                P = W + 1  # zero rows before/after the flattened image

                # --- in-kernel im2col: one zero-padded copy, 9 shifted views
                pad_ref[0:P, 0:Cin] = jnp.zeros((P, Cin), jnp.float32)
                pad_ref[P:P + HW, 0:Cin] = cur
                pad_ref[P + HW:P + HW + P, 0:Cin] = jnp.zeros((P, Cin),
                                                              jnp.float32)
                # masks killing taps that wrap across image rows (left/right edge)
                xcoord = lax.broadcasted_iota(jnp.int32, (HW, Cin), 0) & (W - 1)
                mask_l = jnp.where(xcoord > 0, 1.0, 0.0).astype(jnp.float32)
                mask_r = jnp.where(xcoord < W - 1, 1.0, 0.0).astype(jnp.float32)

                t = 0
                for dy in (-1, 0, 1):
                    for dx in (-1, 0, 1):
                        off = P + dy * W + dx
                        tap = pad_ref[off:off + HW, 0:Cin]
                        if dx == -1:
                            tap = tap * mask_l
                        elif dx == 1:
                            tap = tap * mask_r
                        patch_ref[0:HW, t * Cin:(t + 1) * Cin] = tap
                        t += 1

                # --- single MXU matmul, K = 9*Cin, bf16 operands, f32 acc ---
                patches = patch_ref[0:HW, 0:9 * Cin].astype(jnp.bfloat16)
                acc = jnp.dot(patches, w_ref[...],
                              preferred_element_type=jnp.float32)
                # folded BatchNorm (eval mode) + ReLU epilogue in f32
                cur = jnp.maximum(acc * s_ref[...] + b_ref[...], 0.0)

            else:  # 'M' -> MaxPool2d(kernel_size=2, stride=2)
                _, H, W, C = entry
                HW = H * W
                W2 = W // 2
                HW4 = (H // 2) * W2

                # window max over shifts {0, 1, W, W+1} of a zero-extended buffer
                act_ref[0:HW, 0:C] = cur
                act_ref[HW:HW + W + 1, 0:C] = jnp.zeros((W + 1, C),
                                                        jnp.float32)
                m = act_ref[0:HW, 0:C]
                for sh in (1, W, W + 1):
                    m = jnp.maximum(m, act_ref[sh:sh + HW, 0:C])

                # keep rows with (even y, even x) via an exact 0/1 selection matmul
                shift = W2.bit_length() - 1
                rowi = lax.broadcasted_iota(jnp.int32, (HW4, HW), 0)
                coli = lax.broadcasted_iota(jnp.int32, (HW4, HW), 1)
                target = 2 * W * (rowi >> shift) + 2 * (rowi & (W2 - 1))
                sel = jnp.where(coli == target, 1.0, 0.0).astype(jnp.float32)
                cur = jnp.dot(sel, m, preferred_element_type=jnp.float32)

        # nn.AvgPool2d(kernel_size=1, stride=1) is the identity -> skipped.
        # Final spatial is 1x1, so torch's .view(N, -1) is just the channel
        # vector; classifier = Linear(Cfinal, 10).
        logits = jnp.dot(cur.astype(jnp.bfloat16), lin_w_ref[...],
                         preferred_element_type=jnp.float32) + lin_b_ref[...]
        o_ref[0] = logits

    return kernel


# --------------------------- parameters & forward ---------------------------

def init_params(key, cfg, in_channels=3, num_classes=NUM_CLASSES):
    conv_params = []
    for v in cfg:
        if v == 'M':
            continue
        key, k1, k2, k3, k4, k5, k6 = jax.random.split(key, 7)
        w = jax.random.normal(k1, (3, 3, in_channels, v), jnp.float32)
        w = w * (1.0 / (3.0 * jnp.sqrt(jnp.float32(in_channels))))
        conv_b = 0.05 * jax.random.normal(k2, (v,), jnp.float32)
        gamma = 1.0 + 0.1 * jax.random.normal(k3, (v,), jnp.float32)
        beta = 0.1 * jax.random.normal(k4, (v,), jnp.float32)
        mean = 0.1 * jax.random.normal(k5, (v,), jnp.float32)
        var = 1.0 + 0.1 * jax.random.uniform(k6, (v,), jnp.float32)
        conv_params.append(dict(w=w, conv_b=conv_b, gamma=gamma, beta=beta,
                                mean=mean, var=var))
        in_channels = v
    key, kw, kb = jax.random.split(key, 3)
    fan_in = cfg[-2]
    lin_w = jax.random.normal(kw, (num_classes, fan_in), jnp.float32)
    lin_w = lin_w / jnp.sqrt(jnp.float32(fan_in))
    lin_b = 0.05 * jax.random.normal(kb, (num_classes,), jnp.float32)
    return conv_params, (lin_w, lin_b)


def prepare_params(conv_params, lin_params, cfg):
    """One-time prep: fold conv bias + BN(eval) into scale/bias, flatten the
    HWIO conv weights to (9*Cin, Cout) bf16, pre-transpose the linear weight."""
    conv_cfg = [v for v in cfg if v != 'M']
    prepared = []
    for p, cout in zip(conv_params, conv_cfg):
        w = p['w']                       # (3, 3, Cin, Cout), HWIO
        cin = w.shape[2]
        inv_std = 1.0 / jnp.sqrt(p['var'] + BN_EPS)
        scale = p['gamma'] * inv_std
        bias = p['beta'] + (p['conv_b'] - p['mean']) * scale
        w9 = w.reshape(9 * cin, cout).astype(jnp.bfloat16)
        prepared.append((w9,
                         scale.reshape(1, cout).astype(jnp.float32),
                         bias.reshape(1, cout).astype(jnp.float32)))
    lin_w, lin_b = lin_params
    lin_wT = jnp.transpose(lin_w).astype(jnp.bfloat16)   # (in, out)
    lin_b2 = lin_b.reshape(1, -1).astype(jnp.float32)
    return prepared, (lin_wT, lin_b2)


def vgg_forward(x_nchw, prep_conv, prep_lin, cfg):
    cfg = tuple(cfg)
    N, C, H, W = x_nchw.shape
    plan, fh, fw, fc = _layer_plan(cfg, C, H, W)
    assert fh == 1 and fw == 1, "classifier expects 1x1 final spatial"
    for e in plan:
        wdim = e[2]
        assert wdim > 0 and (wdim & (wdim - 1)) == 0, "W must be a power of 2"
    lin_wT, lin_b2 = prep_lin
    assert lin_wT.shape[0] == fc * fh * fw

    # NCHW -> NHWC -> (N, H*W, C): channels on the lane dim for the kernel.
    x = jnp.transpose(x_nchw, (0, 2, 3, 1)).reshape(N, H * W, C)
    x = x.astype(jnp.float32)

    conv_entries = [e for e in plan if e[0] == 'conv']
    pool_entries = [e for e in plan if e[0] == 'pool']
    pad_rows = max(e[1] * e[2] + 2 * (e[2] + 1) for e in conv_entries)
    pad_cols = max(e[3] for e in conv_entries)
    patch_rows = max(e[1] * e[2] for e in conv_entries)
    patch_cols = max(9 * e[3] for e in conv_entries)
    act_rows = max(e[1] * e[2] + e[2] + 1 for e in pool_entries)
    act_cols = max(e[3] for e in pool_entries)

    in_specs = [pl.BlockSpec((1, H * W, C), lambda b: (b, 0, 0))]
    args = [x]
    for (w9, sc, bi) in prep_conv:
        in_specs.append(pl.BlockSpec(w9.shape, lambda b: (0, 0)))
        in_specs.append(pl.BlockSpec(sc.shape, lambda b: (0, 0)))
        in_specs.append(pl.BlockSpec(bi.shape, lambda b: (0, 0)))
        args += [w9, sc, bi]
    in_specs.append(pl.BlockSpec(lin_wT.shape, lambda b: (0, 0)))
    in_specs.append(pl.BlockSpec(lin_b2.shape, lambda b: (0, 0)))
    args += [lin_wT, lin_b2]

    out = pl.pallas_call(
        _make_vgg_kernel(plan),
        out_shape=jax.ShapeDtypeStruct((N, 1, NUM_CLASSES), jnp.float32),
        grid=(N,),
        in_specs=in_specs,
        out_specs=pl.BlockSpec((1, 1, NUM_CLASSES), lambda b: (b, 0, 0)),
        scratch_shapes=[
            pltpu.VMEM((pad_rows, pad_cols), jnp.float32),     # padded act
            pltpu.VMEM((patch_rows, patch_cols), jnp.float32),  # im2col patches
            pltpu.VMEM((act_rows, act_cols), jnp.float32),      # pool buffer
        ],
        compiler_params=pltpu.CompilerParams(
            dimension_semantics=("parallel",)),
    )(*args)
    return out.reshape(N, NUM_CLASSES)


def vgg_reference(x_nchw, conv_params, lin_params, cfg):
    """Pure-JAX reference. Mirrors the kernel's precision (bf16 matmul
    operands, f32 accumulation, f32 BN/ReLU) so the comparison is tight."""
    x = jnp.transpose(x_nchw, (0, 2, 3, 1)).astype(jnp.float32)
    li = 0
    for v in cfg:
        if v == 'M':
            x = lax.reduce_window(x, -jnp.inf, lax.max,
                                  (1, 2, 2, 1), (1, 2, 2, 1), 'VALID')
        else:
            p = conv_params[li]
            li += 1
            y = lax.conv_general_dilated(
                x.astype(jnp.bfloat16), p['w'].astype(jnp.bfloat16),
                (1, 1), ((1, 1), (1, 1)),
                dimension_numbers=('NHWC', 'HWIO', 'NHWC'),
                preferred_element_type=jnp.float32)
            y = y + p['conv_b']
            y = (y - p['mean']) / jnp.sqrt(p['var'] + BN_EPS)
            y = y * p['gamma'] + p['beta']
            x = jnp.maximum(y, 0.0)
    n = x.shape[0]
    x = jnp.transpose(x, (0, 3, 1, 2)).reshape(n, -1)  # torch .view(N, -1)
    lin_w, lin_b = lin_params
    return jnp.dot(x.astype(jnp.bfloat16), lin_w.T.astype(jnp.bfloat16),
                   preferred_element_type=jnp.float32) + lin_b


if __name__ == "__main__":
    key = jax.random.PRNGKey(0)
    kx, kp = jax.random.split(key)
    # PyTorch-convention NCHW input, small shapes.
    x = jax.random.normal(kx, (2, 3, 16, 16), jnp.float32)
    conv_params, lin_params = init_params(kp, CFG_SMALL)
    prep_conv, prep_lin = prepare_params(conv_params, lin_params, CFG_SMALL)

    fwd = jax.jit(functools.partial(vgg_forward, cfg=tuple(CFG_SMALL)))
    out = jax.block_until_ready(fwd(x, prep_conv, prep_lin))
    assert out.shape == (2, NUM_CLASSES), out.shape

    ref = vgg_reference(x, conv_params, lin_params, CFG_SMALL)
    assert jnp.allclose(out, ref, atol=1e-2, rtol=1e-2), (out, ref)

    print("KERNEL_OK")
</pallas_src>

<mosaic_0001>
module attributes {stable_mosaic.version = 11 : i64} {
  func.func @kernel(%arg0: i32, %arg1: memref<1x256x3xf32, #tpu.memory_space<vmem>>, %arg2: memref<27x8xbf16, #tpu.memory_space<vmem>>, %arg3: memref<1x8xf32, #tpu.memory_space<vmem>>, %arg4: memref<1x8xf32, #tpu.memory_space<vmem>>, %arg5: memref<72x16xbf16, #tpu.memory_space<vmem>>, %arg6: memref<1x16xf32, #tpu.memory_space<vmem>>, %arg7: memref<1x16xf32, #tpu.memory_space<vmem>>, %arg8: memref<144x32xbf16, #tpu.memory_space<vmem>>, %arg9: memref<1x32xf32, #tpu.memory_space<vmem>>, %arg10: memref<1x32xf32, #tpu.memory_space<vmem>>, %arg11: memref<288x32xbf16, #tpu.memory_space<vmem>>, %arg12: memref<1x32xf32, #tpu.memory_space<vmem>>, %arg13: memref<1x32xf32, #tpu.memory_space<vmem>>, %arg14: memref<32x10xbf16, #tpu.memory_space<vmem>>, %arg15: memref<1x10xf32, #tpu.memory_space<vmem>>, %arg16: memref<1x1x10xf32, #tpu.memory_space<vmem>>, %arg17: memref<290x32xf32, #tpu.memory_space<vmem>>, %arg18: memref<256x288xf32, #tpu.memory_space<vmem>>, %arg19: memref<273x32xf32, #tpu.memory_space<vmem>>) attributes {dimension_semantics = [#tpu.dimension_semantics<parallel>], iteration_bounds = array<i64: 2>, scalar_prefetch = 0 : i64, scratch_operands = 3 : i64, tpu.core_type = #tpu.core_type<tc>, window_params = [{transform_indices = @transform_0, window_bounds = array<i64: 1, 256, 3>}, {pipeline_mode = #tpu.pipeline_mode<synchronous>, transform_indices = @transform_1, window_bounds = array<i64: 27, 8>}, {pipeline_mode = #tpu.pipeline_mode<synchronous>, transform_indices = @transform_2, window_bounds = array<i64: 1, 8>}, {pipeline_mode = #tpu.pipeline_mode<synchronous>, transform_indices = @transform_3, window_bounds = array<i64: 1, 8>}, {pipeline_mode = #tpu.pipeline_mode<synchronous>, transform_indices = @transform_4, window_bounds = array<i64: 72, 16>}, {pipeline_mode = #tpu.pipeline_mode<synchronous>, transform_indices = @transform_5, window_bounds = array<i64: 1, 16>}, {pipeline_mode = #tpu.pipeline_mode<synchronous>, transform_indices = @transform_6, window_bounds = array<i64: 1, 16>}, {pipeline_mode = #tpu.pipeline_mode<synchronous>, transform_indices = @transform_7, window_bounds = array<i64: 144, 32>}, {pipeline_mode = #tpu.pipeline_mode<synchronous>, transform_indices = @transform_8, window_bounds = array<i64: 1, 32>}, {pipeline_mode = #tpu.pipeline_mode<synchronous>, transform_indices = @transform_9, window_bounds = array<i64: 1, 32>}, {pipeline_mode = #tpu.pipeline_mode<synchronous>, transform_indices = @transform_10, window_bounds = array<i64: 288, 32>}, {pipeline_mode = #tpu.pipeline_mode<synchronous>, transform_indices = @transform_11, window_bounds = array<i64: 1, 32>}, {pipeline_mode = #tpu.pipeline_mode<synchronous>, transform_indices = @transform_12, window_bounds = array<i64: 1, 32>}, {pipeline_mode = #tpu.pipeline_mode<synchronous>, transform_indices = @transform_13, window_bounds = array<i64: 32, 10>}, {pipeline_mode = #tpu.pipeline_mode<synchronous>, transform_indices = @transform_14, window_bounds = array<i64: 1, 10>}, {transform_indices = @transform_15, window_bounds = array<i64: 1, 1, 10>}]} {
    %c0 = arith.constant 0 : index
    %c0_0 = arith.constant 0 : index
    %c0_1 = arith.constant 0 : index
    %0 = vector.load %arg1[%c0, %c0_0, %c0_1] : memref<1x256x3xf32, #tpu.memory_space<vmem>>, vector<1x256x3xf32>
    %1 = vector.shape_cast %0 : vector<1x256x3xf32> to vector<256x3xf32>
    %cst = arith.constant 0.000000e+00 : f32
    %2 = vector.broadcast %cst : f32 to vector<17x3xf32>
    %c0_2 = arith.constant 0 : index
    %c0_3 = arith.constant 0 : index
    %3 = vector.load %arg17[%c0_2, %c0_3] : memref<290x32xf32, #tpu.memory_space<vmem>>, vector<17x3xf32>
    tpu.vector_store %arg17[%c0_2, %c0_3], %2 {strides = array<i32>} : memref<290x32xf32, #tpu.memory_space<vmem>>, vector<17x3xf32>,
    %c17 = arith.constant 17 : index
    %c0_4 = arith.constant 0 : index
    %4 = vector.load %arg17[%c17, %c0_4] : memref<290x32xf32, #tpu.memory_space<vmem>>, vector<256x3xf32>
    tpu.vector_store %arg17[%c17, %c0_4], %1 {strides = array<i32>} : memref<290x32xf32, #tpu.memory_space<vmem>>, vector<256x3xf32>,
    %cst_5 = arith.constant 0.000000e+00 : f32
    %5 = vector.broadcast %cst_5 : f32 to vector<17x3xf32>
    %c273 = arith.constant 273 : index
    %c0_6 = arith.constant 0 : index
    %6 = vector.load %arg17[%c273, %c0_6] : memref<290x32xf32, #tpu.memory_space<vmem>>, vector<17x3xf32>
    tpu.vector_store %arg17[%c273, %c0_6], %5 {strides = array<i32>} : memref<290x32xf32, #tpu.memory_space<vmem>>, vector<17x3xf32>,
    %7 = tpu.iota {dimensions = array<i32: 0>} : vector<256x3xi32>
    %c15_i32 = arith.constant 15 : i32
    %8 = vector.broadcast %c15_i32 : i32 to vector<256x3xi32>
    %9 = arith.andi %7, %8 : vector<256x3xi32>
    %c0_i32 = arith.constant 0 : i32
    %10 = vector.broadcast %c0_i32 : i32 to vector<256x3xi32>
    %11 = arith.cmpi sgt, %9, %10 : vector<256x3xi32>
    %cst_7 = arith.constant 1.000000e+00 : f32
    %cst_8 = arith.constant 0.000000e+00 : f32
    %12 = vector.broadcast %cst_7 : f32 to vector<256x3xf32>
    %13 = vector.broadcast %cst_8 : f32 to vector<256x3xf32>
    %14 = arith.select %11, %12, %13 : vector<256x3xi1>, vector<256x3xf32>
    %c15_i32_9 = arith.constant 15 : i32
    %15 = vector.broadcast %c15_i32_9 : i32 to vector<256x3xi32>
    %16 = arith.cmpi slt, %9, %15 : vector<256x3xi32>
    %cst_10 = arith.constant 1.000000e+00 : f32
    %cst_11 = arith.constant 0.000000e+00 : f32
    %17 = vector.broadcast %cst_10 : f32 to vector<256x3xf32>
    %18 = vector.broadcast %cst_11 : f32 to vector<256x3xf32>
    %19 = arith.select %16, %17, %18 : vector<256x3xi1>, vector<256x3xf32>
    %c0_12 = arith.constant 0 : index
    %c0_13 = arith.constant 0 : index
    %20 = vector.load %arg17[%c0_12, %c0_13] : memref<290x32xf32, #tpu.memory_space<vmem>>, vector<256x3xf32>
    %21 = arith.mulf %20, %14 : vector<256x3xf32>
    %c0_14 = arith.constant 0 : index
    %c0_15 = arith.constant 0 : index
    %22 = vector.load %arg18[%c0_14, %c0_15] : memref<256x288xf32, #tpu.memory_space<vmem>>, vector<256x3xf32>
    tpu.vector_store %arg18[%c0_14, %c0_15], %21 {strides = array<i32>} : memref<256x288xf32, #tpu.memory_space<vmem>>, vector<256x3xf32>,
    %c1 = arith.constant 1 : index
    %c0_16 = arith.constant 0 : index
    %23 = vector.load %arg17[%c1, %c0_16] : memref<290x32xf32, #tpu.memory_space<vmem>>, vector<256x3xf32>
    %c0_17 = arith.constant 0 : index
    %c3 = arith.constant 3 : index
    %24 = vector.load %arg18[%c0_17, %c3] : memref<256x288xf32, #tpu.memory_space<vmem>>, vector<256x3xf32>
    tpu.vector_store %arg18[%c0_17, %c3], %23 {strides = array<i32>} : memref<256x288xf32, #tpu.memory_space<vmem>>, vector<256x3xf32>,
    %c2 = arith.constant 2 : index
    %c0_18 = arith.constant 0 : index
    %25 = vector.load %arg17[%c2, %c0_18] : memref<290x32xf32, #tpu.memory_space<vmem>>, vector<256x3xf32>
    %26 = arith.mulf %25, %19 : vector<256x3xf32>
    %c0_19 = arith.constant 0 : index
    %c6 = arith.constant 6 : index
    %27 = vector.load %arg18[%c0_19, %c6] : memref<256x288xf32, #tpu.memory_space<vmem>>, vector<256x3xf32>
    tpu.vector_store %arg18[%c0_19, %c6], %26 {strides = array<i32>} : memref<256x288xf32, #tpu.memory_space<vmem>>, vector<256x3xf32>,
    %c16 = arith.constant 16 : index
    %c0_20 = arith.constant 0 : index
    %28 = vector.load %arg17[%c16, %c0_20] : memref<290x32xf32, #tpu.memory_space<vmem>>, vector<256x3xf32>
    %29 = arith.mulf %28, %14 : vector<256x3xf32>
    %c0_21 = arith.constant 0 : index
    %c9 = arith.constant 9 : index
    %30 = vector.load %arg18[%c0_21, %c9] : memref<256x288xf32, #tpu.memory_space<vmem>>, vector<256x3xf32>
    tpu.vector_store %arg18[%c0_21, %c9], %29 {strides = array<i32>} : memref<256x288xf32, #tpu.memory_space<vmem>>, vector<256x3xf32>,
    %c17_22 = arith.constant 17 : index
    %c0_23 = arith.constant 0 : index
    %31 = vector.load %arg17[%c17_22, %c0_23] : memref<290x32xf32, #tpu.memory_space<vmem>>, vector<256x3xf32>
    %c0_24 = arith.constant 0 : index
    %c12 = arith.constant 12 : index
    %32 = vector.load %arg18[%c0_24, %c12] : memref<256x288xf32, #tpu.memory_space<vmem>>, vector<256x3xf32>
    tpu.vector_store %arg18[%c0_24, %c12], %31 {strides = array<i32>} : memref<256x288xf32, #tpu.memory_space<vmem>>, vector<256x3xf32>,
    %c18 = arith.constant 18 : index
    %c0_25 = arith.constant 0 : index
    %33 = vector.load %arg17[%c18, %c0_25] : memref<290x32xf32, #tpu.memory_space<vmem>>, vector<256x3xf32>
    %34 = arith.mulf %33, %19 : vector<256x3xf32>
    %c0_26 = arith.constant 0 : index
    %c15 = arith.constant 15 : index
    %35 = vector.load %arg18[%c0_26, %c15] : memref<256x288xf32, #tpu.memory_space<vmem>>, vector<256x3xf32>
    tpu.vector_store %arg18[%c0_26, %c15], %34 {strides = array<i32>} : memref<256x288xf32, #tpu.memory_space<vmem>>, vector<256x3xf32>,
    %c32 = arith.constant 32 : index
    %c0_27 = arith.constant 0 : index
    %36 = vector.load %arg17[%c32, %c0_27] : memref<290x32xf32, #tpu.memory_space<vmem>>, vector<256x3xf32>
    %37 = arith.mulf %36, %14 : vector<256x3xf32>
    %c0_28 = arith.constant 0 : index
    %c18_29 = arith.constant 18 : index
    %38 = vector.load %arg18[%c0_28, %c18_29] : memref<256x288xf32, #tpu.memory_space<vmem>>, vector<256x3xf32>
    tpu.vector_store %arg18[%c0_28, %c18_29], %37 {strides = array<i32>} : memref<256x288xf32, #tpu.memory_space<vmem>>, vector<256x3xf32>,
    %c33 = arith.constant 33 : index
    %c0_30 = arith.constant 0 : index
    %39 = vector.load %arg17[%c33, %c0_30] : memref<290x32xf32, #tpu.memory_space<vmem>>, vector<256x3xf32>
    %c0_31 = arith.constant 0 : index
    %c21 = arith.constant 21 : index
    %40 = vector.load %arg18[%c0_31, %c21] : memref<256x288xf32, #tpu.memory_space<vmem>>, vector<256x3xf32>
    tpu.vector_store %arg18[%c0_31, %c21], %39 {strides = array<i32>} : memref<256x288xf32, #tpu.memory_space<vmem>>, vector<256x3xf32>,
    %c34 = arith.constant 34 : index
    %c0_32 = arith.constant 0 : index
    %41 = vector.load %arg17[%c34, %c0_32] : memref<290x32xf32, #tpu.memory_space<vmem>>, vector<256x3xf32>
    %42 = arith.mulf %41, %19 : vector<256x3xf32>
    %c0_33 = arith.constant 0 : index
    %c24 = arith.constant 24 : index
    %43 = vector.load %arg18[%c0_33, %c24] : memref<256x288xf32, #tpu.memory_space<vmem>>, vector<256x3xf32>
    tpu.vector_store %arg18[%c0_33, %c24], %42 {strides = array<i32>} : memref<256x288xf32, #tpu.memory_space<vmem>>, vector<256x3xf32>,
    %c0_34 = arith.constant 0 : index
    %c0_35 = arith.constant 0 : index
    %44 = vector.load %arg18[%c0_34, %c0_35] : memref<256x288xf32, #tpu.memory_space<vmem>>, vector<256x27xf32>
    %45 = arith.truncf %44 : vector<256x27xf32> to vector<256x27xbf16>
    %c0_36 = arith.constant 0 : index
    %c0_37 = arith.constant 0 : index
    %46 = vector.load %arg2[%c0_36, %c0_37] : memref<27x8xbf16, #tpu.memory_space<vmem>>, vector<27x8xbf16>
    %cst_38 = arith.constant dense<0.000000e+00> : vector<256x8xf32>
    %47 = tpu.matmul %45, %46, %cst_38 {dimension_numbers = #tpu.dot_dimension_numbers<[1], [0], [0], [1], [0, 0, 1, 1], [], []>} : vector<256x27xbf16>, vector<27x8xbf16>, vector<256x8xf32> -> vector<256x8xf32>
    %c0_39 = arith.constant 0 : index
    %c0_40 = arith.constant 0 : index
    %48 = vector.load %arg3[%c0_39, %c0_40] : memref<1x8xf32, #tpu.memory_space<vmem>>, vector<1x8xf32>
    %49 = vector.broadcast %48 : vector<1x8xf32> to vector<256x8xf32>
    %50 = arith.mulf %47, %49 : vector<256x8xf32>
    %c0_41 = arith.constant 0 : index
    %c0_42 = arith.constant 0 : index
    %51 = vector.load %arg4[%c0_41, %c0_42] : memref<1x8xf32, #tpu.memory_space<vmem>>, vector<1x8xf32>
    %52 = vector.broadcast %51 : vector<1x8xf32> to vector<256x8xf32>
    %53 = arith.addf %50, %52 : vector<256x8xf32>
    %cst_43 = arith.constant 0.000000e+00 : f32
    %54 = vector.broadcast %cst_43 : f32 to vector<256x8xf32>
    %55 = arith.maximumf %53, %54 : vector<256x8xf32>
    %c0_44 = arith.constant 0 : index
    %c0_45 = arith.constant 0 : index
    %56 = vector.load %arg19[%c0_44, %c0_45] : memref<273x32xf32, #tpu.memory_space<vmem>>, vector<256x8xf32>
    tpu.vector_store %arg19[%c0_44, %c0_45], %55 {strides = array<i32>} : memref<273x32xf32, #tpu.memory_space<vmem>>, vector<256x8xf32>,
    %cst_46 = arith.constant 0.000000e+00 : f32
    %57 = vector.broadcast %cst_46 : f32 to vector<17x8xf32>
    %c256 = arith.constant 256 : index
    %c0_47 = arith.constant 0 : index
    %58 = vector.load %arg19[%c256, %c0_47] : memref<273x32xf32, #tpu.memory_space<vmem>>, vector<17x8xf32>
    tpu.vector_store %arg19[%c256, %c0_47], %57 {strides = array<i32>} : memref<273x32xf32, #tpu.memory_space<vmem>>, vector<17x8xf32>,
    %c0_48 = arith.constant 0 : index
    %c0_49 = arith.constant 0 : index
    %59 = vector.load %arg19[%c0_48, %c0_49] : memref<273x32xf32, #tpu.memory_space<vmem>>, vector<256x8xf32>
    %c1_50 = arith.constant 1 : index
    %c0_51 = arith.constant 0 : index
    %60 = vector.load %arg19[%c1_50, %c0_51] : memref<273x32xf32, #tpu.memory_space<vmem>>, vector<256x8xf32>
    %61 = arith.maximumf %59, %60 : vector<256x8xf32>
    %c16_52 = arith.constant 16 : index
    %c0_53 = arith.constant 0 : index
    %62 = vector.load %arg19[%c16_52, %c0_53] : memref<273x32xf32, #tpu.memory_space<vmem>>, vector<256x8xf32>
    %63 = arith.maximumf %61, %62 : vector<256x8xf32>
    %c17_54 = arith.constant 17 : index
    %c0_55 = arith.constant 0 : index
    %64 = vector.load %arg19[%c17_54, %c0_55] : memref<273x32xf32, #tpu.memory_space<vmem>>, vector<256x8xf32>
    %65 = arith.maximumf %63, %64 : vector<256x8xf32>
    %66 = tpu.iota {dimensions = array<i32: 0>} : vector<64x256xi32>
    %67 = tpu.iota {dimensions = array<i32: 1>} : vector<64x256xi32>
    %c3_i32 = arith.constant 3 : i32
    %68 = vector.broadcast %c3_i32 : i32 to vector<64x256xi32>
    %69 = arith.shrsi %66, %68 : vector<64x256xi32>
    %c32_i32 = arith.constant 32 : i32
    %70 = vector.broadcast %c32_i32 : i32 to vector<64x256xi32>
    %71 = arith.muli %70, %69 : vector<64x256xi32>
    %c7_i32 = arith.constant 7 : i32
    %72 = vector.broadcast %c7_i32 : i32 to vector<64x256xi32>
    %73 = arith.andi %66, %72 : vector<64x256xi32>
    %c2_i32 = arith.constant 2 : i32
    %74 = vector.broadcast %c2_i32 : i32 to vector<64x256xi32>
    %75 = arith.muli %74, %73 : vector<64x256xi32>
    %76 = arith.addi %71, %75 : vector<64x256xi32>
    %77 = arith.cmpi eq, %67, %76 : vector<64x256xi32>
    %cst_56 = arith.constant 1.000000e+00 : f32
    %cst_57 = arith.constant 0.000000e+00 : f32
    %78 = vector.broadcast %cst_56 : f32 to vector<64x256xf32>
    %79 = vector.broadcast %cst_57 : f32 to vector<64x256xf32>
    %80 = arith.select %77, %78, %79 : vector<64x256xi1>, vector<64x256xf32>
    %cst_58 = arith.constant dense<0.000000e+00> : vector<64x8xf32>
    %81 = tpu.matmul %80, %65, %cst_58 {dimension_numbers = #tpu.dot_dimension_numbers<[1], [0], [0], [1], [0, 0, 1, 1], [], []>} : vector<64x256xf32>, vector<256x8xf32>, vector<64x8xf32> -> vector<64x8xf32>
    %cst_59 = arith.constant 0.000000e+00 : f32
    %82 = vector.broadcast %cst_59 : f32 to vector<9x8xf32>
    %c0_60 = arith.constant 0 : index
    %c0_61 = arith.constant 0 : index
    %83 = vector.load %arg17[%c0_60, %c0_61] : memref<290x32xf32, #tpu.memory_space<vmem>>, vector<9x8xf32>
    tpu.vector_store %arg17[%c0_60, %c0_61], %82 {strides = array<i32>} : memref<290x32xf32, #tpu.memory_space<vmem>>, vector<9x8xf32>,
    %c9_62 = arith.constant 9 : index
    %c0_63 = arith.constant 0 : index
    %84 = vector.load %arg17[%c9_62, %c0_63] : memref<290x32xf32, #tpu.memory_space<vmem>>, vector<64x8xf32>
    tpu.vector_store %arg17[%c9_62, %c0_63], %81 {strides = array<i32>} : memref<290x32xf32, #tpu.memory_space<vmem>>, vector<64x8xf32>,
    %cst_64 = arith.constant 0.000000e+00 : f32
    %85 = vector.broadcast %cst_64 : f32 to vector<9x8xf32>
    %c73 = arith.constant 73 : index
    %c0_65 = arith.constant 0 : index
    %86 = vector.load %arg17[%c73, %c0_65] : memref<290x32xf32, #tpu.memory_space<vmem>>, vector<9x8xf32>
    tpu.vector_store %arg17[%c73, %c0_65], %85 {strides = array<i32>} : memref<290x32xf32, #tpu.memory_space<vmem>>, vector<9x8xf32>,
    %87 = tpu.iota {dimensions = array<i32: 0>} : vector<64x8xi32>
    %c7_i32_66 = arith.constant 7 : i32
    %88 = vector.broadcast %c7_i32_66 : i32 to vector<64x8xi32>
    %89 = arith.andi %87, %88 : vector<64x8xi32>
    %c0_i32_67 = arith.constant 0 : i32
    %90 = vector.broadcast %c0_i32_67 : i32 to vector<64x8xi32>
    %91 = arith.cmpi sgt, %89, %90 : vector<64x8xi32>
    %cst_68 = arith.constant 1.000000e+00 : f32
    %cst_69 = arith.constant 0.000000e+00 : f32
    %92 = vector.broadcast %cst_68 : f32 to vector<64x8xf32>
    %93 = vector.broadcast %cst_69 : f32 to vector<64x8xf32>
    %94 = arith.select %91, %92, %93 : vector<64x8xi1>, vector<64x8xf32>
    %c7_i32_70 = arith.constant 7 : i32
    %95 = vector.broadcast %c7_i32_70 : i32 to vector<64x8xi32>
    %96 = arith.cmpi slt, %89, %95 : vector<64x8xi32>
    %cst_71 = arith.constant 1.000000e+00 : f32
    %cst_72 = arith.constant 0.000000e+00 : f32
    %97 = vector.broadcast %cst_71 : f32 to vector<64x8xf32>
    %98 = vector.broadcast %cst_72 : f32 to vector<64x8xf32>
    %99 = arith.select %96, %97, %98 : vector<64x8xi1>, vector<64x8xf32>
    %c0_73 = arith.constant 0 : index
    %c0_74 = arith.constant 0 : index
    %100 = vector.load %arg17[%c0_73, %c0_74] : memref<290x32xf32, #tpu.memory_space<vmem>>, vector<64x8xf32>
    %101 = arith.mulf %100, %94 : vector<64x8xf32>
    %c0_75 = arith.constant 0 : index
    %c0_76 = arith.constant 0 : index
    %102 = vector.load %arg18[%c0_75, %c0_76] : memref<256x288xf32, #tpu.memory_space<vmem>>, vector<64x8xf32>
    tpu.vector_store %arg18[%c0_75, %c0_76], %101 {strides = array<i32>} : memref<256x288xf32, #tpu.memory_space<vmem>>, vector<64x8xf32>,
    %c1_77 = arith.constant 1 : index
    %c0_78 = arith.constant 0 : index
    %103 = vector.load %arg17[%c1_77, %c0_78] : memref<290x32xf32, #tpu.memory_space<vmem>>, vector<64x8xf32>
    %c0_79 = arith.constant 0 : index
    %c8 = arith.constant 8 : index
    %104 = vector.load %arg18[%c0_79, %c8] : memref<256x288xf32, #tpu.memory_space<vmem>>, vector<64x8xf32>
    tpu.vector_store %arg18[%c0_79, %c8], %103 {strides = array<i32>} : memref<256x288xf32, #tpu.memory_space<vmem>>, vector<64x8xf32>,
    %c2_80 = arith.constant 2 : index
    %c0_81 = arith.constant 0 : index
    %105 = vector.load %arg17[%c2_80, %c0_81] : memref<290x32xf32, #tpu.memory_space<vmem>>, vector<64x8xf32>
    %106 = arith.mulf %105, %99 : vector<64x8xf32>
    %c0_82 = arith.constant 0 : index
    %c16_83 = arith.constant 16 : index
    %107 = vector.load %arg18[%c0_82, %c16_83] : memref<256x288xf32, #tpu.memory_space<vmem>>, vector<64x8xf32>
    tpu.vector_store %arg18[%c0_82, %c16_83], %106 {strides = array<i32>} : memref<256x288xf32, #tpu.memory_space<vmem>>, vector<64x8xf32>,
    %c8_84 = arith.constant 8 : index
    %c0_85 = arith.constant 0 : index
    %108 = vector.load %arg17[%c8_84, %c0_85] : memref<290x32xf32, #tpu.memory_space<vmem>>, vector<64x8xf32>
    %109 = arith.mulf %108, %94 : vector<64x8xf32>
    %c0_86 = arith.constant 0 : index
    %c24_87 = arith.constant 24 : index
    %110 = vector.load %arg18[%c0_86, %c24_87] : memref<256x288xf32, #tpu.memory_space<vmem>>, vector<64x8xf32>
    tpu.vector_store %arg18[%c0_86, %c24_87], %109 {strides = array<i32>} : memref<256x288xf32, #tpu.memory_space<vmem>>, vector<64x8xf32>,
    %c9_88 = arith.constant 9 : index
    %c0_89 = arith.constant 0 : index
    %111 = vector.load %arg17[%c9_88, %c0_89] : memref<290x32xf32, #tpu.memory_space<vmem>>, vector<64x8xf32>
    %c0_90 = arith.constant 0 : index
    %c32_91 = arith.constant 32 : index
    %112 = vector.load %arg18[%c0_90, %c32_91] : memref<256x288xf32, #tpu.memory_space<vmem>>, vector<64x8xf32>
    tpu.vector_store %arg18[%c0_90, %c32_91], %111 {strides = array<i32>} : memref<256x288xf32, #tpu.memory_space<vmem>>, vector<64x8xf32>,
    %c10 = arith.constant 10 : index
    %c0_92 = arith.constant 0 : index
    %113 = vector.load %arg17[%c10, %c0_92] : memref<290x32xf32, #tpu.memory_space<vmem>>, vector<64x8xf32>
    %114 = arith.mulf %113, %99 : vector<64x8xf32>
    %c0_93 = arith.constant 0 : index
    %c40 = arith.constant 40 : index
    %115 = vector.load %arg18[%c0_93, %c40] : memref<256x288xf32, #tpu.memory_space<vmem>>, vector<64x8xf32>
    tpu.vector_store %arg18[%c0_93, %c40], %114 {strides = array<i32>} : memref<256x288xf32, #tpu.memory_space<vmem>>, vector<64x8xf32>,
    %c16_94 = arith.constant 16 : index
    %c0_95 = arith.constant 0 : index
    %116 = vector.load %arg17[%c16_94, %c0_95] : memref<290x32xf32, #tpu.memory_space<vmem>>, vector<64x8xf32>
    %117 = arith.mulf %116, %94 : vector<64x8xf32>
    %c0_96 = arith.constant 0 : index
    %c48 = arith.constant 48 : index
    %118 = vector.load %arg18[%c0_96, %c48] : memref<256x288xf32, #tpu.memory_space<vmem>>, vector<64x8xf32>
    tpu.vector_store %arg18[%c0_96, %c48], %117 {strides = array<i32>} : memref<256x288xf32, #tpu.memory_space<vmem>>, vector<64x8xf32>,
    %c17_97 = arith.constant 17 : index
    %c0_98 = arith.constant 0 : index
    %119 = vector.load %arg17[%c17_97, %c0_98] : memref<290x32xf32, #tpu.memory_space<vmem>>, vector<64x8xf32>
    %c0_99 = arith.constant 0 : index
    %c56 = arith.constant 56 : index
    %120 = vector.load %arg18[%c0_99, %c56] : memref<256x288xf32, #tpu.memory_space<vmem>>, vector<64x8xf32>
    tpu.vector_store %arg18[%c0_99, %c56], %119 {strides = array<i32>} : memref<256x288xf32, #tpu.memory_space<vmem>>, vector<64x8xf32>,
    %c18_100 = arith.constant 18 : index
    %c0_101 = arith.constant 0 : index
    %121 = vector.load %arg17[%c18_100, %c0_101] : memref<290x32xf32, #tpu.memory_space<vmem>>, vector<64x8xf32>
    %122 = arith.mulf %121, %99 : vector<64x8xf32>
    %c0_102 = arith.constant 0 : index
    %c64 = arith.constant 64 : index
    %123 = vector.load %arg18[%c0_102, %c64] : memref<256x288xf32, #tpu.memory_space<vmem>>, vector<64x8xf32>
    tpu.vector_store %arg18[%c0_102, %c64], %122 {strides = array<i32>} : memref<256x288xf32, #tpu.memory_space<vmem>>, vector<64x8xf32>,
    %c0_103 = arith.constant 0 : index
    %c0_104 = arith.constant 0 : index
    %124 = vector.load %arg18[%c0_103, %c0_104] : memref<256x288xf32, #tpu.memory_space<vmem>>, vector<64x72xf32>
    %125 = arith.truncf %124 : vector<64x72xf32> to vector<64x72xbf16>
    %c0_105 = arith.constant 0 : index
    %c0_106 = arith.constant 0 : index
    %126 = vector.load %arg5[%c0_105, %c0_106] : memref<72x16xbf16, #tpu.memory_space<vmem>>, vector<72x16xbf16>
    %cst_107 = arith.constant dense<0.000000e+00> : vector<64x16xf32>
    %127 = tpu.matmul %125, %126, %cst_107 {dimension_numbers = #tpu.dot_dimension_numbers<[1], [0], [0], [1], [0, 0, 1, 1], [], []>} : vector<64x72xbf16>, vector<72x16xbf16>, vector<64x16xf32> -> vector<64x16xf32>
    %c0_108 = arith.constant 0 : index
    %c0_109 = arith.constant 0 : index
    %128 = vector.load %arg6[%c0_108, %c0_109] : memref<1x16xf32, #tpu.memory_space<vmem>>, vector<1x16xf32>
    %129 = vector.broadcast %128 : vector<1x16xf32> to vector<64x16xf32>
    %130 = arith.mulf %127, %129 : vector<64x16xf32>
    %c0_110 = arith.constant 0 : index
    %c0_111 = arith.constant 0 : index
    %131 = vector.load %arg7[%c0_110, %c0_111] : memref<1x16xf32, #tpu.memory_space<vmem>>, vector<1x16xf32>
    %132 = vector.broadcast %131 : vector<1x16xf32> to vector<64x16xf32>
    %133 = arith.addf %130, %132 : vector<64x16xf32>
    %cst_112 = arith.constant 0.000000e+00 : f32
    %134 = vector.broadcast %cst_112 : f32 to vector<64x16xf32>
    %135 = arith.maximumf %133, %134 : vector<64x16xf32>
    %c0_113 = arith.constant 0 : index
    %c0_114 = arith.constant 0 : index
    %136 = vector.load %arg19[%c0_113, %c0_114] : memref<273x32xf32, #tpu.memory_space<vmem>>, vector<64x16xf32>
    tpu.vector_store %arg19[%c0_113, %c0_114], %135 {strides = array<i32>} : memref<273x32xf32, #tpu.memory_space<vmem>>, vector<64x16xf32>,
    %cst_115 = arith.constant 0.000000e+00 : f32
    %137 = vector.broadcast %cst_115 : f32 to vector<9x16xf32>
    %c64_116 = arith.constant 64 : index
    %c0_117 = arith.constant 0 : index
    %138 = vector.load %arg19[%c64_116, %c0_117] : memref<273x32xf32, #tpu.memory_space<vmem>>, vector<9x16xf32>
    tpu.vector_store %arg19[%c64_116, %c0_117], %137 {strides = array<i32>} : memref<273x32xf32, #tpu.memory_space<vmem>>, vector<9x16xf32>,
    %c0_118 = arith.constant 0 : index
    %c0_119 = arith.constant 0 : index
    %139 = vector.load %arg19[%c0_118, %c0_119] : memref<273x32xf32, #tpu.memory_space<vmem>>, vector<64x16xf32>
    %c1_120 = arith.constant 1 : index
    %c0_121 = arith.constant 0 : index
    %140 = vector.load %arg19[%c1_120, %c0_121] : memref<273x32xf32, #tpu.memory_space<vmem>>, vector<64x16xf32>
    %141 = arith.maximumf %139, %140 : vector<64x16xf32>
    %c8_122 = arith.constant 8 : index
    %c0_123 = arith.constant 0 : index
    %142 = vector.load %arg19[%c8_122, %c0_123] : memref<273x32xf32, #tpu.memory_space<vmem>>, vector<64x16xf32>
    %143 = arith.maximumf %141, %142 : vector<64x16xf32>
    %c9_124 = arith.constant 9 : index
    %c0_125 = arith.constant 0 : index
    %144 = vector.load %arg19[%c9_124, %c0_125] : memref<273x32xf32, #tpu.memory_space<vmem>>, vector<64x16xf32>
    %145 = arith.maximumf %143, %144 : vector<64x16xf32>
    %146 = tpu.iota {dimensions = array<i32: 0>} : vector<16x64xi32>
    %147 = tpu.iota {dimensions = array<i32: 1>} : vector<16x64xi32>
    %c2_i32_126 = arith.constant 2 : i32
    %148 = vector.broadcast %c2_i32_126 : i32 to vector<16x64xi32>
    %149 = arith.shrsi %146, %148 : vector<16x64xi32>
    %c16_i32 = arith.constant 16 : i32
    %150 = vector.broadcast %c16_i32 : i32 to vector<16x64xi32>
    %151 = arith.muli %150, %149 : vector<16x64xi32>
    %c3_i32_127 = arith.constant 3 : i32
    %152 = vector.broadcast %c3_i32_127 : i32 to vector<16x64xi32>
    %153 = arith.andi %146, %152 : vector<16x64xi32>
    %c2_i32_128 = arith.constant 2 : i32
    %154 = vector.broadcast %c2_i32_128 : i32 to vector<16x64xi32>
    %155 = arith.muli %154, %153 : vector<16x64xi32>
    %156 = arith.addi %151, %155 : vector<16x64xi32>
    %157 = arith.cmpi eq, %147, %156 : vector<16x64xi32>
    %cst_129 = arith.constant 1.000000e+00 : f32
    %cst_130 = arith.constant 0.000000e+00 : f32
    %158 = vector.broadcast %cst_129 : f32 to vector<16x64xf32>
    %159 = vector.broadcast %cst_130 : f32 to vector<16x64xf32>
    %160 = arith.select %157, %158, %159 : vector<16x64xi1>, vector<16x64xf32>
    %cst_131 = arith.constant dense<0.000000e+00> : vector<16x16xf32>
    %161 = tpu.matmul %160, %145, %cst_131 {dimension_numbers = #tpu.dot_dimension_numbers<[1], [0], [0], [1], [0, 0, 1, 1], [], []>} : vector<16x64xf32>, vector<64x16xf32>, vector<16x16xf32> -> vector<16x16xf32>
    %cst_132 = arith.constant 0.000000e+00 : f32
    %162 = vector.broadcast %cst_132 : f32 to vector<5x16xf32>
    %c0_133 = arith.constant 0 : index
    %c0_134 = arith.constant 0 : index
    %163 = vector.load %arg17[%c0_133, %c0_134] : memref<290x32xf32, #tpu.memory_space<vmem>>, vector<5x16xf32>
    tpu.vector_store %arg17[%c0_133, %c0_134], %162 {strides = array<i32>} : memref<290x32xf32, #tpu.memory_space<vmem>>, vector<5x16xf32>,
    %c5 = arith.constant 5 : index
    %c0_135 = arith.constant 0 : index
    %164 = vector.load %arg17[%c5, %c0_135] : memref<290x32xf32, #tpu.memory_space<vmem>>, vector<16x16xf32>
    tpu.vector_store %arg17[%c5, %c0_135], %161 {strides = array<i32>} : memref<290x32xf32, #tpu.memory_space<vmem>>, vector<16x16xf32>,
    %cst_136 = arith.constant 0.000000e+00 : f32
    %165 = vector.broadcast %cst_136 : f32 to vector<5x16xf32>
    %c21_137 = arith.constant 21 : index
    %c0_138 = arith.constant 0 : index
    %166 = vector.load %arg17[%c21_137, %c0_138] : memref<290x32xf32, #tpu.memory_space<vmem>>, vector<5x16xf32>
    tpu.vector_store %arg17[%c21_137, %c0_138], %165 {strides = array<i32>} : memref<290x32xf32, #tpu.memory_space<vmem>>, vector<5x16xf32>,
    %167 = tpu.iota {dimensions = array<i32: 0>} : vector<16x16xi32>
    %c3_i32_139 = arith.constant 3 : i32
    %168 = vector.broadcast %c3_i32_139 : i32 to vector<16x16xi32>
    %169 = arith.andi %167, %168 : vector<16x16xi32>
    %c0_i32_140 = arith.constant 0 : i32
    %170 = vector.broadcast %c0_i32_140 : i32 to vector<16x16xi32>
    %171 = arith.cmpi sgt, %169, %170 : vector<16x16xi32>
    %cst_141 = arith.constant 1.000000e+00 : f32
    %cst_142 = arith.constant 0.000000e+00 : f32
    %172 = vector.broadcast %cst_141 : f32 to vector<16x16xf32>
    %173 = vector.broadcast %cst_142 : f32 to vector<16x16xf32>
    %174 = arith.select %171, %172, %173 : vector<16x16xi1>, vector<16x16xf32>
    %c3_i32_143 = arith.constant 3 : i32
    %175 = vector.broadcast %c3_i32_143 : i32 to vector<16x16xi32>
    %176 = arith.cmpi slt, %169, %175 : vector<16x16xi32>
    %cst_144 = arith.constant 1.000000e+00 : f32
    %cst_145 = arith.constant 0.000000e+00 : f32
    %177 = vector.broadcast %cst_144 : f32 to vector<16x16xf32>
    %178 = vector.broadcast %cst_145 : f32 to vector<16x16xf32>
    %179 = arith.select %176, %177, %178 : vector<16x16xi1>, vector<16x16xf32>
    %c0_146 = arith.constant 0 : index
    %c0_147 = arith.constant 0 : index
    %180 = vector.load %arg17[%c0_146, %c0_147] : memref<290x32xf32, #tpu.memory_space<vmem>>, vector<16x16xf32>
    %181 = arith.mulf %180, %174 : vector<16x16xf32>
    %c0_148 = arith.constant 0 : index
    %c0_149 = arith.constant 0 : index
    %182 = vector.load %arg18[%c0_148, %c0_149] : memref<256x288xf32, #tpu.memory_space<vmem>>, vector<16x16xf32>
    tpu.vector_store %arg18[%c0_148, %c0_149], %181 {strides = array<i32>} : memref<256x288xf32, #tpu.memory_space<vmem>>, vector<16x16xf32>,
    %c1_150 = arith.constant 1 : index
    %c0_151 = arith.constant 0 : index
    %183 = vector.load %arg17[%c1_150, %c0_151] : memref<290x32xf32, #tpu.memory_space<vmem>>, vector<16x16xf32>
    %c0_152 = arith.constant 0 : index
    %c16_153 = arith.constant 16 : index
    %184 = vector.load %arg18[%c0_152, %c16_153] : memref<256x288xf32, #tpu.memory_space<vmem>>, vector<16x16xf32>
    tpu.vector_store %arg18[%c0_152, %c16_153], %183 {strides = array<i32>} : memref<256x288xf32, #tpu.memory_space<vmem>>, vector<16x16xf32>,
    %c2_154 = arith.constant 2 : index
    %c0_155 = arith.constant 0 : index
    %185 = vector.load %arg17[%c2_154, %c0_155] : memref<290x32xf32, #tpu.memory_space<vmem>>, vector<16x16xf32>
    %186 = arith.mulf %185, %179 : vector<16x16xf32>
    %c0_156 = arith.constant 0 : index
    %c32_157 = arith.constant 32 : index
    %187 = vector.load %arg18[%c0_156, %c32_157] : memref<256x288xf32, #tpu.memory_space<vmem>>, vector<16x16xf32>
    tpu.vector_store %arg18[%c0_156, %c32_157], %186 {strides = array<i32>} : memref<256x288xf32, #tpu.memory_space<vmem>>, vector<16x16xf32>,
    %c4 = arith.constant 4 : index
    %c0_158 = arith.constant 0 : index
    %188 = vector.load %arg17[%c4, %c0_158] : memref<290x32xf32, #tpu.memory_space<vmem>>, vector<16x16xf32>
    %189 = arith.mulf %188, %174 : vector<16x16xf32>
    %c0_159 = arith.constant 0 : index
    %c48_160 = arith.constant 48 : index
    %190 = vector.load %arg18[%c0_159, %c48_160] : memref<256x288xf32, #tpu.memory_space<vmem>>, vector<16x16xf32>
    tpu.vector_store %arg18[%c0_159, %c48_160], %189 {strides = array<i32>} : memref<256x288xf32, #tpu.memory_space<vmem>>, vector<16x16xf32>,
    %c5_161 = arith.constant 5 : index
    %c0_162 = arith.constant 0 : index
    %191 = vector.load %arg17[%c5_161, %c0_162] : memref<290x32xf32, #tpu.memory_space<vmem>>, vector<16x16xf32>
    %c0_163 = arith.constant 0 : index
    %c64_164 = arith.constant 64 : index
    %192 = vector.load %arg18[%c0_163, %c64_164] : memref<256x288xf32, #tpu.memory_space<vmem>>, vector<16x16xf32>
    tpu.vector_store %arg18[%c0_163, %c64_164], %191 {strides = array<i32>} : memref<256x288xf32, #tpu.memory_space<vmem>>, vector<16x16xf32>,
    %c6_165 = arith.constant 6 : index
    %c0_166 = arith.constant 0 : index
    %193 = vector.load %arg17[%c6_165, %c0_166] : memref<290x32xf32, #tpu.memory_space<vmem>>, vector<16x16xf32>
    %194 = arith.mulf %193, %179 : vector<16x16xf32>
    %c0_167 = arith.constant 0 : index
    %c80 = arith.constant 80 : index
    %195 = vector.load %arg18[%c0_167, %c80] : memref<256x288xf32, #tpu.memory_space<vmem>>, vector<16x16xf32>
    tpu.vector_store %arg18[%c0_167, %c80], %194 {strides = array<i32>} : memref<256x288xf32, #tpu.memory_space<vmem>>, vector<16x16xf32>,
    %c8_168 = arith.constant 8 : index
    %c0_169 = arith.constant 0 : index
    %196 = vector.load %arg17[%c8_168, %c0_169] : memref<290x32xf32, #tpu.memory_space<vmem>>, vector<16x16xf32>
    %197 = arith.mulf %196, %174 : vector<16x16xf32>
    %c0_170 = arith.constant 0 : index
    %c96 = arith.constant 96 : index
    %198 = vector.load %arg18[%c0_170, %c96] : memref<256x288xf32, #tpu.memory_space<vmem>>, vector<16x16xf32>
    tpu.vector_store %arg18[%c0_170, %c96], %197 {strides = array<i32>} : memref<256x288xf32, #tpu.memory_space<vmem>>, vector<16x16xf32>,
    %c9_171 = arith.constant 9 : index
    %c0_172 = arith.constant 0 : index
    %199 = vector.load %arg17[%c9_171, %c0_172] : memref<290x32xf32, #tpu.memory_space<vmem>>, vector<16x16xf32>
    %c0_173 = arith.constant 0 : index
    %c112 = arith.constant 112 : index
    %200 = vector.load %arg18[%c0_173, %c112] : memref<256x288xf32, #tpu.memory_space<vmem>>, vector<16x16xf32>
    tpu.vector_store %arg18[%c0_173, %c112], %199 {strides = array<i32>} : memref<256x288xf32, #tpu.memory_space<vmem>>, vector<16x16xf32>,
    %c10_174 = arith.constant 10 : index
    %c0_175 = arith.constant 0 : index
    %201 = vector.load %arg17[%c10_174, %c0_175] : memref<290x32xf32, #tpu.memory_space<vmem>>, vector<16x16xf32>
    %202 = arith.mulf %201, %179 : vector<16x16xf32>
    %c0_176 = arith.constant 0 : index
    %c128 = arith.constant 128 : index
    %203 = vector.load %arg18[%c0_176, %c128] : memref<256x288xf32, #tpu.memory_space<vmem>>, vector<16x16xf32>
    tpu.vector_store %arg18[%c0_176, %c128], %202 {strides = array<i32>} : memref<256x288xf32, #tpu.memory_space<vmem>>, vector<16x16xf32>,
    %c0_177 = arith.constant 0 : index
    %c0_178 = arith.constant 0 : index
    %204 = vector.load %arg18[%c0_177, %c0_178] : memref<256x288xf32, #tpu.memory_space<vmem>>, vector<16x144xf32>
    %205 = arith.truncf %204 : vector<16x144xf32> to vector<16x144xbf16>
    %c0_179 = arith.constant 0 : index
    %c0_180 = arith.constant 0 : index
    %206 = vector.load %arg8[%c0_179, %c0_180] : memref<144x32xbf16, #tpu.memory_space<vmem>>, vector<144x32xbf16>
    %cst_181 = arith.constant dense<0.000000e+00> : vector<16x32xf32>
    %207 = tpu.matmul %205, %206, %cst_181 {dimension_numbers = #tpu.dot_dimension_numbers<[1], [0], [0], [1], [0, 0, 1, 1], [], []>} : vector<16x144xbf16>, vector<144x32xbf16>, vector<16x32xf32> -> vector<16x32xf32>
    %c0_182 = arith.constant 0 : index
    %c0_183 = arith.constant 0 : index
    %208 = vector.load %arg9[%c0_182, %c0_183] : memref<1x32xf32, #tpu.memory_space<vmem>>, vector<1x32xf32>
    %209 = vector.broadcast %208 : vector<1x32xf32> to vector<16x32xf32>
    %210 = arith.mulf %207, %209 : vector<16x32xf32>
    %c0_184 = arith.constant 0 : index
    %c0_185 = arith.constant 0 : index
    %211 = vector.load %arg10[%c0_184, %c0_185] : memref<1x32xf32, #tpu.memory_space<vmem>>, vector<1x32xf32>
    %212 = vector.broadcast %211 : vector<1x32xf32> to vector<16x32xf32>
    %213 = arith.addf %210, %212 : vector<16x32xf32>
    %cst_186 = arith.constant 0.000000e+00 : f32
    %214 = vector.broadcast %cst_186 : f32 to vector<16x32xf32>
    %215 = arith.maximumf %213, %214 : vector<16x32xf32>
    %c0_187 = arith.constant 0 : index
    %c0_188 = arith.constant 0 : index
    %216 = vector.load %arg19[%c0_187, %c0_188] : memref<273x32xf32, #tpu.memory_space<vmem>>, vector<16x32xf32>
    tpu.vector_store %arg19[%c0_187, %c0_188], %215 {strides = array<i32>} : memref<273x32xf32, #tpu.memory_space<vmem>>, vector<16x32xf32>,
    %cst_189 = arith.constant 0.000000e+00 : f32
    %217 = vector.broadcast %cst_189 : f32 to vector<5x32xf32>
    %c16_190 = arith.constant 16 : index
    %c0_191 = arith.constant 0 : index
    %218 = vector.load %arg19[%c16_190, %c0_191] : memref<273x32xf32, #tpu.memory_space<vmem>>, vector<5x32xf32>
    tpu.vector_store %arg19[%c16_190, %c0_191], %217 {strides = array<i32>} : memref<273x32xf32, #tpu.memory_space<vmem>>, vector<5x32xf32>,
    %c0_192 = arith.constant 0 : index
    %c0_193 = arith.constant 0 : index
    %219 = vector.load %arg19[%c0_192, %c0_193] : memref<273x32xf32, #tpu.memory_space<vmem>>, vector<16x32xf32>
    %c1_194 = arith.constant 1 : index
    %c0_195 = arith.constant 0 : index
    %220 = vector.load %arg19[%c1_194, %c0_195] : memref<273x32xf32, #tpu.memory_space<vmem>>, vector<16x32xf32>
    %221 = arith.maximumf %219, %220 : vector<16x32xf32>
    %c4_196 = arith.constant 4 : index
    %c0_197 = arith.constant 0 : index
    %222 = vector.load %arg19[%c4_196, %c0_197] : memref<273x32xf32, #tpu.memory_space<vmem>>, vector<16x32xf32>
    %223 = arith.maximumf %221, %222 : vector<16x32xf32>
    %c5_198 = arith.constant 5 : index
    %c0_199 = arith.constant 0 : index
    %224 = vector.load %arg19[%c5_198, %c0_199] : memref<273x32xf32, #tpu.memory_space<vmem>>, vector<16x32xf32>
    %225 = arith.maximumf %223, %224 : vector<16x32xf32>
    %226 = tpu.iota {dimensions = array<i32: 0>} : vector<4x16xi32>
    %227 = tpu.iota {dimensions = array<i32: 1>} : vector<4x16xi32>
    %c1_i32 = arith.constant 1 : i32
    %228 = vector.broadcast %c1_i32 : i32 to vector<4x16xi32>
    %229 = arith.shrsi %226, %228 : vector<4x16xi32>
    %c8_i32 = arith.constant 8 : i32
    %230 = vector.broadcast %c8_i32 : i32 to vector<4x16xi32>
    %231 = arith.muli %230, %229 : vector<4x16xi32>
    %c1_i32_200 = arith.constant 1 : i32
    %232 = vector.broadcast %c1_i32_200 : i32 to vector<4x16xi32>
    %233 = arith.andi %226, %232 : vector<4x16xi32>
    %c2_i32_201 = arith.constant 2 : i32
    %234 = vector.broadcast %c2_i32_201 : i32 to vector<4x16xi32>
    %235 = arith.muli %234, %233 : vector<4x16xi32>
    %236 = arith.addi %231, %235 : vector<4x16xi32>
    %237 = arith.cmpi eq, %227, %236 : vector<4x16xi32>
    %cst_202 = arith.constant 1.000000e+00 : f32
    %cst_203 = arith.constant 0.000000e+00 : f32
    %238 = vector.broadcast %cst_202 : f32 to vector<4x16xf32>
    %239 = vector.broadcast %cst_203 : f32 to vector<4x16xf32>
    %240 = arith.select %237, %238, %239 : vector<4x16xi1>, vector<4x16xf32>
    %cst_204 = arith.constant dense<0.000000e+00> : vector<4x32xf32>
    %241 = tpu.matmul %240, %225, %cst_204 {dimension_numbers = #tpu.dot_dimension_numbers<[1], [0], [0], [1], [0, 0, 1, 1], [], []>} : vector<4x16xf32>, vector<16x32xf32>, vector<4x32xf32> -> vector<4x32xf32>
    %cst_205 = arith.constant 0.000000e+00 : f32
    %242 = vector.broadcast %cst_205 : f32 to vector<3x32xf32>
    %c0_206 = arith.constant 0 : index
    %c0_207 = arith.constant 0 : index
    %243 = vector.load %arg17[%c0_206, %c0_207] : memref<290x32xf32, #tpu.memory_space<vmem>>, vector<3x32xf32>
    tpu.vector_store %arg17[%c0_206, %c0_207], %242 {strides = array<i32>} : memref<290x32xf32, #tpu.memory_space<vmem>>, vector<3x32xf32>,
    %c3_208 = arith.constant 3 : index
    %c0_209 = arith.constant 0 : index
    %244 = vector.load %arg17[%c3_208, %c0_209] : memref<290x32xf32, #tpu.memory_space<vmem>>, vector<4x32xf32>
    tpu.vector_store %arg17[%c3_208, %c0_209], %241 {strides = array<i32>} : memref<290x32xf32, #tpu.memory_space<vmem>>, vector<4x32xf32>,
    %cst_210 = arith.constant 0.000000e+00 : f32
    %245 = vector.broadcast %cst_210 : f32 to vector<3x32xf32>
    %c7 = arith.constant 7 : index
    %c0_211 = arith.constant 0 : index
    %246 = vector.load %arg17[%c7, %c0_211] : memref<290x32xf32, #tpu.memory_space<vmem>>, vector<3x32xf32>
    tpu.vector_store %arg17[%c7, %c0_211], %245 {strides = array<i32>} : memref<290x32xf32, #tpu.memory_space<vmem>>, vector<3x32xf32>,
    %247 = tpu.iota {dimensions = array<i32: 0>} : vector<4x32xi32>
    %c1_i32_212 = arith.constant 1 : i32
    %248 = vector.broadcast %c1_i32_212 : i32 to vector<4x32xi32>
    %249 = arith.andi %247, %248 : vector<4x32xi32>
    %c0_i32_213 = arith.constant 0 : i32
    %250 = vector.broadcast %c0_i32_213 : i32 to vector<4x32xi32>
    %251 = arith.cmpi sgt, %249, %250 : vector<4x32xi32>
    %cst_214 = arith.constant 1.000000e+00 : f32
    %cst_215 = arith.constant 0.000000e+00 : f32
    %252 = vector.broadcast %cst_214 : f32 to vector<4x32xf32>
    %253 = vector.broadcast %cst_215 : f32 to vector<4x32xf32>
    %254 = arith.select %251, %252, %253 : vector<4x32xi1>, vector<4x32xf32>
    %c1_i32_216 = arith.constant 1 : i32
    %255 = vector.broadcast %c1_i32_216 : i32 to vector<4x32xi32>
    %256 = arith.cmpi slt, %249, %255 : vector<4x32xi32>
    %cst_217 = arith.constant 1.000000e+00 : f32
    %cst_218 = arith.constant 0.000000e+00 : f32
    %257 = vector.broadcast %cst_217 : f32 to vector<4x32xf32>
    %258 = vector.broadcast %cst_218 : f32 to vector<4x32xf32>
    %259 = arith.select %256, %257, %258 : vector<4x32xi1>, vector<4x32xf32>
    %c0_219 = arith.constant 0 : index
    %c0_220 = arith.constant 0 : index
    %260 = vector.load %arg17[%c0_219, %c0_220] : memref<290x32xf32, #tpu.memory_space<vmem>>, vector<4x32xf32>
    %261 = arith.mulf %260, %254 : vector<4x32xf32>
    %c0_221 = arith.constant 0 : index
    %c0_222 = arith.constant 0 : index
    %262 = vector.load %arg18[%c0_221, %c0_222] : memref<256x288xf32, #tpu.memory_space<vmem>>, vector<4x32xf32>
    tpu.vector_store %arg18[%c0_221, %c0_222], %261 {strides = array<i32>} : memref<256x288xf32, #tpu.memory_space<vmem>>, vector<4x32xf32>,
    %c1_223 = arith.constant 1 : index
    %c0_224 = arith.constant 0 : index
    %263 = vector.load %arg17[%c1_223, %c0_224] : memref<290x32xf32, #tpu.memory_space<vmem>>, vector<4x32xf32>
    %c0_225 = arith.constant 0 : index
    %c32_226 = arith.constant 32 : index
    %264 = vector.load %arg18[%c0_225, %c32_226] : memref<256x288xf32, #tpu.memory_space<vmem>>, vector<4x32xf32>
    tpu.vector_store %arg18[%c0_225, %c32_226], %263 {strides = array<i32>} : memref<256x288xf32, #tpu.memory_space<vmem>>, vector<4x32xf32>,
    %c2_227 = arith.constant 2 : index
    %c0_228 = arith.constant 0 : index
    %265 = vector.load %arg17[%c2_227, %c0_228] : memref<290x32xf32, #tpu.memory_space<vmem>>, vector<4x32xf32>
    %266 = arith.mulf %265, %259 : vector<4x32xf32>
    %c0_229 = arith.constant 0 : index
    %c64_230 = arith.constant 64 : index
    %267 = vector.load %arg18[%c0_229, %c64_230] : memref<256x288xf32, #tpu.memory_space<vmem>>, vector<4x32xf32>
    tpu.vector_store %arg18[%c0_229, %c64_230], %266 {strides = array<i32>} : memref<256x288xf32, #tpu.memory_space<vmem>>, vector<4x32xf32>,
    %c2_231 = arith.constant 2 : index
    %c0_232 = arith.constant 0 : index
    %268 = vector.load %arg17[%c2_231, %c0_232] : memref<290x32xf32, #tpu.memory_space<vmem>>, vector<4x32xf32>
    %269 = arith.mulf %268, %254 : vector<4x32xf32>
    %c0_233 = arith.constant 0 : index
    %c96_234 = arith.constant 96 : index
    %270 = vector.load %arg18[%c0_233, %c96_234] : memref<256x288xf32, #tpu.memory_space<vmem>>, vector<4x32xf32>
    tpu.vector_store %arg18[%c0_233, %c96_234], %269 {strides = array<i32>} : memref<256x288xf32, #tpu.memory_space<vmem>>, vector<4x32xf32>,
    %c3_235 = arith.constant 3 : index
    %c0_236 = arith.constant 0 : index
    %271 = vector.load %arg17[%c3_235, %c0_236] : memref<290x32xf32, #tpu.memory_space<vmem>>, vector<4x32xf32>
    %c0_237 = arith.constant 0 : index
    %c128_238 = arith.constant 128 : index
    %272 = vector.load %arg18[%c0_237, %c128_238] : memref<256x288xf32, #tpu.memory_space<vmem>>, vector<4x32xf32>
    tpu.vector_store %arg18[%c0_237, %c128_238], %271 {strides = array<i32>} : memref<256x288xf32, #tpu.memory_space<vmem>>, vector<4x32xf32>,
    %c4_239 = arith.constant 4 : index
    %c0_240 = arith.constant 0 : index
    %273 = vector.load %arg17[%c4_239, %c0_240] : memref<290x32xf32, #tpu.memory_space<vmem>>, vector<4x32xf32>
    %274 = arith.mulf %273, %259 : vector<4x32xf32>
    %c0_241 = arith.constant 0 : index
    %c160 = arith.constant 160 : index
    %275 = vector.load %arg18[%c0_241, %c160] : memref<256x288xf32, #tpu.memory_space<vmem>>, vector<4x32xf32>
    tpu.vector_store %arg18[%c0_241, %c160], %274 {strides = array<i32>} : memref<256x288xf32, #tpu.memory_space<vmem>>, vector<4x32xf32>,
    %c4_242 = arith.constant 4 : index
    %c0_243 = arith.constant 0 : index
    %276 = vector.load %arg17[%c4_242, %c0_243] : memref<290x32xf32, #tpu.memory_space<vmem>>, vector<4x32xf32>
    %277 = arith.mulf %276, %254 : vector<4x32xf32>
    %c0_244 = arith.constant 0 : index
    %c192 = arith.constant 192 : index
    %278 = vector.load %arg18[%c0_244, %c192] : memref<256x288xf32, #tpu.memory_space<vmem>>, vector<4x32xf32>
    tpu.vector_store %arg18[%c0_244, %c192], %277 {strides = array<i32>} : memref<256x288xf32, #tpu.memory_space<vmem>>, vector<4x32xf32>,
    %c5_245 = arith.constant 5 : index
    %c0_246 = arith.constant 0 : index
    %279 = vector.load %arg17[%c5_245, %c0_246] : memref<290x32xf32, #tpu.memory_space<vmem>>, vector<4x32xf32>
    %c0_247 = arith.constant 0 : index
    %c224 = arith.constant 224 : index
    %280 = vector.load %arg18[%c0_247, %c224] : memref<256x288xf32, #tpu.memory_space<vmem>>, vector<4x32xf32>
    tpu.vector_store %arg18[%c0_247, %c224], %279 {strides = array<i32>} : memref<256x288xf32, #tpu.memory_space<vmem>>, vector<4x32xf32>,
    %c6_248 = arith.constant 6 : index
    %c0_249 = arith.constant 0 : index
    %281 = vector.load %arg17[%c6_248, %c0_249] : memref<290x32xf32, #tpu.memory_space<vmem>>, vector<4x32xf32>
    %282 = arith.mulf %281, %259 : vector<4x32xf32>
    %c0_250 = arith.constant 0 : index
    %c256_251 = arith.constant 256 : index
    %283 = vector.load %arg18[%c0_250, %c256_251] : memref<256x288xf32, #tpu.memory_space<vmem>>, vector<4x32xf32>
    tpu.vector_store %arg18[%c0_250, %c256_251], %282 {strides = array<i32>} : memref<256x288xf32, #tpu.memory_space<vmem>>, vector<4x32xf32>,
    %c0_252 = arith.constant 0 : index
    %c0_253 = arith.constant 0 : index
    %284 = vector.load %arg18[%c0_252, %c0_253] : memref<256x288xf32, #tpu.memory_space<vmem>>, vector<4x288xf32>
    %285 = arith.truncf %284 : vector<4x288xf32> to vector<4x288xbf16>
    %c0_254 = arith.constant 0 : index
    %c0_255 = arith.constant 0 : index
    %286 = vector.load %arg11[%c0_254, %c0_255] : memref<288x32xbf16, #tpu.memory_space<vmem>>, vector<288x32xbf16>
    %cst_256 = arith.constant dense<0.000000e+00> : vector<4x32xf32>
    %287 = tpu.matmul %285, %286, %cst_256 {dimension_numbers = #tpu.dot_dimension_numbers<[1], [0], [0], [1], [0, 0, 1, 1], [], []>} : vector<4x288xbf16>, vector<288x32xbf16>, vector<4x32xf32> -> vector<4x32xf32>
    %c0_257 = arith.constant 0 : index
    %c0_258 = arith.constant 0 : index
    %288 = vector.load %arg12[%c0_257, %c0_258] : memref<1x32xf32, #tpu.memory_space<vmem>>, vector<1x32xf32>
    %289 = vector.broadcast %288 : vector<1x32xf32> to vector<4x32xf32>
    %290 = arith.mulf %287, %289 : vector<4x32xf32>
    %c0_259 = arith.constant 0 : index
    %c0_260 = arith.constant 0 : index
    %291 = vector.load %arg13[%c0_259, %c0_260] : memref<1x32xf32, #tpu.memory_space<vmem>>, vector<1x32xf32>
    %292 = vector.broadcast %291 : vector<1x32xf32> to vector<4x32xf32>
    %293 = arith.addf %290, %292 : vector<4x32xf32>
    %cst_261 = arith.constant 0.000000e+00 : f32
    %294 = vector.broadcast %cst_261 : f32 to vector<4x32xf32>
    %295 = arith.maximumf %293, %294 : vector<4x32xf32>
    %c0_262 = arith.constant 0 : index
    %c0_263 = arith.constant 0 : index
    %296 = vector.load %arg19[%c0_262, %c0_263] : memref<273x32xf32, #tpu.memory_space<vmem>>, vector<4x32xf32>
    tpu.vector_store %arg19[%c0_262, %c0_263], %295 {strides = array<i32>} : memref<273x32xf32, #tpu.memory_space<vmem>>, vector<4x32xf32>,
    %cst_264 = arith.constant 0.000000e+00 : f32
    %297 = vector.broadcast %cst_264 : f32 to vector<3x32xf32>
    %c4_265 = arith.constant 4 : index
    %c0_266 = arith.constant 0 : index
    %298 = vector.load %arg19[%c4_265, %c0_266] : memref<273x32xf32, #tpu.memory_space<vmem>>, vector<3x32xf32>
    tpu.vector_store %arg19[%c4_265, %c0_266], %297 {strides = array<i32>} : memref<273x32xf32, #tpu.memory_space<vmem>>, vector<3x32xf32>,
    %c0_267 = arith.constant 0 : index
    %c0_268 = arith.constant 0 : index
    %299 = vector.load %arg19[%c0_267, %c0_268] : memref<273x32xf32, #tpu.memory_space<vmem>>, vector<4x32xf32>
    %c1_269 = arith.constant 1 : index
    %c0_270 = arith.constant 0 : index
    %300 = vector.load %arg19[%c1_269, %c0_270] : memref<273x32xf32, #tpu.memory_space<vmem>>, vector<4x32xf32>
    %301 = arith.maximumf %299, %300 : vector<4x32xf32>
    %c2_271 = arith.constant 2 : index
    %c0_272 = arith.constant 0 : index
    %302 = vector.load %arg19[%c2_271, %c0_272] : memref<273x32xf32, #tpu.memory_space<vmem>>, vector<4x32xf32>
    %303 = arith.maximumf %301, %302 : vector<4x32xf32>
    %c3_273 = arith.constant 3 : index
    %c0_274 = arith.constant 0 : index
    %304 = vector.load %arg19[%c3_273, %c0_274] : memref<273x32xf32, #tpu.memory_space<vmem>>, vector<4x32xf32>
    %305 = arith.maximumf %303, %304 : vector<4x32xf32>
    %306 = tpu.iota {dimensions = array<i32: 0>} : vector<1x4xi32>
    %307 = tpu.iota {dimensions = array<i32: 1>} : vector<1x4xi32>
    %c0_i32_275 = arith.constant 0 : i32
    %308 = vector.broadcast %c0_i32_275 : i32 to vector<1x4xi32>
    %309 = arith.shrsi %306, %308 : vector<1x4xi32>
    %c4_i32 = arith.constant 4 : i32
    %310 = vector.broadcast %c4_i32 : i32 to vector<1x4xi32>
    %311 = arith.muli %310, %309 : vector<1x4xi32>
    %c0_i32_276 = arith.constant 0 : i32
    %312 = vector.broadcast %c0_i32_276 : i32 to vector<1x4xi32>
    %313 = arith.andi %306, %312 : vector<1x4xi32>
    %c2_i32_277 = arith.constant 2 : i32
    %314 = vector.broadcast %c2_i32_277 : i32 to vector<1x4xi32>
    %315 = arith.muli %314, %313 : vector<1x4xi32>
    %316 = arith.addi %311, %315 : vector<1x4xi32>
    %317 = arith.cmpi eq, %307, %316 : vector<1x4xi32>
    %cst_278 = arith.constant 1.000000e+00 : f32
    %cst_279 = arith.constant 0.000000e+00 : f32
    %318 = vector.broadcast %cst_278 : f32 to vector<1x4xf32>
    %319 = vector.broadcast %cst_279 : f32 to vector<1x4xf32>
    %320 = arith.select %317, %318, %319 : vector<1x4xi1>, vector<1x4xf32>
    %cst_280 = arith.constant dense<0.000000e+00> : vector<1x32xf32>
    %321 = tpu.matmul %320, %305, %cst_280 {dimension_numbers = #tpu.dot_dimension_numbers<[1], [0], [0], [1], [0, 0, 1, 1], [], []>} : vector<1x4xf32>, vector<4x32xf32>, vector<1x32xf32> -> vector<1x32xf32>
    %322 = arith.truncf %321 : vector<1x32xf32> to vector<1x32xbf16>
    %c0_281 = arith.constant 0 : index
    %c0_282 = arith.constant 0 : index
    %323 = vector.load %arg14[%c0_281, %c0_282] : memref<32x10xbf16, #tpu.memory_space<vmem>>, vector<32x10xbf16>
    %cst_283 = arith.constant dense<0.000000e+00> : vector<1x10xf32>
    %324 = tpu.matmul %322, %323, %cst_283 {dimension_numbers = #tpu.dot_dimension_numbers<[1], [0], [0], [1], [0, 0, 1, 1], [], []>} : vector<1x32xbf16>, vector<32x10xbf16>, vector<1x10xf32> -> vector<1x10xf32>
    %c0_284 = arith.constant 0 : index
    %c0_285 = arith.constant 0 : index
    %325 = vector.load %arg15[%c0_284, %c0_285] : memref<1x10xf32, #tpu.memory_space<vmem>>, vector<1x10xf32>
    %326 = arith.addf %324, %325 : vector<1x10xf32>
    %c0_286 = arith.constant 0 : index
    %c0_287 = arith.constant 0 : index
    %c0_288 = arith.constant 0 : index
    %327 = vector.load %arg16[%c0_286, %c0_287, %c0_288] : memref<1x1x10xf32, #tpu.memory_space<vmem>>, vector<1x1x10xf32>
    %328 = vector.shape_cast %327 : vector<1x1x10xf32> to vector<1x10xf32>
    %329 = vector.shape_cast %326 : vector<1x10xf32> to vector<1x1x10xf32>
    tpu.vector_store %arg16[%c0_286, %c0_287, %c0_288], %329 {strides = array<i32>} : memref<1x1x10xf32, #tpu.memory_space<vmem>>, vector<1x1x10xf32>,
    return
  }
  func.func @transform_0(%arg0: i32) -> (i32, i32, i32) {
    %c0_i32 = arith.constant 0 : i32
    %c0_i32_0 = arith.constant 0 : i32
    %c0_i32_1 = arith.constant 0 : i32
    return %arg0, %c0_i32, %c0_i32_0 : i32, i32, i32
  }
  func.func @transform_1(%arg0: i32) -> (i32, i32) {
    %c0_i32 = arith.constant 0 : i32
    %c0_i32_0 = arith.constant 0 : i32
    %c0_i32_1 = arith.constant 0 : i32
    return %c0_i32, %c0_i32_0 : i32, i32
  }
  func.func @transform_2(%arg0: i32) -> (i32, i32) {
    %c0_i32 = arith.constant 0 : i32
    %c0_i32_0 = arith.constant 0 : i32
    %c0_i32_1 = arith.constant 0 : i32
    return %c0_i32, %c0_i32_0 : i32, i32
  }
  func.func @transform_3(%arg0: i32) -> (i32, i32) {
    %c0_i32 = arith.constant 0 : i32
    %c0_i32_0 = arith.constant 0 : i32
    %c0_i32_1 = arith.constant 0 : i32
    return %c0_i32, %c0_i32_0 : i32, i32
  }
  func.func @transform_4(%arg0: i32) -> (i32, i32) {
    %c0_i32 = arith.constant 0 : i32
    %c0_i32_0 = arith.constant 0 : i32
    %c0_i32_1 = arith.constant 0 : i32
    return %c0_i32, %c0_i32_0 : i32, i32
  }
  func.func @transform_5(%arg0: i32) -> (i32, i32) {
    %c0_i32 = arith.constant 0 : i32
    %c0_i32_0 = arith.constant 0 : i32
    %c0_i32_1 = arith.constant 0 : i32
    return %c0_i32, %c0_i32_0 : i32, i32
  }
  func.func @transform_6(%arg0: i32) -> (i32, i32) {
    %c0_i32 = arith.constant 0 : i32
    %c0_i32_0 = arith.constant 0 : i32
    %c0_i32_1 = arith.constant 0 : i32
    return %c0_i32, %c0_i32_0 : i32, i32
  }
  func.func @transform_7(%arg0: i32) -> (i32, i32) {
    %c0_i32 = arith.constant 0 : i32
    %c0_i32_0 = arith.constant 0 : i32
    %c0_i32_1 = arith.constant 0 : i32
    return %c0_i32, %c0_i32_0 : i32, i32
  }
  func.func @transform_8(%arg0: i32) -> (i32, i32) {
    %c0_i32 = arith.constant 0 : i32
    %c0_i32_0 = arith.constant 0 : i32
    %c0_i32_1 = arith.constant 0 : i32
    return %c0_i32, %c0_i32_0 : i32, i32
  }
  func.func @transform_9(%arg0: i32) -> (i32, i32) {
    %c0_i32 = arith.constant 0 : i32
    %c0_i32_0 = arith.constant 0 : i32
    %c0_i32_1 = arith.constant 0 : i32
    return %c0_i32, %c0_i32_0 : i32, i32
  }
  func.func @transform_10(%arg0: i32) -> (i32, i32) {
    %c0_i32 = arith.constant 0 : i32
    %c0_i32_0 = arith.constant 0 : i32
    %c0_i32_1 = arith.constant 0 : i32
    return %c0_i32, %c0_i32_0 : i32, i32
  }
  func.func @transform_11(%arg0: i32) -> (i32, i32) {
    %c0_i32 = arith.constant 0 : i32
    %c0_i32_0 = arith.constant 0 : i32
    %c0_i32_1 = arith.constant 0 : i32
    return %c0_i32, %c0_i32_0 : i32, i32
  }
  func.func @transform_12(%arg0: i32) -> (i32, i32) {
    %c0_i32 = arith.constant 0 : i32
    %c0_i32_0 = arith.constant 0 : i32
    %c0_i32_1 = arith.constant 0 : i32
    return %c0_i32, %c0_i32_0 : i32, i32
  }
  func.func @transform_13(%arg0: i32) -> (i32, i32) {
    %c0_i32 = arith.constant 0 : i32
    %c0_i32_0 = arith.constant 0 : i32
    %c0_i32_1 = arith.constant 0 : i32
    return %c0_i32, %c0_i32_0 : i32, i32
  }
  func.func @transform_14(%arg0: i32) -> (i32, i32) {
    %c0_i32 = arith.constant 0 : i32
    %c0_i32_0 = arith.constant 0 : i32
    %c0_i32_1 = arith.constant 0 : i32
    return %c0_i32, %c0_i32_0 : i32, i32
  }
  func.func @transform_15(%arg0: i32) -> (i32, i32, i32) {
    %c0_i32 = arith.constant 0 : i32
    %c0_i32_0 = arith.constant 0 : i32
    %c0_i32_1 = arith.constant 0 : i32
    return %arg0, %c0_i32, %c0_i32_0 : i32, i32, i32
  }
}

</mosaic_0001>

<bundles_post_ra>
// kernel: vgg_forward.1
= control target key start
LH: loop header
LB: loop body
LE: loop exit
PB: predicated region body
PF: predicated region fallthrough
CT: control target
= control target key end

     0   :  { %s7233_s0 = inlined_call_operand.vmem [shape: f32[2,256,3], index: 0, kind: input, shape index: {}]   ;;  %s7234_s1 = inlined_call_operand.vmem [shape: bf16[27,8], index: 1, kind: input, shape index: {}]   ;;  %s7235_s2 = inlined_call_operand.vmem [shape: f32[1,8], index: 2, kind: input, shape index: {}]   ;;  %s7236_s3 = inlined_call_operand.vmem [shape: f32[1,8], index: 3, kind: input, shape index: {}]   ;;  %s7237_s4 = inlined_call_operand.vmem [shape: bf16[72,16], index: 4, kind: input, shape index: {}]   ;;  %s7238_s5 = inlined_call_operand.vmem [shape: f32[1,16], index: 5, kind: input, shape index: {}]   ;;  %s7239_s6 = inlined_call_operand.vmem [shape: f32[1,16], index: 6, kind: input, shape index: {}]   ;;  %s7240_s7 = inlined_call_operand.vmem [shape: bf16[144,32], index: 7, kind: input, shape index: {}]   ;;  %s7241_s8 = inlined_call_operand.vmem [shape: f32[1,32], index: 8, kind: input, shape index: {}]   ;;  %s7242_s9 = inlined_call_operand.vmem [shape: f32[1,32], index: 9, kind: input, shape index: {}]   ;;  %s7243_s10 = inlined_call_operand.vmem [shape: bf16[288,32], index: 10, kind: input, shape index: {}]   ;;  %s7244_s11 = inlined_call_operand.vmem [shape: f32[1,32], index: 11, kind: input, shape index: {}]   ;;  %s7245_s12 = inlined_call_operand.vmem [shape: f32[1,32], index: 12, kind: input, shape index: {}]   ;;  %s7246_s13 = inlined_call_operand.vmem [shape: bf16[32,10], index: 13, kind: input, shape index: {}]   ;;  %s7247_s14 = inlined_call_operand.vmem [shape: f32[1,10], index: 14, kind: input, shape index: {}]   ;;  %s7248_s15 = inlined_call_operand.hbm [shape: f32[2,1,10], index: 15, kind: output, shape index: {}]  }
   0x1   :  { %7271 = sst [smem:[#allocation14_spill]] %s7233_s0 }
   0x2   :  { %20 = vsyncpa [#allocation6], 0 }
   0x3   :  { %22 = vsyncpa [#allocation6 + $0x1], 0  ;;  %s5123_s18 = smov 0   ;;  %s5125_s19 = smov 0  }
   0x4   :  { %s5127_s20 = smov 0   ;;  %s5129_s21 = smov 0  }
   0x5 LB: > { %7272 = sst [smem:[#allocation8_spill]] %s5008_s18  ;;  %s5144_s22 = sadd.s32 4294967295, %s5020_s21   ;;  %s5020_s21 = sphi %s5129_s21, %s7292_s21   ;;  %s5016_s20 = sphi %s5127_s20, %s7294_s20   ;;  %s5012_s19 = sphi %s5125_s19, %s7296_s19   ;;  %s5008_s18 = sphi %s5123_s18, %s7295_s18  }
   0x6   : > { %7273 = sst [smem:[#allocation9_spill]] %s5016_s20  ;;  %s4654_s23 = sadd.s32 4294967294, %s5020_s21  }
   0x7   : > { %7274 = sst [smem:[#allocation10_spill]] %s5020_s21  ;;  %s5148_s24 = sadd.s32 1, %s5020_s21  }
   0x8   : > { %7275 = sst [smem:[#allocation11_spill]] %s5148_s24  ;;  %s355_s25 = sadd.s32 1, %s5016_s20 }
   0x9   : > { %s352_s26 = ssub.s32 %s5020_s21, %s5148_s24  ;;  %p365_p0 = scmp.ne.s32.totalorder %s5016_s20, %s5012_s19 }
   0xa   : > { %p353_p1 = scmp.eq.s32.totalorder %s352_s26, 0  ;;  %p366_p2 = scmp.eq.s32.totalorder %s5144_s22, 1 }
   0xb   : > { %p371_p3 = scmp.ne.s32.totalorder %s5012_s19, %s5008_s18  ;;  %p372_p4 = scmp.eq.s32.totalorder %s4654_s23, 1 }
   0xc   : > { %s5159_s27 = scalar_select %p353_p1, %s5016_s20, %s355_s25  }
   0xd   : > { %p5161_p5 = por %p366_p2, %p365_p0  ;;  %p5165_p6 = por %p372_p4, %p371_p3 }
   0xe   : > { %7276 = sst [smem:[#allocation12_spill]] %s5159_s27  ;;  %p4657_p7 = scmp.ge.s32.totalorder %s5020_s21, 1 }
   0xf   : > { %s7278_s29 = scalar_select %p5165_p6, 1, 0 }
  0x10   : > { %p440_p8 = scmp.lt.s32.totalorder %s5020_s21, 3 }
  0x11   : > { %7279 = sst [smem:[#allocation13_spill]] %s7278_s29 }
  0x12   : > { %p441_p9 = pnand %p4657_p7, %p440_p8 }
  0x13   : > { %p487_p10 = scmp.lt.s32.totalorder (!%p441_p9), %s5144_s22, 1  ;;  %s7280_s0 = sld [smem:[#allocation14_spill]] (!%p441_p9) }
  0x14   : > { %444 = sbr.rel (%p441_p9) target bundleno = 2783 (0xadf), region = 80  ;;  %s7251_s26 = smov (!%p441_p9), 6  }
  0x15   : > { %s7249_s17 = smov (!%p441_p9), 12   ;;  %s7263_s23 = smov (!%p441_p9), 15  }
  0x16   : > { %s7287_s27 = smov (!%p441_p9), 9   ;;  %s7288_s20 = smov (!%p441_p9), 15  }
  0x17   : > { %s5040_s24 = smov (!%p441_p9), 80   ;;  %s4595_s18 = scalar_lea.hbm (!%p441_p9), %s7248_s15, %s5144_s22 }
  0x19   : > { %vm525_vm0 = vcmask 23552   ;;  %v565_v0 = vlaneseq  ;;  %v5022_v1 = vmov 0.0   ;;  %vm528_vm1 = vcmask 16384   ;;  %s488_s30 = scalar_select %p487_p10, %s5144_s22, 1 }
  0x1a   : > { %526 = vst.msk [vmem:[#allocation2] sm:$0xff] %vm525_vm0, %v5022_v1  ;;  %vm2870_vm6 = vcmask 64512   ;;  %vm2905_vm9 = vcmask 57344   ;;  %vm1014_vm10 = vcmask 48152   ;;  %vm1239_vm11 = vcmask 72752  }
  0x1b   : > { %527 = vst.msk [vmem:[#allocation2 + $0x8] sm:$0xff] %vm525_vm0, %v5022_v1  ;;  %v5182_v2 = vshrl.u32 %v565_v0, 7  ;;  %s4846_s16 = sshll.u32 %s488_s30, 8  ;;  %s7261_s30 = smov 3   ;;  %vm1464_vm12 = vcmask 97352   ;;  %vm2670_vm13 = vcmask 1044480  }
  0x1c   : > { %562 = vst.msk [vmem:[#allocation2 + $0x111] sm:$0xff] %vm525_vm0, %v5022_v1  ;;  %s5189_s25 = scalar_lea.vmem %s7280_s0, %s4846_s16  ;;  %s7259_s16 = smov 9   ;;  %vm2671_vm14 = vcmask 1045504  }
  0x1d   : > { %563 = vst.msk [vmem:[#allocation2 + $0x119] sm:$0xff] %vm525_vm0, %v5022_v1  ;;  %v494_v3 = vld [vmem:[%s5189_s25 + $0x8] sm:$0xff]  ;;  %v493_v4 = vld [vmem:[%s5189_s25] sm:$0xff]  ;;  %v495_v5 = vld [vmem:[%s5189_s25 + $0x10] sm:$0xff]  ;;  %v5196_v6 = vadd.s32 8, %v5182_v2  ;;  %v598_v18 = vand.u32 15, %v5182_v2 }
  0x1e   : > { %529 = vst.msk [vmem:[#allocation2 + $0x10] sm:$0x1] %vm528_vm1, %v5022_v1  ;;  %v496_v7 = vld [vmem:[%s5189_s25 + $0x18] sm:$0xff]  ;;  %v497_v8 = vld [vmem:[%s5189_s25 + $0x20] sm:$0xff]  ;;  %v5236_v31 = vadd.s32 24, %v5182_v2  ;;  %v498_v32 = vld [vmem:[%s5189_s25 + $0x28] sm:$0xff] }
  0x1f   : > { %564 = vst.msk [vmem:[#allocation2 + $0x121] sm:$0x1] %vm528_vm1, %v5022_v1  ;;  %v599_v11 = vand.u32 15, %v5196_v6  ;;  %vm630_vm3 = vcmp.gt.s32.totalorder %v598_v18, 0  ;;  %v5250_v37 = vadd.s32 16, %v5182_v2  ;;  %v499_v38 = vld [vmem:[%s5189_s25 + $0x30] sm:$0xff] }
  0x20   : > { %531 = vst.msk [vmem:[#allocation2 + $0x19] sm:$0xff] %vm525_vm0, %v494_v3  ;;  %v5220_v24 = vsel %vm630_vm3, 1.0, %v5022_v1  ;;  %v601_v34 = vand.u32 15, %v5236_v31  ;;  %v500_v49 = vld [vmem:[%s5189_s25 + $0x38] sm:$0xff]  ;;  %v5301_v54 = vadd.s32 40, %v5182_v2  ;;  %v5304_v55 = vadd.s32 32, %v5182_v2 }
  0x21   : > { %530 = vst.msk [vmem:[#allocation2 + $0x11] sm:$0xff] %vm525_vm0, %v493_v4  ;;  %vm695_vm2 = vcmp.lt.s32.totalorder %v599_v11, 15  ;;  %v600_v41 = vand.u32 15, %v5250_v37  ;;  %v758_v57 = vld [vmem:[#allocation2] sm:$0xff]  ;;  %s7286_s0 = smov 3   ;;  %v5377_v18 = vadd.s32 56, %v5182_v2 }
  0x22   : > { %v1047_v9 = vld [vmem:[#allocation2 + $0x2] sm:$0xff]  ;;  %532 = vst.msk [vmem:[#allocation2 + $0x21] sm:$0xff] %vm525_vm0, %v495_v5  ;;  %v727_v15 = vsel %vm695_vm2, 1.0, %v5022_v1  ;;  %vm697_vm4 = vcmp.lt.s32.totalorder %v601_v34, 15  ;;  %v790_v58 = vmul.f32 %v758_v57, %v5220_v24  ;;  %v603_v59 = vand.u32 15, %v5301_v54 }
  0x23   : > { %v854_v10 = vld [vmem:[#allocation2 + $0x1] sm:$0xff]  ;;  %1143 = vrot.lane.b32.xlu1 %v1047_v9, %s7251_s26  ;;  %533 = vst.msk [vmem:[#allocation2 + $0x29] sm:$0xff] %vm525_vm0, %v496_v7  ;;  %v729_v40 = vsel %vm697_vm4, 1.0, %v5022_v1  ;;  %vm632_vm5 = vcmp.gt.s32.totalorder %v600_v41, 0  ;;  %v602_v60 = vand.u32 15, %v5304_v55  ;;  %vm1657_vm2 = vcmask 121952  }
  0x24   : > { %918 = vrot.lane.b32.xlu0 %v854_v10, %s7261_s30  ;;  %534 = vst.msk [vmem:[#allocation2 + $0x31] sm:$0xff] %vm525_vm0, %v497_v8  ;;  %v5267_v43 = vsel %vm632_vm5, 1.0, %v5022_v1  ;;  %vm699_vm7 = vcmp.lt.s32.totalorder %v603_v59, 15  ;;  %v759_v62 = vld [vmem:[#allocation2 + $0x8] sm:$0xff]  ;;  %v501_v7 = vld [vmem:[%s5189_s25 + $0x40] sm:$0xff]  ;;  %v503_v41 = vld [vmem:[%s5189_s25 + $0x50] sm:$0xff] }
  0x25   : > { %v855_v12 = vld [vmem:[#allocation2 + $0x9] sm:$0xff]  ;;  %535 = vst.msk [vmem:[#allocation2 + $0x39] sm:$0xff] %vm525_vm0, %v498_v32  ;;  %vm634_vm8 = vcmp.gt.s32.totalorder %v602_v60, 0  ;;  %v731_v61 = vsel %vm699_vm7, 1.0, %v5022_v1  ;;  %vm1882_vm3 = vcmask 146552   ;;  %vm2107_vm4 = vcmask 171152  }
  0x26   : > { %536 = vst.msk [vmem:[#allocation2 + $0x41] sm:$0xff] %vm525_vm0, %v499_v38  ;;  %v5332_v63 = vsel %vm634_vm8, 1.0, %v5022_v1  ;;  %v502_v32 = vld [vmem:[%s5189_s25 + $0x48] sm:$0xff]  ;;  %vm2300_vm5 = vcmask 195752   ;;  %vm2525_vm7 = vcmask 220352   ;;  %vm2621_vm8 = vcmask 220160  }
  0x27   : > { %v1498_v13 = vld [vmem:[#allocation2 + $0x19] sm:$0xff]  ;;  %537 = vst.msk [vmem:[#allocation2 + $0x49] sm:$0xff] %vm525_vm0, %v500_v49  ;;  %v4848_v34 = vld [vmem:[%s7234_s1 + $0x8] sm:$0x30] }
  0x28   : > { %v1273_v14 = vld [vmem:[#allocation2 + $0x18] sm:$0xff]  ;;  %v1048_v16 = vld [vmem:[#allocation2 + $0xa] sm:$0xff]  ;;  %822 = vst.msk [vmem:[#allocation3] sm:$0xff] %vm525_vm0, %v790_v58 }
  0x29   : > { %1370 = vrot.lane.b32.xlu2 %v1273_v14, %s7259_s16  ;;  %825 = vst.msk [vmem:[#allocation3 + $0x48] sm:$0xff] %vm525_vm0, %v1273_v14  ;;  %v1080_v19 = vmul.f32 %v1048_v16, %v727_v15  ;;  %v1690_v20 = vld [vmem:[#allocation2 + $0x12] sm:$0xff]  ;;  %v1691_v23 = vld [vmem:[#allocation2 + $0x1a] sm:$0xff] }
  0x2a   : > { %v1916_v17 = vld [vmem:[#allocation2 + $0x28] sm:$0xff]  ;;  %v1497_v21 = vld [vmem:[#allocation2 + $0x11] sm:$0xff]  ;;  %v5222_v25 = vld [vmem:[#allocation2 + $0x20] sm:$0xff]  ;;  %v1723_v27 = vmul.f32 %v1691_v23, %v727_v15  ;;  %v1082_v42 = vmul.f32 %v1691_v23, %v729_v40  ;;  %3228 = vst.msk [vmem:[#allocation2] sm:$0xff] %vm2870_vm6, %v5022_v1 }
  0x2b   : > { %1563 = vrot.lane.b32.xlu1 %v1498_v13, %s7249_s17  ;;  %827 = vst.msk [vmem:[#allocation3 + $0x78] sm:$0xff] %vm525_vm0, %v1916_v17  ;;  %v5217_v22 = vld [vmem:[#allocation2 + $0x10] sm:$0xff]  ;;  %v1947_v28 = vmul.f32 %v5222_v25, %v5220_v24  ;;  %v5231_v29 = vld [vmem:[#allocation2 + $0x21] sm:$0xff]  ;;  %v1306_v44 = vmul.f32 %v5222_v25, %v5267_v43 }
  0x2c   : > { %920 = vrot.lane.b32.xlu0 %v855_v12, %s7261_s30  ;;  %v1304_v26 = vmul.f32 %v5217_v22, %v5220_v24  ;;  %v5233_v30 = vld [vmem:[#allocation2 + $0x29] sm:$0xff]  ;;  %v5255_v39 = vld [vmem:[#allocation2 + $0x38] sm:$0xff]  ;;  %2903 = vst.msk [vmem:[#allocation4 + $0x100] sm:$0xff] %vm2870_vm6, %v5022_v1 }
  0x2d   : > { %v5245_v33 = vld [vmem:[#allocation2 + $0x2a] sm:$0xff]  ;;  %v2333_v36 = vld [vmem:[#allocation2 + $0x22] sm:$0xff]  ;;  %829 = vst.msk [vmem:[#allocation3 + $0xa8] sm:$0xff] %vm525_vm0, %v5255_v39  ;;  %v5293_v50 = vld [vmem:[#allocation2 + $0x3a] sm:$0xff] }
  0x2e   : > { %v2366_v35 = vmul.f32 %v5245_v33, %v727_v15  ;;  %v1725_v45 = vmul.f32 %v5245_v33, %v729_v40  ;;  %v5280_v46 = vld [vmem:[#allocation2 + $0x30] sm:$0xff]  ;;  %v2368_v51 = vmul.f32 %v5293_v50, %v729_v40  ;;  %v5296_v52 = vld [vmem:[#allocation2 + $0x39] sm:$0xff]  ;;  %v5308_v56 = vld [vmem:[#allocation2 + $0x48] sm:$0xff]  ;;  %2904 = vst.msk [vmem:[#allocation4 + $0x108] sm:$0xff] %vm2870_vm6, %v5022_v1  ;;  %v1084_v3 = vmul.f32 %v5245_v33, %v731_v61 }
  0x2f   : > { %v1949_v47 = vmul.f32 %v5280_v46, %v5267_v43  ;;  %v5284_v48 = vld [vmem:[#allocation2 + $0x31] sm:$0xff]  ;;  %831 = vst.msk [vmem:[#allocation3 + $0xd8] sm:$0xff] %vm525_vm0, %v5308_v56  ;;  %v1308_v4 = vmul.f32 %v5280_v46, %v5332_v63  ;;  %v5355_v8 = vld [vmem:[#allocation2 + $0x40] sm:$0xff]  ;;  %v1727_v10 = vmul.f32 %v5293_v50, %v731_v61  ;;  %v5371_v16 = vld [vmem:[#allocation2 + $0x49] sm:$0xff] }
  0x30   : > { %v5298_v53 = vld [vmem:[#allocation2 + $0x32] sm:$0xff]  ;;  %823 = vst.msk [vmem:[#allocation3 + $0x18] sm:$0xff] %vm525_vm0, %v759_v62  ;;  %v1951_v11 = vmul.f32 %v5355_v8, %v5332_v63  ;;  %v5369_v15 = vld [vmem:[#allocation2 + $0x41] sm:$0xff] }
  0x31   : > { %1786 = vrot.lane.b32.xlu2 %v1690_v20, %s7263_s23  ;;  %2906 = vst.msk [vmem:[#allocation4 + $0x110] sm:$0x1] %vm2905_vm9, %v5022_v1  ;;  %v4666_v33 = vld [vmem:[%s7234_s1 + $0x8] sm:$0xf] }
  0x32   : > { %3229 = vst.msk [vmem:[#allocation2 + $0x8] sm:$0x1] %vm2905_vm9, %v5022_v1 }
  0x33   : > { %1145 = vrot.lane.b32.xlu1 %v1080_v19, %s7251_s26  ;;  %s7255_s26 = smov 21   ;;  %538 = vst.msk [vmem:[#allocation2 + $0x51] sm:$0xff] %vm525_vm0, %v501_v7  ;;  %v5380_v19 = vadd.s32 48, %v5182_v2  ;;  %v575_v7 = vadd.s32 72, %v5182_v2 }
  0x34   : > { %1561 = vrot.lane.b32.xlu0 %v1497_v21, %s7249_s17  ;;  %s7253_s17 = smov 18   ;;  %539 = vst.msk [vmem:[#allocation2 + $0x59] sm:$0xff] %vm525_vm0, %v502_v32 }
  0x35   : > { %540 = vst.msk [vmem:[#allocation2 + $0x61] sm:$0xff] %vm525_vm0, %v503_v41 }
  0x39   : > { %1368 = vrot.lane.b32.xlu2 %v1304_v26, %s7259_s16 }
  0x3b   : > { %2011 = vrot.lane.b32.xlu1 %v1947_v28, %s7253_s17  ;;  %v604_v28 = vand.u32 15, %v5380_v19  ;;  %v5448_v58 = vld [vmem:[#allocation2 + $0x58] sm:$0xff] }
  0x3c   : > { %1788 = vrot.lane.b32.xlu0 %v1723_v27, %s7263_s23  ;;  %v605_v27 = vand.u32 15, %v5377_v18  ;;  %833 = vst.msk [vmem:[#allocation3 + $0x108] sm:$0xff] %vm525_vm0, %v5448_v58 }
  0x3d   : > { %vm636_vm1 = vcmp.gt.s32.totalorder %v604_v28, 0  ;;  %v574_v28 = vadd.s32 64, %v5182_v2 }
  0x3e   : > { %vm701_vm15 = vcmp.lt.s32.totalorder %v605_v27, 15  ;;  %v504_v27 = vld [vmem:[%s5189_s25 + $0x58] sm:$0xff] }
  0x3f   : > { %541 = vst.msk [vmem:[#allocation2 + $0x69] sm:$0xff] %vm525_vm0, %v504_v27 }
  0x41   : > { %2013 = vrot.lane.b32.xlu2 %v1916_v17, %s7253_s17  ;;  %s7257_s17 = smov 24  }
  0x43   : > { %2206 = vrot.lane.b32.xlu1 %v5233_v30, %s7255_s26 }
  0x44   : > { %2204 = vrot.lane.b32.xlu0 %v5231_v29, %s7255_s26  ;;  %s7281_s26 = smov 6  }
  0x49   : > { %2429 = vrot.lane.b32.xlu2 %v2333_v36, %s7257_s17 }
  0x4b   : > { %922 = vrot.lane.b32.xlu1 %v1497_v21, %s7261_s30  ;;  %v5390_v21 = vld [vmem:[#allocation2 + $0x50] sm:$0xff] }
  0x4c   : > { %2431 = vrot.lane.b32.xlu0 %v2366_v35, %s7257_s17  ;;  %s7282_s17 = smov 12   ;;  %v4667_v35 = vor.u32 %v4848_v34, %v4666_v33  ;;  %v606_v33 = vand.u32 15, %v574_v28  ;;  %v515_v28 = vld [vmem:[%s5189_s25 + $0xb0] sm:$0xff] }
  0x4d   : > { %552 = vst.msk [vmem:[#allocation2 + $0xc1] sm:$0xff] %vm525_vm0, %v515_v28 }
  0x51   : > { %924 = vrot.lane.b32.xlu2 %v1498_v13, %s7261_s30  ;;  %s7284_s30 = smov 21  }
  0x53   : > { %1149 = vrot.lane.b32.xlu1 %v1082_v42, %s7281_s26  ;;  %v5420_v42 = vsel %vm701_vm15, 1.0, %v5022_v1 }
  0x54   : > { %1147 = vrot.lane.b32.xlu0 %v1690_v20, %s7281_s26  ;;  %v5388_v20 = vld [vmem:[#allocation2 + $0x4a] sm:$0xff]  ;;  %v1086_v49 = vmul.f32 %v5293_v50, %v5420_v42 }
  0x59   : > { %1372 = vrot.lane.b32.xlu2 %v1306_v44, %s7259_s16 }
  0x5b   : > { %1565 = vrot.lane.b32.xlu1 %v5231_v29, %s7282_s17 }
  0x5c   : > { %1374 = vrot.lane.b32.xlu0 %v1916_v17, %s7259_s16  ;;  %s7283_s16 = smov 18   ;;  %v5373_v17 = vld [vmem:[#allocation2 + $0x42] sm:$0xff] }
  0x5d   : > { %3238 = vst.msk [vmem:[#allocation2 + $0x49] sm:$0xff] %vm2870_vm6, %v5022_v1 }
  0x61   : > { %1567 = vrot.lane.b32.xlu2 %v5233_v30, %s7282_s17 }
  0x63   : > { %1792 = vrot.lane.b32.xlu1 %v1725_v45, %s7263_s23 }
  0x64   : > { %1790 = vrot.lane.b32.xlu0 %v2333_v36, %s7263_s23  ;;  %s7285_s23 = smov 24  }
  0x69   : > { %2015 = vrot.lane.b32.xlu2 %v1949_v47, %s7283_s16 }
  0x6b   : > { %2208 = vrot.lane.b32.xlu1 %v5284_v48, %s7284_s30 }
  0x6c   : > { %2017 = vrot.lane.b32.xlu0 %v5255_v39, %s7283_s16 }
  0x71   : > { %2210 = vrot.lane.b32.xlu2 %v5296_v52, %s7284_s30 }
  0x73   : > { %2435 = vrot.lane.b32.xlu1 %v2368_v51, %s7285_s23 }
  0x74   : > { %2433 = vrot.lane.b32.xlu0 %v5298_v53, %s7285_s23 }
  0x79   : > { %926 = vrot.lane.b32.xlu2 %v5231_v29, %s7286_s0  ;;  %v2370_v29 = vmul.f32 %v5388_v20, %v731_v61  ;;  %v1729_v61 = vmul.f32 %v5388_v20, %v5420_v42 }
  0x7b   : > { %1151 = vrot.lane.b32.xlu1 %v2333_v36, %s7281_s26  ;;  %v5031_v36 = vmov 65535  }
  0x7c   : > { %928 = vrot.lane.b32.xlu0 %v5233_v30, %s7286_s0  ;;  %v792_v30 = vmul.f32 %v5217_v22, %v5267_v43  ;;  %v2672_v38 = vsel %vm2670_vm13, 4294967295, %v5031_v36  ;;  %v5408_v22 = vld [vmem:[#allocation2 + $0x51] sm:$0xff]  ;;  %v5423_v43 = vsel %vm636_vm1, 1.0, %v5022_v1  ;;  %vm638_vm13 = vcmp.gt.s32.totalorder %v606_v33, 0 }
  0x7d   : > { %3239 = vst.msk [vmem:[#allocation2 + $0x51] sm:$0x1] %vm2905_vm9, %v5022_v1  ;;  %v1310_v51 = vmul.f32 %v5355_v8, %v5423_v43  ;;  %v507_v33 = vld [vmem:[%s5189_s25 + $0x70] sm:$0xff] }
  0x7e   : > { %824 = vst.msk [vmem:[#allocation3 + $0x30] sm:$0xff] %vm525_vm0, %v792_v30 }
  0x7f   : > { %544 = vst.msk [vmem:[#allocation2 + $0x81] sm:$0xff] %vm525_vm0, %v507_v33 }
  0x81   : > { %1153 = vrot.lane.b32.xlu2 %v1084_v3, %s7281_s26 }
  0x83   : > { %1378 = vrot.lane.b32.xlu1 %v5255_v39, %s7287_s27  ;;  %v5346_v5 = vpop.permute.xlu2 %1370  ;;  %v2673_v39 = vsel %vm2671_vm14, %v2672_v38, 0  ;;  %v5508_v38 = vld [vmem:[#allocation2 + $0x68] sm:$0xff] }
  0x84   : > { %1376 = vrot.lane.b32.xlu0 %v1308_v4, %s7287_s27  ;;  %v2675_v40 = vand.u32 %v4667_v35, %v2673_v39  ;;  %835 = vst.msk [vmem:[#allocation3 + $0x138] sm:$0xff] %vm525_vm0, %v5508_v38 }
  0x86   : > { %2683 = vmatpush.bf16.msra.mxu0 %v2675_v40  ;;  %4883 = vmatpush.bf16.msra.mxu2 %v2675_v40 }
  0x87   : > { %4884 = vmatpush.bf16.msra.mxu3 %v2675_v40  ;;  %4882 = vmatpush.bf16.msra.mxu1 %v2675_v40 }
  0x89   : > { %1569 = vrot.lane.b32.xlu2 %v5284_v48, %s7282_s17 }
  0x8b   : > { %1794 = vrot.lane.b32.xlu1 %v5298_v53, %s7288_s20  ;;  %v5357_v9 = vpop.permute.xlu2 %1786 }
  0x8c   : > { %1571 = vrot.lane.b32.xlu0 %v5296_v52, %s7282_s17 }
  0x91   : > { %1796 = vrot.lane.b32.xlu2 %v1727_v10, %s7288_s20  ;;  %v794_v10 = vmul.f32 %v5222_v25, %v5332_v63  ;;  %v5490_v63 = vld [vmem:[#allocation2 + $0x52] sm:$0xff] }
  0x93   : > { %2021 = vrot.lane.b32.xlu1 %v5308_v56, %s7283_s16  ;;  %v1369_v12 = vpop.permute.xlu2 %1368  ;;  %826 = vst.msk [vmem:[#allocation3 + $0x60] sm:$0xff] %vm525_vm0, %v794_v10  ;;  %v796_v10 = vmul.f32 %v5280_v46, %v5423_v43 }
  0x94   : > { %2019 = vrot.lane.b32.xlu0 %v1951_v11, %s7283_s16  ;;  %v5482_v11 = vld [vmem:[#allocation2 + $0x5a] sm:$0xff] }
  0x95   : > { %v1144_v13 = vpop.permute.xlu1 %1143  ;;  %v2372_v25 = vmul.f32 %v5482_v11, %v5420_v42  ;;  %828 = vst.msk [vmem:[#allocation3 + $0x90] sm:$0xff] %vm525_vm0, %v796_v10 }
  0x96   : > { %v919_v14 = vpop.permute.xlu0 %918 }
  0x97   : > { %1015 = vst.msk [vmem:[#allocation3] sm:$0xff] %vm1014_vm10, %v919_v14 }
  0x98   : > { %1240 = vst.msk [vmem:[#allocation3] sm:$0xff] %vm1239_vm11, %v1144_v13 }
  0x99   : > { %1465 = vst.msk [vmem:[#allocation3] sm:$0xff] %vm1464_vm12, %v1369_v12  ;;  %2212 = vrot.lane.b32.xlu2 %v5369_v15, %s7284_s30 }
  0x9b   : > { %2437 = vrot.lane.b32.xlu1 %v5373_v17, %s7285_s23  ;;  %v2014_v23 = vpop.permute.xlu2 %2013 }
  0x9c   : > { %2214 = vrot.lane.b32.xlu0 %v5371_v16, %s7284_s30 }
  0x9d   : > { %v1564_v26 = vpop.permute.xlu1 %1563 }
  0x9e   : > { %v921_v24 = vpop.permute.xlu0 %920 }
  0x9f   : > { %1016 = vst.msk [vmem:[#allocation3 + $0x18] sm:$0xff] %vm1014_vm10, %v921_v24  ;;  %v607_v24 = vand.u32 15, %v575_v7  ;;  %v577_v7 = vadd.s32 88, %v5182_v2 }
  0xa1   : > { %2439 = vrot.lane.b32.xlu2 %v2370_v29, %s7285_s23  ;;  %vm703_vm9 = vcmp.lt.s32.totalorder %v607_v24, 15  ;;  %v505_v29 = vld [vmem:[%s5189_s25 + $0x60] sm:$0xff] }
  0xa2   : > { %v735_v30 = vsel %vm703_vm9, 1.0, %v5022_v1  ;;  %542 = vst.msk [vmem:[#allocation2 + $0x71] sm:$0xff] %vm525_vm0, %v505_v29 }
  0xa3   : > { %932 = vrot.lane.b32.xlu1 %v5296_v52, %s7286_s0  ;;  %v2430_v44 = vpop.permute.xlu2 %2429  ;;  %v1088_v36 = vmul.f32 %v5388_v20, %v735_v30 }
  0xa4   : > { %930 = vrot.lane.b32.xlu0 %v5284_v48, %s7286_s0  ;;  %v4847_v48 = vld [vmem:[%s7234_s1] sm:$0xff] }
  0xa5   : > { %v1146_v47 = vpop.permute.xlu1 %1145  ;;  %2684 = vmatpush.bf16.msra.mxu0 %v4847_v48  ;;  %4886 = vmatpush.bf16.msra.mxu2 %v4847_v48 }
  0xa6   : > { %v1562_v45 = vpop.permute.xlu0 %1561  ;;  %1241 = vst.msk [vmem:[#allocation3 + $0x18] sm:$0xff] %vm1239_vm11, %v1146_v47  ;;  %4887 = vmatpush.bf16.msra.mxu3 %v4847_v48  ;;  %4885 = vmatpush.bf16.msra.mxu1 %v4847_v48 }
  0xa7   : > { %1658 = vst.msk [vmem:[#allocation3] sm:$0xff] %vm1657_vm2, %v1562_v45  ;;  %v5540_v45 = vld [vmem:[#allocation2 + $0x60] sm:$0xff] }
  0xa8   : > { %1466 = vst.msk [vmem:[#allocation3 + $0x18] sm:$0xff] %vm1464_vm12, %v5346_v5  ;;  %v5471_v5 = vld [vmem:[#allocation2 + $0x59] sm:$0xff] }
  0xa9   : > { %1659 = vst.msk [vmem:[#allocation3 + $0x18] sm:$0xff] %vm1657_vm2, %v1564_v26  ;;  %1155 = vrot.lane.b32.xlu2 %v5298_v53, %s7281_s26 }
  0xaa   : > { %1883 = vst.msk [vmem:[#allocation3] sm:$0xff] %vm1882_vm3, %v5357_v9 }
  0xab   : > { %1380 = vrot.lane.b32.xlu1 %v1310_v51, %s7287_s27  ;;  %v925_v50 = vpop.permute.xlu2 %924 }
  0xac   : > { %1157 = vrot.lane.b32.xlu0 %v1086_v49, %s7281_s26  ;;  %1018 = vst.msk [vmem:[#allocation3 + $0x48] sm:$0xff] %vm1014_vm10, %v925_v50  ;;  %v5546_v50 = vld [vmem:[#allocation2 + $0x61] sm:$0xff] }
  0xad   : > { %v2012_v57 = vpop.permute.xlu1 %2011 }
  0xae   : > { %v1789_v52 = vpop.permute.xlu0 %1788  ;;  %2108 = vst.msk [vmem:[#allocation3] sm:$0xff] %vm2107_vm4, %v2012_v57 }
  0xaf   : > { %1884 = vst.msk [vmem:[#allocation3 + $0x18] sm:$0xff] %vm1882_vm3, %v1789_v52  ;;  %v5553_v52 = vld [vmem:[#allocation2 + $0x6a] sm:$0xff] }
  0xb0   : > { %2109 = vst.msk [vmem:[#allocation3 + $0x18] sm:$0xff] %vm2107_vm4, %v2014_v23 }
  0xb1   : > { %1382 = vrot.lane.b32.xlu2 %v5308_v56, %s7287_s27  ;;  %v1953_v56 = vmul.f32 %v5390_v21, %v5423_v43 }
  0xb3   : > { %1575 = vrot.lane.b32.xlu1 %v5371_v16, %s7282_s17  ;;  %v1373_v53 = vpop.permute.xlu2 %1372 }
  0xb4   : > { %1573 = vrot.lane.b32.xlu0 %v5369_v15, %s7282_s17 }
  0xb5   : > { %v2207_v60 = vpop.permute.xlu1 %2206 }
  0xb6   : > { %v2205_v59 = vpop.permute.xlu0 %2204  ;;  %2302 = vst.msk [vmem:[#allocation3 + $0x18] sm:$0xff] %vm2300_vm5, %v2207_v60 }
  0xb7   : > { %2301 = vst.msk [vmem:[#allocation3] sm:$0xff] %vm2300_vm5, %v2205_v59 }
  0xb8   : > { %2526 = vst.msk [vmem:[#allocation3] sm:$0xff] %vm2525_vm7, %v2430_v44  ;;  %v1731_v44 = vmul.f32 %v5482_v11, %v735_v30 }
  0xb9   : > { %1798 = vrot.lane.b32.xlu2 %v5373_v17, %s7288_s20 }
  0xbb   : > { %2023 = vrot.lane.b32.xlu1 %v1953_v56, %s7283_s16  ;;  %v1568_v62 = vpop.permute.xlu2 %1567 }
  0xbc   : > { %1800 = vrot.lane.b32.xlu0 %v1729_v61, %s7288_s20  ;;  %v506_v61 = vld [vmem:[%s5189_s25 + $0x68] sm:$0xff] }
  0xbd   : > { %v923_v4 = vpop.permute.xlu1 %922  ;;  %543 = vst.msk [vmem:[#allocation2 + $0x79] sm:$0xff] %vm525_vm0, %v506_v61 }
  0xbe   : > { %v2432_v3 = vpop.permute.xlu0 %2431  ;;  %1017 = vst.msk [vmem:[#allocation3 + $0x30] sm:$0xff] %vm1014_vm10, %v923_v4  ;;  %v5562_v4 = vld [vmem:[#allocation2 + $0x62] sm:$0xff] }
  0xbf   : > { %2527 = vst.msk [vmem:[#allocation3 + $0x18] sm:$0xff] %vm2525_vm7, %v2432_v3  ;;  %v2558_v9 = vld [vmem:[#allocation3] sm:$0xff] }
  0xc0   : > { %v5559_v3 = vld [vmem:[#allocation2 + $0x69] sm:$0xff] }
  0xc1   : > { %2025 = vrot.lane.b32.xlu2 %v5448_v58, %s7283_s16 }
  0xc3   : > { %2218 = vrot.lane.b32.xlu1 %v5471_v5, %s7284_s30  ;;  %v2016_v12 = vpop.permute.xlu2 %2015 }
  0xc4   : > { %2216 = vrot.lane.b32.xlu0 %v5408_v22, %s7284_s30 }
  0xc5   : > { %v1150_v14 = vpop.permute.xlu1 %1149 }
  0xc6   : > { %v1148_v13 = vpop.permute.xlu0 %1147  ;;  %v2559_v23 = vld [vmem:[#allocation3 + $0x18] sm:$0xff]  ;;  %1243 = vst.msk [vmem:[#allocation3 + $0x48] sm:$0xff] %vm1239_vm11, %v1150_v14 }
  0xc7   : > { %1242 = vst.msk [vmem:[#allocation3 + $0x30] sm:$0xff] %vm1239_vm11, %v1148_v13  ;;  %v2590_v26 = vpack.c.bf16 %v2559_v23, %v2558_v9  ;;  %v576_v9 = vadd.s32 80, %v5182_v2  ;;  %v609_v13 = vand.u32 15, %v577_v7 }
  0xc8   : > { %1467 = vst.msk [vmem:[#allocation3 + $0x30] sm:$0xff] %vm1464_vm12, %v1373_v53 }
  0xc9   : > { %4668 = vmatmul.msk.bf16.vlgmr.msra.gmra.mxu0 %vm2621_vm8, %v2590_v26  ;;  %2441 = vrot.lane.b32.xlu2 %v5490_v63, %s7285_s23  ;;  %v608_v24 = vand.u32 15, %v576_v9  ;;  %vm705_vm14 = vcmp.lt.s32.totalorder %v609_v13, 15 }
  0xca   : > { %v5586_v46 = vsel %vm705_vm14, 1.0, %v5022_v1 }
  0xcb   : > { %934 = vrot.lane.b32.xlu1 %v5369_v15, %s7286_s0  ;;  %v2211_v32 = vpop.permute.xlu2 %2210  ;;  %v5518_v15 = vsel %vm638_vm13, 1.0, %v5022_v1  ;;  %vm640_vm15 = vcmp.gt.s32.totalorder %v608_v24, 0 }
  0xcc   : > { %2443 = vrot.lane.b32.xlu0 %v2372_v25, %s7285_s23  ;;  %v1312_v41 = vmul.f32 %v5390_v21, %v5518_v15  ;;  %v1955_v51 = vmul.f32 %v5540_v45, %v5518_v15  ;;  %v5589_v43 = vsel %vm640_vm15, 1.0, %v5022_v1  ;;  %v798_v10 = vmul.f32 %v5355_v8, %v5518_v15 }
  0xcd   : > { %v1566_v35 = vpop.permute.xlu1 %1565 }
  0xce   : > { %v1375_v34 = vpop.permute.xlu0 %1374  ;;  %1660 = vst.msk [vmem:[#allocation3 + $0x30] sm:$0xff] %vm1657_vm2, %v1566_v35 }
  0xcf   : > { %1468 = vst.msk [vmem:[#allocation3 + $0x48] sm:$0xff] %vm1464_vm12, %v1375_v34  ;;  %v5618_v34 = vld [vmem:[#allocation2 + $0x70] sm:$0xff] }
  0xd0   : > { %1661 = vst.msk [vmem:[#allocation3 + $0x48] sm:$0xff] %vm1657_vm2, %v1568_v62  ;;  %v2374_v62 = vmul.f32 %v5553_v52, %v735_v30 }
  0xd1   : > { %936 = vrot.lane.b32.xlu2 %v5371_v16, %s7286_s0  ;;  %830 = vst.msk [vmem:[#allocation3 + $0xc0] sm:$0xff] %vm525_vm0, %v798_v10 }
  0xd3   : > { %1161 = vrot.lane.b32.xlu1 %v1088_v36, %s7281_s26  ;;  %v927_v20 = vpop.permute.xlu2 %926 }
  0xd4   : > { %1159 = vrot.lane.b32.xlu0 %v5373_v17, %s7281_s26  ;;  %1019 = vst.msk [vmem:[#allocation3 + $0x60] sm:$0xff] %vm1014_vm10, %v927_v20  ;;  %v1733_v20 = vmul.f32 %v5553_v52, %v5586_v46 }
  0xd5   : > { %v1793_v40 = vpop.permute.xlu1 %1792 }
  0xd6   : > { %v1791_v39 = vpop.permute.xlu0 %1790  ;;  %1886 = vst.msk [vmem:[#allocation3 + $0x48] sm:$0xff] %vm1882_vm3, %v1793_v40  ;;  %v1957_v40 = vmul.f32 %v5618_v34, %v5589_v43 }
  0xd7   : > { %1885 = vst.msk [vmem:[#allocation3 + $0x30] sm:$0xff] %vm1882_vm3, %v1791_v39  ;;  %v518_v39 = vld [vmem:[%s5189_s25 + $0xc8] sm:$0xff] }
  0xd8   : > { %2110 = vst.msk [vmem:[#allocation3 + $0x30] sm:$0xff] %vm2107_vm4, %v2016_v12 }
  0xd9   : > { %1384 = vrot.lane.b32.xlu2 %v1312_v41, %s7287_s27  ;;  %v5629_v41 = vld [vmem:[#allocation2 + $0x78] sm:$0xff]  ;;  %555 = vst.msk [vmem:[#allocation2 + $0xd9] sm:$0xff] %vm525_vm0, %v518_v39 }
  0xdb   : > { %1577 = vrot.lane.b32.xlu1 %v5408_v22, %s7282_s17  ;;  %v1154_v16 = vpop.permute.xlu2 %1153 }
  0xdc   : > { %1386 = vrot.lane.b32.xlu0 %v5448_v58, %s7287_s27 }
  0xdd   : > { %v2209_v42 = vpop.permute.xlu1 %2208 }
  0xde   : > { %v2018_v17 = vpop.permute.xlu0 %2017  ;;  %2303 = vst.msk [vmem:[#allocation3 + $0x30] sm:$0xff] %vm2300_vm5, %v2209_v42 }
  0xdf   : > { %2111 = vst.msk [vmem:[#allocation3 + $0x48] sm:$0xff] %vm2107_vm4, %v2018_v17 }
  0xe0   : > { %2304 = vst.msk [vmem:[#allocation3 + $0x48] sm:$0xff] %vm2300_vm5, %v2211_v32  ;;  %v5695_v33 = vld [vmem:[#allocation2 + $0xd9] sm:$0xff] }
  0xe1   : > { %1579 = vrot.lane.b32.xlu2 %v5471_v5, %s7282_s17 }
  0xe3   : > { %1804 = vrot.lane.b32.xlu1 %v1731_v44, %s7288_s20  ;;  %v1570_v47 = vpop.permute.xlu2 %1569 }
  0xe4   : > { %1802 = vrot.lane.b32.xlu0 %v5490_v63, %s7288_s20 }
  0xe5   : > { %v2436_v49 = vpop.permute.xlu1 %2435 }
  0xe6   : > { %v2434_v48 = vpop.permute.xlu0 %2433  ;;  %2529 = vst.msk [vmem:[#allocation3 + $0x48] sm:$0xff] %vm2525_vm7, %v2436_v49 }
  0xe7   : > { %2528 = vst.msk [vmem:[#allocation3 + $0x30] sm:$0xff] %vm2525_vm7, %v2434_v48  ;;  %v5638_v48 = vld [vmem:[#allocation2 + $0x71] sm:$0xff] }
  0xe9   : > { %2027 = vrot.lane.b32.xlu2 %v1955_v51, %s7283_s16  ;;  %v5641_v51 = vld [vmem:[#allocation2 + $0x79] sm:$0xff] }
  0xeb   : > { %2220 = vrot.lane.b32.xlu1 %v5546_v50, %s7284_s30  ;;  %v1797_v57 = vpop.permute.xlu2 %1796 }
  0xec   : > { %2029 = vrot.lane.b32.xlu0 %v5508_v38, %s7283_s16 }
  0xed   : > { %v1152_v53 = vpop.permute.xlu1 %1151  ;;  %v2561_v60 = vld [vmem:[#allocation3 + $0x48] sm:$0xff] }
  0xee   : > { %v929_v58 = vpop.permute.xlu0 %928  ;;  %v2560_v59 = vld [vmem:[#allocation3 + $0x30] sm:$0xff]  ;;  %1244 = vst.msk [vmem:[#allocation3 + $0x60] sm:$0xff] %vm1239_vm11, %v1152_v53  ;;  %v590_v53 = vadd.s32 192, %v5182_v2 }
  0xef   : > { %1020 = vst.msk [vmem:[#allocation3 + $0x78] sm:$0xff] %vm1014_vm10, %v929_v58  ;;  %v2591_v56 = vpack.c.bf16 %v2561_v60, %v2560_v59  ;;  %v591_v58 = vadd.s32 200, %v5182_v2  ;;  %v5654_v59 = vld [vmem:[#allocation2 + $0x7a] sm:$0xff] }
  0xf0   : > { %1245 = vst.msk [vmem:[#allocation3 + $0x78] sm:$0xff] %vm1239_vm11, %v1154_v16  ;;  %v622_v7 = vand.u32 15, %v590_v53  ;;  %v2376_v9 = vmul.f32 %v5654_v59, %v5586_v46  ;;  %v5729_v53 = vld [vmem:[%s7235_s2] ss:$0 sm:$0xff] }
  0xf1   : > { %4669 = vmatmul.msk.bf16.gmra.mxu0 %vm2621_vm8, %v2591_v56  ;;  %2222 = vrot.lane.b32.xlu2 %v5559_v3, %s7284_s30 }
  0xf2   : > { %vm654_vm9 = vcmp.gt.s32.totalorder %v622_v7, 0 }
  0xf3   : > { %2447 = vrot.lane.b32.xlu1 %v2374_v62, %s7285_s23  ;;  %v2213_v12 = vpop.permute.xlu2 %2212  ;;  %v623_v62 = vand.u32 15, %v591_v58 }
  0xf4   : > { %2445 = vrot.lane.b32.xlu0 %v5562_v4, %s7285_s23 }
  0xf5   : > { %v1379_v23 = vpop.permute.xlu1 %1378  ;;  %vm719_vm1 = vcmp.lt.s32.totalorder %v623_v62, 15 }
  0xf6   : > { %v1377_v14 = vpop.permute.xlu0 %1376  ;;  %1470 = vst.msk [vmem:[#allocation3 + $0x78] sm:$0xff] %vm1464_vm12, %v1379_v23  ;;  %v5669_v8 = vsel %vm719_vm1, 1.0, %v5022_v1  ;;  %v5672_v23 = vsel %vm654_vm9, 1.0, %v5022_v1 }
  0xf7   : > { %1469 = vst.msk [vmem:[#allocation3 + $0x60] sm:$0xff] %vm1464_vm12, %v1377_v14 }
  0xf8   : > { %1662 = vst.msk [vmem:[#allocation3 + $0x60] sm:$0xff] %vm1657_vm2, %v1570_v47 }
  0xf9   : > { %938 = vrot.lane.b32.xlu2 %v5408_v22, %s7286_s0  ;;  %v1090_v22 = vmul.f32 %v5482_v11, %v5586_v46  ;;  %v517_v11 = vld [vmem:[%s5189_s25 + $0xc0] sm:$0xff] }
  0xfa   : > { %554 = vst.msk [vmem:[#allocation2 + $0xd1] sm:$0xff] %vm525_vm0, %v517_v11 }
  0xfb   : > { %1163 = vrot.lane.b32.xlu1 %v5490_v63, %s7281_s26  ;;  %v2440_v26 = vpop.permute.xlu2 %2439  ;;  %v516_v63 = vld [vmem:[%s5189_s25 + $0xb8] sm:$0xff] }
  0xfc   : > { %940 = vrot.lane.b32.xlu0 %v5471_v5, %s7286_s0  ;;  %v1314_v5 = vmul.f32 %v5540_v45, %v5589_v43  ;;  %553 = vst.msk [vmem:[#allocation2 + $0xc9] sm:$0xff] %vm525_vm0, %v516_v63  ;;  %v520_v63 = vld [vmem:[%s5189_s25 + $0xd8] sm:$0xff] }
  0xfd   : > { %v1795_v25 = vpop.permute.xlu1 %1794  ;;  %557 = vst.msk [vmem:[#allocation2 + $0xe9] sm:$0xff] %vm525_vm0, %v520_v63 }
  0xfe   : > { %v1572_v27 = vpop.permute.xlu0 %1571  ;;  %1887 = vst.msk [vmem:[#allocation3 + $0x60] sm:$0xff] %vm1882_vm3, %v1795_v25  ;;  %v519_v25 = vld [vmem:[%s5189_s25 + $0xd0] sm:$0xff] }
  0xff   : > { %1663 = vst.msk [vmem:[#allocation3 + $0x78] sm:$0xff] %vm1657_vm2, %v1572_v27 }
 0x100   : > { %1888 = vst.msk [vmem:[#allocation3 + $0x78] sm:$0xff] %vm1882_vm3, %v1797_v57  ;;  %v5643_v57 = vld [vmem:[#allocation2 + $0x72] sm:$0xff] }
 0x101   : > { %1165 = vrot.lane.b32.xlu2 %v1090_v22, %s7281_s26  ;;  %v1297_v14 = vld [vmem:[#allocation2 + $0xd8] sm:$0xff]  ;;  %556 = vst.msk [vmem:[#allocation2 + $0xe1] sm:$0xff] %vm525_vm0, %v519_v25 }
 0x102   : > { %849 = vst.msk [vmem:[#allocation3 + $0x288] sm:$0xff] %vm525_vm0, %v1297_v14 }
 0x103   : > { %1390 = vrot.lane.b32.xlu1 %v5508_v38, %s7287_s27  ;;  %v1156_v29 = vpop.permute.xlu2 %1155  ;;  %v879_v13 = vld [vmem:[#allocation2 + $0xc9] sm:$0xff] }
 0x104   : > { %1388 = vrot.lane.b32.xlu0 %v1314_v5, %s7287_s27  ;;  %v1072_v15 = vld [vmem:[#allocation2 + $0xca] sm:$0xff]  ;;  %v1071_v5 = vld [vmem:[#allocation2 + $0xc2] sm:$0xff] }
 0x105   : > { %v2022_v32 = vpop.permute.xlu1 %2021  ;;  %v5674_v24 = vld [vmem:[#allocation2 + $0xd0] sm:$0xff]  ;;  %v1104_v22 = vmul.f32 %v1072_v15, %v5669_v8 }
 0x106   : > { %v2020_v30 = vpop.permute.xlu0 %2019  ;;  %2113 = vst.msk [vmem:[#allocation3 + $0x78] sm:$0xff] %vm2107_vm4, %v2022_v32  ;;  %v1328_v28 = vmul.f32 %v5674_v24, %v5672_v23  ;;  %v5693_v32 = vld [vmem:[#allocation2 + $0xd1] sm:$0xff] }
 0x107   : > { %2112 = vst.msk [vmem:[#allocation3 + $0x60] sm:$0xff] %vm2107_vm4, %v2020_v30 }
 0x108   : > { %2305 = vst.msk [vmem:[#allocation3 + $0x60] sm:$0xff] %vm2300_vm5, %v2213_v12  ;;  %v878_v12 = vld [vmem:[#allocation2 + $0xc1] sm:$0xff] }
 0x109   : > { %1581 = vrot.lane.b32.xlu2 %v5546_v50, %s7282_s17 }
 0x10b   : > { %1806 = vrot.lane.b32.xlu1 %v5562_v4, %s7288_s20  ;;  %v1383_v35 = vpop.permute.xlu2 %1382 }
 0x10c   : > { %1583 = vrot.lane.b32.xlu0 %v5559_v3, %s7282_s17 }
 0x10d   : > { %v2438_v38 = vpop.permute.xlu1 %2437 }
 0x10e   : > { %v2215_v36 = vpop.permute.xlu0 %2214  ;;  %2530 = vst.msk [vmem:[#allocation3 + $0x60] sm:$0xff] %vm2525_vm7, %v2438_v38 }
 0x10f   : > { %2306 = vst.msk [vmem:[#allocation3 + $0x78] sm:$0xff] %vm2300_vm5, %v2215_v36 }
 0x110   : > { %2531 = vst.msk [vmem:[#allocation3 + $0x78] sm:$0xff] %vm2525_vm7, %v2440_v26 }
 0x111   : > { %1808 = vrot.lane.b32.xlu2 %v1733_v20, %s7288_s20 }
 0x113   : > { %2033 = vrot.lane.b32.xlu1 %v5629_v41, %s7283_s16  ;;  %v1799_v16 = vpop.permute.xlu2 %1798 }
 0x114   : > { %2031 = vrot.lane.b32.xlu0 %v1957_v40, %s7283_s16  ;;  %v5706_v40 = vld [vmem:[#allocation2 + $0xd2] sm:$0xff] }
 0x115   : > { %v933_v42 = vpop.permute.xlu1 %932  ;;  %v2562_v47 = vld [vmem:[#allocation3 + $0x60] sm:$0xff] }
 0x116   : > { %v931_v17 = vpop.permute.xlu0 %930  ;;  %1022 = vst.msk [vmem:[#allocation3 + $0xa8] sm:$0xff] %vm1014_vm10, %v933_v42 }
 0x117   : > { %1021 = vst.msk [vmem:[#allocation3 + $0x90] sm:$0xff] %vm1014_vm10, %v931_v17  ;;  %v2563_v44 = vld [vmem:[#allocation3 + $0x78] sm:$0xff] }
 0x118   : > { %1246 = vst.msk [vmem:[#allocation3 + $0x90] sm:$0xff] %vm1239_vm11, %v1156_v29  ;;  %v2592_v49 = vpack.c.bf16 %v2563_v44, %v2562_v47  ;;  %v5715_v17 = vld [vmem:[#allocation2 + $0xda] sm:$0xff] }
 0x119   : > { %2224 = vrot.lane.b32.xlu2 %v5638_v48, %s7284_s30 }
 0x11a   : > { %4670 = vmatmul.msk.bf16.gmra.mxu0 %vm2621_vm8, %v2592_v49 }
 0x11b   : > { %2449 = vrot.lane.b32.xlu1 %v5643_v57, %s7285_s23  ;;  %v2026_v60 = vpop.permute.xlu2 %2025 }
 0x11c   : > { %2226 = vrot.lane.b32.xlu0 %v5641_v51, %s7284_s30 }
 0x11d   : > { %v1381_v56 = vpop.permute.xlu1 %1380 }
 0x11e   : > { %v1158_v61 = vpop.permute.xlu0 %1157  ;;  %1471 = vst.msk [vmem:[#allocation3 + $0x90] sm:$0xff] %vm1464_vm12, %v1381_v56  ;;  %v5742_v56 = vld [vmem:[%s7236_s3] ss:$0 sm:$0xff] }
 0x11f   : > { %1247 = vst.msk [vmem:[#allocation3 + $0xa8] sm:$0xff] %vm1239_vm11, %v1158_v61  ;;  %v5735_v61 = vld [vmem:[#allocation2 + $0xe0] sm:$0xff] }
 0x120   : > { %1472 = vst.msk [vmem:[#allocation3 + $0xa8] sm:$0xff] %vm1464_vm12, %v1383_v35  ;;  %v579_v35 = vadd.s32 104, %v5182_v2 }
 0x121   : > { %2451 = vrot.lane.b32.xlu2 %v2376_v9, %s7285_s23 }
 0x122   : > { %v611_v39 = vand.u32 15, %v579_v35  ;;  %v5777_v35 = vld [vmem:[#allocation2 + $0xe9] sm:$0xff] }
 0x123   : > { %968 = vrot.lane.b32.xlu1 %v879_v13, %s7286_s0  ;;  %v2442_v46 = vpop.permute.xlu2 %2441  ;;  %v1971_v13 = vmul.f32 %v5735_v61, %v5672_v23 }
 0x124   : > { %966 = vrot.lane.b32.xlu0 %v878_v12, %s7286_s0  ;;  %vm707_vm13 = vcmp.lt.s32.totalorder %v611_v39, 15 }
 0x125   : > { %v1576_v27 = vpop.permute.xlu1 %1575  ;;  %v5718_v42 = vsel %vm707_vm13, 1.0, %v5022_v1 }
 0x126   : > { %v1574_v26 = vpop.permute.xlu0 %1573  ;;  %1665 = vst.msk [vmem:[#allocation3 + $0xa8] sm:$0xff] %vm1657_vm2, %v1576_v27 }
 0x127   : > { %1664 = vst.msk [vmem:[#allocation3 + $0x90] sm:$0xff] %vm1657_vm2, %v1574_v26  ;;  %v5759_v26 = vld [vmem:[#allocation2 + $0xe8] sm:$0xff] }
 0x128   : > { %1889 = vst.msk [vmem:[#allocation3 + $0x90] sm:$0xff] %vm1882_vm3, %v1799_v16  ;;  %v578_v16 = vadd.s32 96, %v5182_v2 }
 0x129   : > { %1191 = vrot.lane.b32.xlu2 %v1071_v5, %s7281_s26 }
 0x12a   : > { %v610_v58 = vand.u32 15, %v578_v16 }
 0x12b   : > { %1416 = vrot.lane.b32.xlu1 %v1328_v28, %s7287_s27  ;;  %v937_v11 = vpop.permute.xlu2 %936 }
 0x12c   : > { %1193 = vrot.lane.b32.xlu0 %v1104_v22, %s7281_s26  ;;  %1024 = vst.msk [vmem:[#allocation3 + $0xd8] sm:$0xff] %vm1014_vm10, %v937_v11  ;;  %vm642_vm14 = vcmp.gt.s32.totalorder %v610_v58, 0  ;;  %v509_v11 = vld [vmem:[%s5189_s25 + $0x80] sm:$0xff] }
 0x12d   : > { %v2024_v30 = vpop.permute.xlu1 %2023  ;;  %v5745_v62 = vsel %vm642_vm14, 1.0, %v5022_v1  ;;  %546 = vst.msk [vmem:[#allocation2 + $0x91] sm:$0xff] %vm525_vm0, %v509_v11  ;;  %v592_v11 = vadd.s32 208, %v5182_v2 }
 0x12e   : > { %v1801_v29 = vpop.permute.xlu0 %1800  ;;  %2114 = vst.msk [vmem:[#allocation3 + $0x90] sm:$0xff] %vm2107_vm4, %v2024_v30  ;;  %v1316_v15 = vmul.f32 %v5618_v34, %v5745_v62  ;;  %v521_v34 = vld [vmem:[%s5189_s25 + $0xe0] sm:$0xff] }
 0x12f   : > { %1890 = vst.msk [vmem:[#allocation3 + $0xa8] sm:$0xff] %vm1882_vm3, %v1801_v29  ;;  %v5775_v30 = vld [vmem:[#allocation2 + $0xe1] sm:$0xff] }
 0x130   : > { %2115 = vst.msk [vmem:[#allocation3 + $0xa8] sm:$0xff] %vm2107_vm4, %v2026_v60 }
 0x131   : > { %1418 = vrot.lane.b32.xlu2 %v1297_v14, %s7287_s27  ;;  %v508_v14 = vld [vmem:[%s5189_s25 + $0x78] sm:$0xff]  ;;  %558 = vst.msk [vmem:[#allocation2 + $0xf1] sm:$0xff] %vm525_vm0, %v521_v34 }
 0x132   : > { %545 = vst.msk [vmem:[#allocation2 + $0x89] sm:$0xff] %vm525_vm0, %v508_v14 }
 0x133   : > { %1611 = vrot.lane.b32.xlu1 %v5695_v33, %s7282_s17  ;;  %v1385_v36 = vpop.permute.xlu2 %1384 }
 0x134   : > { %1609 = vrot.lane.b32.xlu0 %v5693_v32, %s7282_s17 }
 0x135   : > { %v2219_v20 = vpop.permute.xlu1 %2218 }
 0x136   : > { %v2217_v38 = vpop.permute.xlu0 %2216  ;;  %2308 = vst.msk [vmem:[#allocation3 + $0xa8] sm:$0xff] %vm2300_vm5, %v2219_v20 }
 0x137   : > { %2307 = vst.msk [vmem:[#allocation3 + $0x90] sm:$0xff] %vm2300_vm5, %v2217_v38 }
 0x138   : > { %2532 = vst.msk [vmem:[#allocation3 + $0x90] sm:$0xff] %vm2525_vm7, %v2442_v46  ;;  %v5799_v16 = vld [vmem:[#allocation2 + $0xea] sm:$0xff] }
 0x139   : > { %942 = vrot.lane.b32.xlu2 %v5546_v50, %s7286_s0  ;;  %v1747_v50 = vmul.f32 %v5715_v17, %v5669_v8  ;;  %v2390_v58 = vmul.f32 %v5799_v16, %v5669_v8 }
 0x13b   : > { %1834 = vrot.lane.b32.xlu1 %v5706_v40, %s7288_s20  ;;  %v1580_v44 = vpop.permute.xlu2 %1579 }
 0x13c   : > { %944 = vrot.lane.b32.xlu0 %v5559_v3, %s7286_s0  ;;  %v1092_v3 = vmul.f32 %v5553_v52, %v5718_v42  ;;  %v800_v52 = vmul.f32 %v5390_v21, %v5589_v43 }
 0x13d   : > { %v935_v49 = vpop.permute.xlu1 %934 }
 0x13e   : > { %v2444_v47 = vpop.permute.xlu0 %2443  ;;  %1023 = vst.msk [vmem:[#allocation3 + $0xc0] sm:$0xff] %vm1014_vm10, %v935_v49 }
 0x13f   : > { %2533 = vst.msk [vmem:[#allocation3 + $0xa8] sm:$0xff] %vm2525_vm7, %v2444_v47  ;;  %v2564_v60 = vld [vmem:[#allocation3 + $0x90] sm:$0xff] }
 0x140   : > { %832 = vst.msk [vmem:[#allocation3 + $0xf0] sm:$0xff] %vm525_vm0, %v800_v52 }
 0x141   : > { %1836 = vrot.lane.b32.xlu2 %v1747_v50, %s7288_s20  ;;  %v1735_v50 = vmul.f32 %v5654_v59, %v5718_v42 }
 0x143   : > { %1169 = vrot.lane.b32.xlu1 %v1092_v3, %s7281_s26  ;;  %v2028_v7 = vpop.permute.xlu2 %2027  ;;  %v5812_v3 = vld [vmem:[#allocation2 + $0x80] sm:$0xff] }
 0x144   : > { %1167 = vrot.lane.b32.xlu0 %v5562_v4, %s7281_s26 }
 0x145   : > { %v1162_v21 = vpop.permute.xlu1 %1161 }
 0x146   : > { %v1160_v9 = vpop.permute.xlu0 %1159  ;;  %v2686_v4 = vpop.f32.mrf.mxu0  ;;  %v2565_v10 = vld [vmem:[#allocation3 + $0xa8] sm:$0xff]  ;;  %1249 = vst.msk [vmem:[#allocation3 + $0xd8] sm:$0xff] %vm1239_vm11, %v1162_v21 }
 0x147   : > { %1248 = vst.msk [vmem:[#allocation3 + $0xc0] sm:$0xff] %vm1239_vm11, %v1160_v9  ;;  %v2770_v12 = vmul.f32 %v5729_v53, %v2686_v4  ;;  %v2593_v43 = vpack.c.bf16 %v2565_v10, %v2564_v60  ;;  %v5818_v9 = vld [vmem:[#allocation2 + $0x88] sm:$0xff] }
 0x148   : > { %1473 = vst.msk [vmem:[#allocation3 + $0xc0] sm:$0xff] %vm1464_vm12, %v1385_v36  ;;  %v5820_v4 = vld [vmem:[#allocation2 + $0x81] sm:$0xff]  ;;  %v5827_v10 = vld [vmem:[#allocation2 + $0x8a] sm:$0xff] }
 0x149   : > { %v2806_v46 = vadd.f32 %v5742_v56, %v2770_v12  ;;  %4671 = vmatmul.msk.bf16.gmra.mxu0 %vm2621_vm8, %v2593_v43  ;;  %2059 = vrot.lane.b32.xlu2 %v1971_v13, %s7283_s16 }
 0x14b   : > { %v2838_v27 = vmax.f32 %v2806_v46, 0.0  ;;  %1392 = vrot.lane.b32.xlu1 %v1316_v15, %s7287_s27  ;;  %v2223_v25 = vpop.permute.xlu2 %2222  ;;  %v514_v46 = vld [vmem:[%s5189_s25 + $0xa8] sm:$0xff] }
 0x14c   : > { %2061 = vrot.lane.b32.xlu0 %v5759_v26, %s7283_s16  ;;  %551 = vst.msk [vmem:[#allocation2 + $0xb9] sm:$0xff] %vm525_vm0, %v514_v46 }
 0x14d   : > { %2871 = vst.msk [vmem:[#allocation4] sm:$0xff] %vm2870_vm6, %v2838_v27  ;;  %v1578_v63 = vpop.permute.xlu1 %1577 }
 0x14e   : > { %v1387_v22 = vpop.permute.xlu0 %1386  ;;  %v2688_v28 = vpop.f32.mrf.mxu0  ;;  %1666 = vst.msk [vmem:[#allocation3 + $0xc0] sm:$0xff] %vm1657_vm2, %v1578_v63 }
 0x14f   : > { %1474 = vst.msk [vmem:[#allocation3 + $0xd8] sm:$0xff] %vm1464_vm12, %v1387_v22  ;;  %v2771_v5 = vmul.f32 %v5729_v53, %v2688_v28  ;;  %v5835_v22 = vld [vmem:[#allocation2 + $0x89] sm:$0xff] }
 0x150   : > { %1667 = vst.msk [vmem:[#allocation3 + $0xd8] sm:$0xff] %vm1657_vm2, %v1580_v44  ;;  %v5838_v28 = vld [vmem:[#allocation2 + $0x82] sm:$0xff] }
 0x151   : > { %v2807_v29 = vadd.f32 %v5742_v56, %v2771_v5  ;;  %1394 = vrot.lane.b32.xlu2 %v5629_v41, %s7287_s27  ;;  %v5791_v41 = vld [vmem:[#allocation2 + $0xe2] sm:$0xff]  ;;  %v593_v5 = vadd.s32 216, %v5182_v2 }
 0x153   : > { %v2839_v36 = vmax.f32 %v2807_v29, 0.0  ;;  %2254 = vrot.lane.b32.xlu1 %v5777_v35, %s7284_s30  ;;  %v939_v38 = vpop.permute.xlu2 %938 }
 0x154   : > { %2252 = vrot.lane.b32.xlu0 %v5775_v30, %s7284_s30  ;;  %1025 = vst.msk [vmem:[#allocation3 + $0xf0] sm:$0xff] %vm1014_vm10, %v939_v38 }
 0x155   : > { %2872 = vst.msk [vmem:[#allocation4 + $0x8] sm:$0xff] %vm2870_vm6, %v2839_v36  ;;  %v1805_v39 = vpop.permute.xlu1 %1804  ;;  %v625_v36 = vand.u32 15, %v593_v5  ;;  %v5924_v5 = vld [vmem:[#allocation2 + $0xf0] sm:$0xff] }
 0x156   : > { %v1803_v20 = vpop.permute.xlu0 %1802  ;;  %1892 = vst.msk [vmem:[#allocation3 + $0xd8] sm:$0xff] %vm1882_vm3, %v1805_v39 }
 0x157   : > { %1891 = vst.msk [vmem:[#allocation3 + $0xc0] sm:$0xff] %vm1882_vm3, %v1803_v20  ;;  %v624_v20 = vand.u32 15, %v592_v11  ;;  %vm721_vm15 = vcmp.lt.s32.totalorder %v625_v36, 15 }
 0x158   : > { %2116 = vst.msk [vmem:[#allocation3 + $0xc0] sm:$0xff] %vm2107_vm4, %v2028_v7  ;;  %v1959_v7 = vmul.f32 %v5812_v3, %v5745_v62 }
 0x159   : > { %1585 = vrot.lane.b32.xlu2 %v5638_v48, %s7282_s17  ;;  %vm656_vm1 = vcmp.gt.s32.totalorder %v624_v20, 0 }
 0x15b   : > { %2477 = vrot.lane.b32.xlu1 %v5791_v41, %s7285_s23  ;;  %v1166_v44 = vpop.permute.xlu2 %1165 }
 0x15c   : > { %1587 = vrot.lane.b32.xlu0 %v5641_v51, %s7282_s17 }
 0x15d   : > { %v2221_v49 = vpop.permute.xlu1 %2220 }
 0x15e   : > { %v2030_v47 = vpop.permute.xlu0 %2029  ;;  %2309 = vst.msk [vmem:[#allocation3 + $0xc0] sm:$0xff] %vm2300_vm5, %v2221_v49  ;;  %v5854_v49 = vld [vmem:[#allocation2 + $0xc8] sm:$0xff] }
 0x15f   : > { %2117 = vst.msk [vmem:[#allocation3 + $0xd8] sm:$0xff] %vm2107_vm4, %v2030_v47 }
 0x160   : > { %2310 = vst.msk [vmem:[#allocation3 + $0xd8] sm:$0xff] %vm2300_vm5, %v2223_v25  ;;  %v2378_v25 = vmul.f32 %v5827_v10, %v5718_v42 }
 0x161   : > { %2479 = vrot.lane.b32.xlu2 %v2390_v58, %s7285_s23  ;;  %v5857_v58 = vld [vmem:[#allocation2 + $0xc0] sm:$0xff]  ;;  %847 = vst.msk [vmem:[#allocation3 + $0x258] sm:$0xff] %vm525_vm0, %v5854_v49 }
 0x163   : > { %1812 = vrot.lane.b32.xlu1 %v1735_v50, %s7288_s20  ;;  %v1582_v60 = vpop.permute.xlu2 %1581 }
 0x164   : > { %1810 = vrot.lane.b32.xlu0 %v5643_v57, %s7288_s20 }
 0x165   : > { %v2448_v8 = vpop.permute.xlu1 %2447 }
 0x166   : > { %v2446_v52 = vpop.permute.xlu0 %2445  ;;  %2535 = vst.msk [vmem:[#allocation3 + $0xd8] sm:$0xff] %vm2525_vm7, %v2448_v8  ;;  %v5871_v8 = vsel %vm721_vm15, 1.0, %v5022_v1 }
 0x167   : > { %2534 = vst.msk [vmem:[#allocation3 + $0xc0] sm:$0xff] %vm2525_vm7, %v2446_v52  ;;  %v814_v52 = vmul.f32 %v5857_v58, %v5672_v23  ;;  %v5875_v23 = vsel %vm656_vm1, 1.0, %v5022_v1 }
 0x169   : > { %2035 = vrot.lane.b32.xlu2 %v1959_v7, %s7283_s16  ;;  %846 = vst.msk [vmem:[#allocation3 + $0x240] sm:$0xff] %vm525_vm0, %v814_v52 }
 0x16b   : > { %2228 = vrot.lane.b32.xlu1 %v5820_v4, %s7284_s30  ;;  %v1809_v12 = vpop.permute.xlu2 %1808 }
 0x16c   : > { %2037 = vrot.lane.b32.xlu0 %v5818_v9, %s7283_s16 }
 0x16d   : > { %v1164_v13 = vpop.permute.xlu1 %1163  ;;  %v2567_v15 = vld [vmem:[#allocation3 + $0xd8] sm:$0xff] }
 0x16e   : > { %v941_v21 = vpop.permute.xlu0 %940  ;;  %v2566_v43 = vld [vmem:[#allocation3 + $0xc0] sm:$0xff]  ;;  %v2691_v14 = vpop.f32.mrf.mxu0  ;;  %1250 = vst.msk [vmem:[#allocation3 + $0xf0] sm:$0xff] %vm1239_vm11, %v1164_v13 }
 0x16f   : > { %1026 = vst.msk [vmem:[#allocation3 + $0x108] sm:$0xff] %vm1014_vm10, %v941_v21  ;;  %v2772_v27 = vmul.f32 %v5729_v53, %v2691_v14  ;;  %v2594_v34 = vpack.c.bf16 %v2567_v15, %v2566_v43  ;;  %v581_v14 = vadd.s32 120, %v5182_v2 }
 0x170   : > { %1251 = vst.msk [vmem:[#allocation3 + $0x108] sm:$0xff] %vm1239_vm11, %v1166_v44 }
 0x171   : > { %v2808_v63 = vadd.f32 %v5742_v56, %v2772_v27  ;;  %4672 = vmatmul.msk.bf16.gmra.mxu0 %vm2621_vm8, %v2594_v34  ;;  %2230 = vrot.lane.b32.xlu2 %v5835_v22, %s7284_s30  ;;  %v613_v15 = vand.u32 15, %v581_v14  ;;  %v1749_v27 = vmul.f32 %v5799_v16, %v5871_v8  ;;  %v580_v34 = vadd.s32 112, %v5182_v2  ;;  %v5963_v14 = vld [vmem:[#allocation2 + $0xf1] sm:$0xff] }
 0x173   : > { %v2840_v42 = vmax.f32 %v2808_v63, 0.0  ;;  %2455 = vrot.lane.b32.xlu1 %v2378_v25, %s7285_s23  ;;  %v2225_v29 = vpop.permute.xlu2 %2224  ;;  %vm709_vm9 = vcmp.lt.s32.totalorder %v613_v15, 15 }
 0x174   : > { %2453 = vrot.lane.b32.xlu0 %v5838_v28, %s7285_s23  ;;  %v5922_v25 = vsel %vm709_vm9, 1.0, %v5022_v1 }
 0x175   : > { %2873 = vst.msk [vmem:[#allocation4 + $0x10] sm:$0xff] %vm2870_vm6, %v2840_v42  ;;  %v1391_v39 = vpop.permute.xlu1 %1390  ;;  %v612_v42 = vand.u32 15, %v580_v34  ;;  %v1094_v20 = vmul.f32 %v5654_v59, %v5922_v25  ;;  %v5989_v34 = vld [vmem:[#allocation2 + $0x90] sm:$0xff] }
 0x176   : > { %v1389_v38 = vpop.permute.xlu0 %1388  ;;  %v2693_v44 = vpop.f32.mrf.mxu0  ;;  %1476 = vst.msk [vmem:[#allocation3 + $0x108] sm:$0xff] %vm1464_vm12, %v1391_v39  ;;  %v1973_v39 = vmul.f32 %v5924_v5, %v5875_v23 }
 0x177   : > { %1475 = vst.msk [vmem:[#allocation3 + $0xf0] sm:$0xff] %vm1464_vm12, %v1389_v38  ;;  %v2773_v47 = vmul.f32 %v5729_v53, %v2693_v44  ;;  %vm644_vm13 = vcmp.gt.s32.totalorder %v612_v42, 0 }
 0x178   : > { %1668 = vst.msk [vmem:[#allocation3 + $0xf0] sm:$0xff] %vm1657_vm2, %v1582_v60  ;;  %v5942_v52 = vsel %vm644_vm13, 1.0, %v5022_v1 }
 0x179   : > { %v2809_v50 = vadd.f32 %v5742_v56, %v2773_v47  ;;  %970 = vrot.lane.b32.xlu2 %v5693_v32, %s7286_s0 }
 0x17b   : > { %v2841_v60 = vmax.f32 %v2809_v50, 0.0  ;;  %1195 = vrot.lane.b32.xlu1 %v5706_v40, %s7281_s26  ;;  %v2452_v7 = vpop.permute.xlu2 %2451  ;;  %v1330_v40 = vmul.f32 %v5735_v61, %v5875_v23  ;;  %v522_v61 = vld [vmem:[%s5189_s25 + $0xe8] sm:$0xff] }
 0x17c   : > { %972 = vrot.lane.b32.xlu0 %v5695_v33, %s7286_s0  ;;  %v1106_v33 = vmul.f32 %v5715_v17, %v5871_v8  ;;  %559 = vst.msk [vmem:[#allocation2 + $0xf9] sm:$0xff] %vm525_vm0, %v522_v61 }
 0x17d   : > { %2874 = vst.msk [vmem:[#allocation4 + $0x18] sm:$0xff] %vm2870_vm6, %v2841_v60  ;;  %v1807_v32 = vpop.permute.xlu1 %1806 }
 0x17e   : > { %v1584_v21 = vpop.permute.xlu0 %1583  ;;  %1893 = vst.msk [vmem:[#allocation3 + $0xf0] sm:$0xff] %vm1882_vm3, %v1807_v32 }
 0x17f   : > { %1669 = vst.msk [vmem:[#allocation3 + $0x108] sm:$0xff] %vm1657_vm2, %v1584_v21 }
 0x180   : > { %1894 = vst.msk [vmem:[#allocation3 + $0x108] sm:$0xff] %vm1882_vm3, %v1809_v12  ;;  %v802_v12 = vmul.f32 %v5540_v45, %v5745_v62  ;;  %v523_v45 = vld [vmem:[%s5189_s25 + $0xf0] sm:$0xff] }
 0x181   : > { %1197 = vrot.lane.b32.xlu2 %v1106_v33, %s7281_s26  ;;  %560 = vst.msk [vmem:[#allocation2 + $0x101] sm:$0xff] %vm525_vm0, %v523_v45  ;;  %v510_v33 = vld [vmem:[%s5189_s25 + $0x88] sm:$0xff] }
 0x182   : > { %834 = vst.msk [vmem:[#allocation3 + $0x120] sm:$0xff] %vm525_vm0, %v802_v12 }
 0x183   : > { %1422 = vrot.lane.b32.xlu1 %v5759_v26, %s7287_s27  ;;  %v1192_v43 = vpop.permute.xlu2 %1191  ;;  %547 = vst.msk [vmem:[#allocation2 + $0x99] sm:$0xff] %vm525_vm0, %v510_v33  ;;  %v5966_v45 = vld [vmem:[#allocation2 + $0xf9] sm:$0xff] }
 0x184   : > { %1420 = vrot.lane.b32.xlu0 %v1330_v40, %s7287_s27 }
 0x185   : > { %v2034_v17 = vpop.permute.xlu1 %2033 }
 0x186   : > { %v2032_v13 = vpop.permute.xlu0 %2031  ;;  %2119 = vst.msk [vmem:[#allocation3 + $0x108] sm:$0xff] %vm2107_vm4, %v2034_v17 }
 0x187   : > { %2118 = vst.msk [vmem:[#allocation3 + $0xf0] sm:$0xff] %vm2107_vm4, %v2032_v13 }
 0x188   : > { %2311 = vst.msk [vmem:[#allocation3 + $0xf0] sm:$0xff] %vm2300_vm5, %v2225_v29 }
 0x189   : > { %1613 = vrot.lane.b32.xlu2 %v5775_v30, %s7282_s17 }
 0x18b   : > { %946 = vrot.lane.b32.xlu1 %v5638_v48, %s7286_s0  ;;  %v1419_v62 = vpop.permute.xlu2 %1418  ;;  %v5912_v48 = vld [vmem:[#allocation2 + $0xf8] sm:$0xff] }
 0x18c   : > { %1615 = vrot.lane.b32.xlu0 %v5777_v35, %s7282_s17  ;;  %853 = vst.msk [vmem:[#allocation3 + $0x2e8] sm:$0xff] %vm525_vm0, %v5912_v48 }
 0x18d   : > { %v2450_v46 = vpop.permute.xlu1 %2449 }
 0x18e   : > { %v2227_v26 = vpop.permute.xlu0 %2226  ;;  %2536 = vst.msk [vmem:[#allocation3 + $0xf0] sm:$0xff] %vm2525_vm7, %v2450_v46 }
 0x18f   : > { %2312 = vst.msk [vmem:[#allocation3 + $0x108] sm:$0xff] %vm2300_vm5, %v2227_v26 }
 0x190   : > { %2537 = vst.msk [vmem:[#allocation3 + $0x108] sm:$0xff] %vm2525_vm7, %v2452_v7 }
 0x191   : > { %948 = vrot.lane.b32.xlu2 %v5641_v51, %s7286_s0 }
 0x193   : > { %1840 = vrot.lane.b32.xlu1 %v1749_v27, %s7288_s20  ;;  %v943_v63 = vpop.permute.xlu2 %942  ;;  %v5981_v27 = vld [vmem:[#allocation2 + $0xf2] sm:$0xff] }
 0x194   : > { %1838 = vrot.lane.b32.xlu0 %v5791_v41, %s7288_s20  ;;  %1027 = vst.msk [vmem:[#allocation3 + $0x120] sm:$0xff] %vm1014_vm10, %v943_v63 }
 0x195   : > { %v969_v51 = vpop.permute.xlu1 %968  ;;  %v2568_v38 = vld [vmem:[#allocation3 + $0xf0] sm:$0xff] }
 0x196   : > { %v967_v11 = vpop.permute.xlu0 %966  ;;  %1040 = vst.msk [vmem:[#allocation3 + $0x258] sm:$0xff] %vm1014_vm10, %v969_v51  ;;  %v1737_v51 = vmul.f32 %v5827_v10, %v5922_v25 }
 0x197   : > { %1039 = vst.msk [vmem:[#allocation3 + $0x240] sm:$0xff] %vm1014_vm10, %v967_v11  ;;  %v2569_v29 = vld [vmem:[#allocation3 + $0x108] sm:$0xff]  ;;  %v2696_v36 = vpop.f32.mrf.mxu0 }
 0x198   : > { %1264 = vst.msk [vmem:[#allocation3 + $0x240] sm:$0xff] %vm1239_vm11, %v1192_v43  ;;  %v2774_v44 = vmul.f32 %v5729_v53, %v2696_v36  ;;  %v2595_v47 = vpack.c.bf16 %v2569_v29, %v2568_v38  ;;  %v1961_v29 = vmul.f32 %v5989_v34, %v5942_v52 }
 0x199   : > { %1171 = vrot.lane.b32.xlu2 %v5643_v57, %s7281_s26  ;;  %v1318_v57 = vmul.f32 %v5812_v3, %v5942_v52  ;;  %v511_v3 = vld [vmem:[%s5189_s25 + $0x90] sm:$0xff] }
 0x19a   : > { %v2810_v50 = vadd.f32 %v5742_v56, %v2774_v44  ;;  %4673 = vmatmul.msk.bf16.gmra.mxu0 %vm2621_vm8, %v2595_v47  ;;  %548 = vst.msk [vmem:[#allocation2 + $0xa1] sm:$0xff] %vm525_vm0, %v511_v3  ;;  %v6008_v44 = vld [vmem:[#allocation2 + $0x91] sm:$0xff]  ;;  %v6010_v47 = vld [vmem:[#allocation2 + $0x99] sm:$0xff] }
 0x19b   : > { %2063 = vrot.lane.b32.xlu1 %v1973_v39, %s7283_s16  ;;  %v1837_v60 = vpop.permute.xlu2 %1836  ;;  %v6006_v39 = vld [vmem:[#allocation2 + $0x98] sm:$0xff] }
 0x19c   : > { %1173 = vrot.lane.b32.xlu0 %v1094_v20, %s7281_s26  ;;  %v2842_v59 = vmax.f32 %v2810_v50, 0.0  ;;  %v597_v50 = vadd.s32 248, %v5182_v2  ;;  %v6030_v3 = vld [vmem:[#allocation2 + $0x92] sm:$0xff] }
 0x19d   : > { %v1417_v21 = vpop.permute.xlu1 %1416 }
 0x19e   : > { %v1194_v7 = vpop.permute.xlu0 %1193  ;;  %2875 = vst.msk [vmem:[#allocation4 + $0x20] sm:$0xff] %vm2870_vm6, %v2842_v59  ;;  %v816_v59 = vmul.f32 %v5674_v24, %v5875_v23  ;;  %v596_v23 = vadd.s32 240, %v5182_v2 }
 0x19f   : > { %1265 = vst.msk [vmem:[#allocation3 + $0x258] sm:$0xff] %vm1239_vm11, %v1194_v7  ;;  %v2698_v32 = vpop.f32.mrf.mxu0 }
 0x1a0   : > { %1490 = vst.msk [vmem:[#allocation3 + $0x258] sm:$0xff] %vm1464_vm12, %v1419_v62  ;;  %v2775_v40 = vmul.f32 %v5729_v53, %v2698_v32 }
 0x1a1   : > { %1489 = vst.msk [vmem:[#allocation3 + $0x240] sm:$0xff] %vm1464_vm12, %v1417_v21  ;;  %2065 = vrot.lane.b32.xlu2 %v5912_v48, %s7283_s16 }
 0x1a2   : > { %v2811_v43 = vadd.f32 %v5742_v56, %v2775_v40  ;;  %848 = vst.msk [vmem:[#allocation3 + $0x270] sm:$0xff] %vm525_vm0, %v816_v59  ;;  %v512_v59 = vld [vmem:[%s5189_s25 + $0x98] sm:$0xff] }
 0x1a3   : > { %1398 = vrot.lane.b32.xlu1 %v5818_v9, %s7287_s27  ;;  %v2060_v17 = vpop.permute.xlu2 %2059  ;;  %v5975_v9 = vld [vmem:[#allocation2 + $0xfa] sm:$0xff]  ;;  %549 = vst.msk [vmem:[#allocation2 + $0xa9] sm:$0xff] %vm525_vm0, %v512_v59 }
 0x1a4   : > { %1396 = vrot.lane.b32.xlu0 %v1318_v57, %s7287_s27  ;;  %v2843_v13 = vmax.f32 %v2811_v43, 0.0  ;;  %v2392_v46 = vmul.f32 %v5975_v9, %v5871_v8  ;;  %v524_v8 = vld [vmem:[%s5189_s25 + $0xf8] sm:$0xff]  ;;  %v629_v57 = vand.u32 15, %v597_v50 }
 0x1a5   : > { %v1612_v61 = vpop.permute.xlu1 %1611  ;;  %561 = vst.msk [vmem:[#allocation2 + $0x109] sm:$0xff] %vm525_vm0, %v524_v8  ;;  %v6058_v8 = vld [vmem:[#allocation2 + $0x100] sm:$0xff] }
 0x1a6   : > { %v1610_v12 = vpop.permute.xlu0 %1609  ;;  %2876 = vst.msk [vmem:[#allocation4 + $0x28] sm:$0xff] %vm2870_vm6, %v2843_v13  ;;  %vm725_vm14 = vcmp.lt.s32.totalorder %v629_v57, 15  ;;  %v6070_v57 = vld [vmem:[#allocation2 + $0x101] sm:$0xff] }
 0x1a7   : > { %1682 = vst.msk [vmem:[#allocation3 + $0x240] sm:$0xff] %vm1657_vm2, %v1610_v12  ;;  %v628_v12 = vand.u32 15, %v596_v23 }
 0x1a8   : > { %1683 = vst.msk [vmem:[#allocation3 + $0x258] sm:$0xff] %vm1657_vm2, %v1612_v61 }
 0x1a9   : > { %1908 = vst.msk [vmem:[#allocation3 + $0x258] sm:$0xff] %vm1882_vm3, %v1837_v60  ;;  %2256 = vrot.lane.b32.xlu2 %v5963_v14, %s7284_s30  ;;  %v6022_v60 = vld [vmem:[#allocation2 + $0x9a] sm:$0xff]  ;;  %vm660_vm15 = vcmp.gt.s32.totalorder %v628_v12, 0  ;;  %v595_v12 = vadd.s32 232, %v5182_v2 }
 0x1aa   : > { %v2380_v43 = vmul.f32 %v6022_v60, %v5922_v25  ;;  %v6042_v25 = vsel %vm725_vm14, 1.0, %v5022_v1 }
 0x1ab   : > { %1589 = vrot.lane.b32.xlu1 %v5820_v4, %s7282_s17  ;;  %v1395_v62 = vpop.permute.xlu2 %1394 }
 0x1ac   : > { %2258 = vrot.lane.b32.xlu0 %v5966_v45, %s7284_s30  ;;  %v6081_v23 = vld [vmem:[#allocation2 + $0x109] sm:$0xff] }
 0x1ad   : > { %v1835_v15 = vpop.permute.xlu1 %1834 }
 0x1ae   : > { %v945_v26 = vpop.permute.xlu0 %944  ;;  %1907 = vst.msk [vmem:[#allocation3 + $0x240] sm:$0xff] %vm1882_vm3, %v1835_v15 }
 0x1af   : > { %1028 = vst.msk [vmem:[#allocation3 + $0x138] sm:$0xff] %vm1014_vm10, %v945_v26 }
 0x1b0   : > { %2132 = vst.msk [vmem:[#allocation3 + $0x240] sm:$0xff] %vm2107_vm4, %v2060_v17 }
 0x1b1   : > { %1591 = vrot.lane.b32.xlu2 %v5835_v22, %s7282_s17 }
 0x1b3   : > { %2483 = vrot.lane.b32.xlu1 %v2392_v46, %s7285_s23  ;;  %v1586_v63 = vpop.permute.xlu2 %1585  ;;  %v1110_v46 = vmul.f32 %v5975_v9, %v6042_v25 }
 0x1b4   : > { %2481 = vrot.lane.b32.xlu0 %v5981_v27, %s7285_s23 }
 0x1b5   : > { %v1170_v42 = vpop.permute.xlu1 %1169 }
 0x1b6   : > { %v1168_v11 = vpop.permute.xlu0 %1167  ;;  %1253 = vst.msk [vmem:[#allocation3 + $0x138] sm:$0xff] %vm1239_vm11, %v1170_v42  ;;  %v6056_v42 = vsel %vm660_vm15, 1.0, %v5022_v1 }
 0x1b7   : > { %1252 = vst.msk [vmem:[#allocation3 + $0x120] sm:$0xff] %vm1239_vm11, %v1168_v11  ;;  %v1334_v50 = vmul.f32 %v6058_v8, %v6056_v42 }
 0x1b8   : > { %1478 = vst.msk [vmem:[#allocation3 + $0x138] sm:$0xff] %vm1464_vm12, %v1395_v62 }
 0x1b9   : > { %1814 = vrot.lane.b32.xlu2 %v5838_v28, %s7288_s20 }
 0x1bb   : > { %2039 = vrot.lane.b32.xlu1 %v1961_v29, %s7283_s16  ;;  %v2480_v36 = vpop.permute.xlu2 %2479 }
 0x1bc   : > { %1816 = vrot.lane.b32.xlu0 %v1737_v51, %s7288_s20 }
 0x1bd   : > { %v1393_v20 = vpop.permute.xlu1 %1392 }
 0x1be   : > { %v2062_v38 = vpop.permute.xlu0 %2061  ;;  %1477 = vst.msk [vmem:[#allocation3 + $0x120] sm:$0xff] %vm1464_vm12, %v1393_v20 }
 0x1bf   : > { %2133 = vst.msk [vmem:[#allocation3 + $0x258] sm:$0xff] %vm2107_vm4, %v2062_v38 }
 0x1c0   : > { %1670 = vst.msk [vmem:[#allocation3 + $0x120] sm:$0xff] %vm1657_vm2, %v1586_v63 }
 0x1c1   : > { %2041 = vrot.lane.b32.xlu2 %v6006_v39, %s7283_s16 }
 0x1c3   : > { %2234 = vrot.lane.b32.xlu1 %v6010_v47, %s7284_s30  ;;  %v2036_v7 = vpop.permute.xlu2 %2035 }
 0x1c4   : > { %2232 = vrot.lane.b32.xlu0 %v6008_v44, %s7284_s30 }
 0x1c5   : > { %v2255_v33 = vpop.permute.xlu1 %2254 }
 0x1c6   : > { %v2253_v21 = vpop.permute.xlu0 %2252  ;;  %v2701_v32 = vpop.f32.mrf.mxu0  ;;  %2326 = vst.msk [vmem:[#allocation3 + $0x258] sm:$0xff] %vm2300_vm5, %v2255_v33 }
 0x1c7   : > { %2325 = vst.msk [vmem:[#allocation3 + $0x240] sm:$0xff] %vm2300_vm5, %v2253_v21  ;;  %v2776_v40 = vmul.f32 %v5729_v53, %v2701_v32  ;;  %v6068_v32 = vld [vmem:[#allocation2 + $0x108] sm:$0xff] }
 0x1c8   : > { %2551 = vst.msk [vmem:[#allocation3 + $0x258] sm:$0xff] %vm2525_vm7, %v2480_v36 }
 0x1c9   : > { %v2812_v24 = vadd.f32 %v5742_v56, %v2776_v40  ;;  %2457 = vrot.lane.b32.xlu2 %v6030_v3, %s7285_s23 }
 0x1cb   : > { %v2844_v13 = vmax.f32 %v2812_v24, 0.0  ;;  %978 = vrot.lane.b32.xlu1 %v5963_v14, %s7286_s0  ;;  %v2231_v17 = vpop.permute.xlu2 %2230  ;;  %v772_v24 = vld [vmem:[#allocation2 + $0x70] sm:$0xff] }
 0x1cc   : > { %2459 = vrot.lane.b32.xlu0 %v2380_v43, %s7285_s23  ;;  %v773_v43 = vld [vmem:[#allocation2 + $0x78] sm:$0xff] }
 0x1cd   : > { %2877 = vst.msk [vmem:[#allocation4 + $0x30] sm:$0xff] %vm2870_vm6, %v2844_v13  ;;  %v2478_v26 = vpop.permute.xlu1 %2477  ;;  %v804_v13 = vmul.f32 %v772_v24, %v5942_v52 }
 0x1ce   : > { %v1588_v61 = vpop.permute.xlu0 %1587  ;;  %v2703_v62 = vpop.f32.mrf.mxu0  ;;  %2550 = vst.msk [vmem:[#allocation3 + $0x240] sm:$0xff] %vm2525_vm7, %v2478_v26 }
 0x1cf   : > { %1671 = vst.msk [vmem:[#allocation3 + $0x138] sm:$0xff] %vm1657_vm2, %v1588_v61  ;;  %v2777_v15 = vmul.f32 %v5729_v53, %v2703_v62  ;;  %v2583_v51 = vld [vmem:[#allocation3 + $0x258] sm:$0xff]  ;;  %v6095_v61 = vld [vmem:[#allocation2 + $0x10a] sm:$0xff]  ;;  %v627_v62 = vand.u32 15, %v595_v12 }
 0x1d0   : > { %837 = vst.msk [vmem:[#allocation3 + $0x168] sm:$0xff] %vm525_vm0, %v773_v43  ;;  %v1946_v43 = vld [vmem:[#allocation2 + $0x118] sm:$0xff] }
 0x1d1   : > { %v2813_v63 = vadd.f32 %v5742_v56, %v2777_v15  ;;  %980 = vrot.lane.b32.xlu2 %v5966_v45, %s7286_s0  ;;  %836 = vst.msk [vmem:[#allocation3 + $0x150] sm:$0xff] %vm525_vm0, %v804_v13  ;;  %vm723_vm1 = vcmp.lt.s32.totalorder %v627_v62, 15 }
 0x1d3   : > { %v2845_v11 = vmax.f32 %v2813_v63, 0.0  ;;  %1205 = vrot.lane.b32.xlu1 %v1110_v46, %s7281_s26  ;;  %v971_v29 = vpop.permute.xlu2 %970  ;;  %v1753_v46 = vmul.f32 %v6095_v61, %v6042_v25  ;;  %v6111_v63 = vsel %vm723_vm1, 1.0, %v5022_v1 }
 0x1d4   : > { %1203 = vrot.lane.b32.xlu0 %v5981_v27, %s7281_s26  ;;  %1041 = vst.msk [vmem:[#allocation3 + $0x270] sm:$0xff] %vm1014_vm10, %v971_v29 }
 0x1d5   : > { %2878 = vst.msk [vmem:[#allocation4 + $0x38] sm:$0xff] %vm2870_vm6, %v2845_v11  ;;  %v1813_v38 = vpop.permute.xlu1 %1812  ;;  %v2582_v20 = vld [vmem:[#allocation3 + $0x240] sm:$0xff]  ;;  %v1945_v11 = vld [vmem:[#allocation2 + $0x110] sm:$0xff] }
 0x1d6   : > { %v1811_v36 = vpop.permute.xlu0 %1810  ;;  %v2602_v21 = vpack.c.bf16 %v2583_v51, %v2582_v20  ;;  %1896 = vst.msk [vmem:[#allocation3 + $0x138] sm:$0xff] %vm1882_vm3, %v1813_v38 }
 0x1d7   : > { %1895 = vst.msk [vmem:[#allocation3 + $0x120] sm:$0xff] %vm1882_vm3, %v1811_v36 }
 0x1d8   : > { %2120 = vst.msk [vmem:[#allocation3 + $0x120] sm:$0xff] %vm2107_vm4, %v2036_v7  ;;  %4680 = vmatmul.msk.bf16.vlgmr.msra.gmra.mxu2 %vm2621_vm8, %v2602_v21  ;;  %v1108_v21 = vmul.f32 %v5799_v16, %v6111_v63 }
 0x1d9   : > { %1428 = vrot.lane.b32.xlu2 %v1334_v50, %s7287_s27 }
 0x1db   : > { %1621 = vrot.lane.b32.xlu1 %v6070_v57, %s7282_s17  ;;  %v1198_v7 = vpop.permute.xlu2 %1197 }
 0x1dc   : > { %1430 = vrot.lane.b32.xlu0 %v6068_v32, %s7287_s27 }
 0x1dd   : > { %v2229_v40 = vpop.permute.xlu1 %2228 }
 0x1de   : > { %v2038_v33 = vpop.permute.xlu0 %2037  ;;  %2313 = vst.msk [vmem:[#allocation3 + $0x120] sm:$0xff] %vm2300_vm5, %v2229_v40  ;;  %v1977_v40 = vmul.f32 %v1945_v11, %v6056_v42 }
 0x1df   : > { %2121 = vst.msk [vmem:[#allocation3 + $0x138] sm:$0xff] %vm2107_vm4, %v2038_v33 }
 0x1e0   : > { %2314 = vst.msk [vmem:[#allocation3 + $0x138] sm:$0xff] %vm2300_vm5, %v2231_v17  ;;  %v513_v17 = vld [vmem:[%s5189_s25 + $0xa0] sm:$0xff] }
 0x1e1   : > { %1623 = vrot.lane.b32.xlu2 %v6081_v23, %s7282_s17  ;;  %550 = vst.msk [vmem:[#allocation2 + $0xb1] sm:$0xff] %vm525_vm0, %v513_v17 }
 0x1e3   : > { %976 = vrot.lane.b32.xlu1 %v5777_v35, %s7286_s0  ;;  %v1614_v52 = vpop.permute.xlu2 %1613  ;;  %v594_v35 = vadd.s32 224, %v5182_v2 }
 0x1e4   : > { %974 = vrot.lane.b32.xlu0 %v5775_v30, %s7286_s0  ;;  %v6102_v30 = vld [vmem:[#allocation2 + $0x102] sm:$0xff] }
 0x1e5   : > { %v2456_v15 = vpop.permute.xlu1 %2455  ;;  %v626_v38 = vand.u32 15, %v594_v35  ;;  %v6138_v35 = vld [vmem:[#allocation2 + $0xa9] sm:$0xff] }
 0x1e6   : > { %v2454_v26 = vpop.permute.xlu0 %2453  ;;  %2539 = vst.msk [vmem:[#allocation3 + $0x138] sm:$0xff] %vm2525_vm7, %v2456_v15 }
 0x1e7   : > { %2538 = vst.msk [vmem:[#allocation3 + $0x120] sm:$0xff] %vm2525_vm7, %v2454_v26  ;;  %vm658_vm9 = vcmp.gt.s32.totalorder %v626_v38, 0 }
 0x1e8   : > { %v6127_v16 = vsel %vm658_vm9, 1.0, %v5022_v1 }
 0x1e9   : > { %1846 = vrot.lane.b32.xlu2 %v6102_v30, %s7288_s20  ;;  %v1332_v15 = vmul.f32 %v5924_v5, %v6127_v16 }
 0x1eb   : > { %1199 = vrot.lane.b32.xlu1 %v5791_v41, %s7281_s26  ;;  %v949_v51 = vpop.permute.xlu2 %948 }
 0x1ec   : > { %1848 = vrot.lane.b32.xlu0 %v1753_v46, %s7288_s20  ;;  %1030 = vst.msk [vmem:[#allocation3 + $0x168] sm:$0xff] %vm1014_vm10, %v949_v51  ;;  %v6135_v46 = vld [vmem:[#allocation2 + $0xa1] sm:$0xff]  ;;  %v587_v51 = vadd.s32 168, %v5182_v2 }
 0x1ed   : > { %v1196_v20 = vpop.permute.xlu1 %1195  ;;  %v2571_v59 = vld [vmem:[#allocation3 + $0x138] sm:$0xff] }
 0x1ee   : > { %v973_v29 = vpop.permute.xlu0 %972  ;;  %v2570_v36 = vld [vmem:[#allocation3 + $0x120] sm:$0xff]  ;;  %v2706_v50 = vpop.f32.mrf.mxu0  ;;  %1266 = vst.msk [vmem:[#allocation3 + $0x270] sm:$0xff] %vm1239_vm11, %v1196_v20  ;;  %v619_v38 = vand.u32 15, %v587_v51  ;;  %v6179_v51 = vld [vmem:[#allocation2 + $0xb8] sm:$0xff] }
 0x1ef   : > { %1042 = vst.msk [vmem:[#allocation3 + $0x288] sm:$0xff] %vm1014_vm10, %v973_v29  ;;  %v2778_v41 = vmul.f32 %v5729_v53, %v2706_v50  ;;  %v2596_v33 = vpack.c.bf16 %v2571_v59, %v2570_v36  ;;  %v2170_v50 = vld [vmem:[#allocation2 + $0x111] sm:$0xff]  ;;  %v2171_v59 = vld [vmem:[#allocation2 + $0x119] sm:$0xff] }
 0x1f0   : > { %1267 = vst.msk [vmem:[#allocation3 + $0x288] sm:$0xff] %vm1239_vm11, %v1198_v7  ;;  %vm715_vm13 = vcmp.lt.s32.totalorder %v619_v38, 15 }
 0x1f1   : > { %v2814_v24 = vadd.f32 %v5742_v56, %v2778_v41  ;;  %4674 = vmatmul.msk.bf16.gmra.mxu0 %vm2621_vm8, %v2596_v33  ;;  %1201 = vrot.lane.b32.xlu2 %v1108_v21, %s7281_s26  ;;  %v6156_v21 = vsel %vm715_vm13, 1.0, %v5022_v1  ;;  %v6158_v41 = vld [vmem:[#allocation2 + $0xaa] sm:$0xff]  ;;  %845 = vst.msk [vmem:[#allocation3 + $0x228] sm:$0xff] %vm525_vm0, %v6179_v51 }
 0x1f3   : > { %v2846_v13 = vmax.f32 %v2814_v24, 0.0  ;;  %2073 = vrot.lane.b32.xlu1 %v1946_v43, %s7283_s16  ;;  %v1172_v7 = vpop.permute.xlu2 %1171  ;;  %v1100_v24 = vmul.f32 %v6158_v41, %v6156_v21 }
 0x1f4   : > { %2071 = vrot.lane.b32.xlu0 %v1977_v40, %s7283_s16 }
 0x1f5   : > { %2879 = vst.msk [vmem:[#allocation4 + $0x40] sm:$0xff] %vm2870_vm6, %v2846_v13  ;;  %v1423_v17 = vpop.permute.xlu1 %1422  ;;  %v586_v13 = vadd.s32 160, %v5182_v2 }
 0x1f6   : > { %v1421_v12 = vpop.permute.xlu0 %1420  ;;  %v2708_v62 = vpop.f32.mrf.mxu0  ;;  %1492 = vst.msk [vmem:[#allocation3 + $0x288] sm:$0xff] %vm1464_vm12, %v1423_v17 }
 0x1f7   : > { %1491 = vst.msk [vmem:[#allocation3 + $0x270] sm:$0xff] %vm1464_vm12, %v1421_v12  ;;  %v2779_v26 = vmul.f32 %v5729_v53, %v2708_v62  ;;  %v618_v62 = vand.u32 15, %v586_v13 }
 0x1f8   : > { %1684 = vst.msk [vmem:[#allocation3 + $0x270] sm:$0xff] %vm1657_vm2, %v1614_v52 }
 0x1f9   : > { %v2815_v11 = vadd.f32 %v5742_v56, %v2779_v26  ;;  %958 = vrot.lane.b32.xlu2 %v6135_v46, %s7286_s0  ;;  %vm650_vm14 = vcmp.gt.s32.totalorder %v618_v62, 0 }
 0x1fb   : > { %v2847_v29 = vmax.f32 %v2815_v11, 0.0  ;;  %1424 = vrot.lane.b32.xlu1 %v1332_v15, %s7287_s27  ;;  %v2066_v52 = vpop.permute.xlu2 %2065  ;;  %v2363_v11 = vld [vmem:[#allocation2 + $0x112] sm:$0xff] }
 0x1fc   : > { %960 = vrot.lane.b32.xlu0 %v6138_v35, %s7286_s0 }
 0x1fd   : > { %2880 = vst.msk [vmem:[#allocation4 + $0x48] sm:$0xff] %vm2870_vm6, %v2847_v29  ;;  %v947_v20 = vpop.permute.xlu1 %946 }
 0x1fe   : > { %v1616_v36 = vpop.permute.xlu0 %1615  ;;  %1029 = vst.msk [vmem:[#allocation3 + $0x150] sm:$0xff] %vm1014_vm10, %v947_v20 }
 0x1ff   : > { %1685 = vst.msk [vmem:[#allocation3 + $0x288] sm:$0xff] %vm1657_vm2, %v1616_v36 }
 0x200   : > { %1254 = vst.msk [vmem:[#allocation3 + $0x150] sm:$0xff] %vm1239_vm11, %v1172_v7  ;;  %v2364_v7 = vld [vmem:[#allocation2 + $0x11a] sm:$0xff] }
 0x201   : > { %1426 = vrot.lane.b32.xlu2 %v5912_v48, %s7287_s27  ;;  %v6164_v48 = vld [vmem:[#allocation2 + $0xa2] sm:$0xff]  ;;  %v2396_v15 = vmul.f32 %v2364_v7, %v6042_v25  ;;  %v6188_v25 = vld [vmem:[#allocation2 + $0xb0] sm:$0xff]  ;;  %v820_v7 = vmul.f32 %v5924_v5, %v6056_v42 }
 0x203   : > { %2266 = vrot.lane.b32.xlu1 %v2171_v59, %s7284_s30  ;;  %v2257_v33 = vpop.permute.xlu2 %2256  ;;  %852 = vst.msk [vmem:[#allocation3 + $0x2d0] sm:$0xff] %vm525_vm0, %v820_v7 }
 0x204   : > { %2264 = vrot.lane.b32.xlu0 %v2170_v50, %s7284_s30  ;;  %v583_v50 = vadd.s32 136, %v5182_v2 }
 0x205   : > { %v1841_v43 = vpop.permute.xlu1 %1840 }
 0x206   : > { %v1839_v40 = vpop.permute.xlu0 %1838  ;;  %1910 = vst.msk [vmem:[#allocation3 + $0x288] sm:$0xff] %vm1882_vm3, %v1841_v43 }
 0x207   : > { %1909 = vst.msk [vmem:[#allocation3 + $0x270] sm:$0xff] %vm1882_vm3, %v1839_v40 }
 0x208   : > { %2135 = vst.msk [vmem:[#allocation3 + $0x288] sm:$0xff] %vm2107_vm4, %v2066_v52 }
 0x209   : > { %1183 = vrot.lane.b32.xlu2 %v6164_v48, %s7281_s26 }
 0x20b   : > { %1617 = vrot.lane.b32.xlu1 %v5963_v14, %s7282_s17  ;;  %v1592_v12 = vpop.permute.xlu2 %1591  ;;  %v6186_v14 = vsel %vm650_vm14, 1.0, %v5022_v1 }
 0x20c   : > { %1185 = vrot.lane.b32.xlu0 %v1100_v24, %s7281_s26  ;;  %v1324_v38 = vmul.f32 %v6188_v25, %v6186_v14  ;;  %v615_v24 = vand.u32 15, %v583_v50 }
 0x20d   : > { %v2064_v26 = vpop.permute.xlu1 %2063 }
 0x20e   : > { %v1174_v17 = vpop.permute.xlu0 %1173  ;;  %2134 = vst.msk [vmem:[#allocation3 + $0x270] sm:$0xff] %vm2107_vm4, %v2064_v26  ;;  %vm711_vm15 = vcmp.lt.s32.totalorder %v615_v24, 15  ;;  %v6227_v26 = vld [vmem:[#allocation2 + $0xb1] sm:$0xff]  ;;  %v787_v24 = vld [vmem:[#allocation2 + $0xe8] sm:$0xff] }
 0x20f   : > { %1255 = vst.msk [vmem:[#allocation3 + $0x168] sm:$0xff] %vm1239_vm11, %v1174_v17 }
 0x210   : > { %2327 = vst.msk [vmem:[#allocation3 + $0x270] sm:$0xff] %vm2300_vm5, %v2257_v33 }
 0x211   : > { %1619 = vrot.lane.b32.xlu2 %v5966_v45, %s7282_s17  ;;  %851 = vst.msk [vmem:[#allocation3 + $0x2b8] sm:$0xff] %vm525_vm0, %v787_v24  ;;  %v6347_v24 = vld [vmem:[#allocation2 + $0xca] sm:$0xff] }
 0x213   : > { %2491 = vrot.lane.b32.xlu1 %v2396_v15, %s7285_s23  ;;  %v1815_v29 = vpop.permute.xlu2 %1814 }
 0x214   : > { %2489 = vrot.lane.b32.xlu0 %v2363_v11, %s7285_s23 }
 0x215   : > { %v1399_v36 = vpop.permute.xlu1 %1398 }
 0x216   : > { %v1397_v52 = vpop.permute.xlu0 %1396  ;;  %1480 = vst.msk [vmem:[#allocation3 + $0x168] sm:$0xff] %vm1464_vm12, %v1399_v36 }
 0x217   : > { %1479 = vst.msk [vmem:[#allocation3 + $0x150] sm:$0xff] %vm1464_vm12, %v1397_v52  ;;  %v2711_v45 = vpop.f32.mrf.mxu0 }
 0x218   : > { %v2780_v20 = vmul.f32 %v5729_v53, %v2711_v45  ;;  %1673 = vst.msk [vmem:[#allocation3 + $0x168] sm:$0xff] %vm1657_vm2, %v1592_v12  ;;  %v6240_v45 = vld [vmem:[#allocation2 + $0xb9] sm:$0xff] }
 0x219   : > { %950 = vrot.lane.b32.xlu2 %v5820_v4, %s7286_s0  ;;  %v1751_v4 = vmul.f32 %v5975_v9, %v6111_v63  ;;  %v6220_v9 = vsel %vm711_vm15, 1.0, %v5022_v1 }
 0x21a   : > { %v2816_v59 = vadd.f32 %v5742_v56, %v2780_v20 }
 0x21b   : > { %1408 = vrot.lane.b32.xlu1 %v1324_v38, %s7287_s27  ;;  %v2042_v40 = vpop.permute.xlu2 %2041 }
 0x21c   : > { %952 = vrot.lane.b32.xlu0 %v5835_v22, %s7286_s0  ;;  %v2848_v33 = vmax.f32 %v2816_v59, 0.0 }
 0x21d   : > { %v1590_v13 = vpop.permute.xlu1 %1589 }
 0x21e   : > { %v2259_v43 = vpop.permute.xlu0 %2258  ;;  %2881 = vst.msk [vmem:[#allocation4 + $0x50] sm:$0xff] %vm2870_vm6, %v2848_v33 }
 0x21f   : > { %2328 = vst.msk [vmem:[#allocation3 + $0x288] sm:$0xff] %vm2300_vm5, %v2259_v43  ;;  %v2713_v12 = vpop.f32.mrf.mxu0 }
 0x220   : > { %1672 = vst.msk [vmem:[#allocation3 + $0x150] sm:$0xff] %vm1657_vm2, %v1590_v13  ;;  %v2781_v22 = vmul.f32 %v5729_v53, %v2713_v12 }
 0x221   : > { %1897 = vst.msk [vmem:[#allocation3 + $0x150] sm:$0xff] %vm1882_vm3, %v1815_v29  ;;  %1410 = vrot.lane.b32.xlu2 %v6179_v51, %s7287_s27 }
 0x222   : > { %v2817_v17 = vadd.f32 %v5742_v56, %v2781_v22  ;;  %v1096_v56 = vmul.f32 %v5827_v10, %v6220_v9 }
 0x223   : > { %1844 = vrot.lane.b32.xlu1 %v1751_v4, %s7288_s20  ;;  %v2458_v53 = vpop.permute.xlu2 %2457  ;;  %v6278_v4 = vld [vmem:[#allocation2 + $0xa8] sm:$0xff] }
 0x224   : > { %1842 = vrot.lane.b32.xlu0 %v5981_v27, %s7288_s20  ;;  %v2849_v5 = vmax.f32 %v2817_v17, 0.0  ;;  %v582_v27 = vadd.s32 128, %v5182_v2  ;;  %843 = vst.msk [vmem:[#allocation3 + $0x1f8] sm:$0xff] %vm525_vm0, %v6278_v4 }
 0x225   : > { %v2484_v62 = vpop.permute.xlu1 %2483 }
 0x226   : > { %v2482_v42 = vpop.permute.xlu0 %2481  ;;  %2882 = vst.msk [vmem:[#allocation4 + $0x58] sm:$0xff] %vm2870_vm6, %v2849_v5  ;;  %v614_v11 = vand.u32 15, %v582_v27 }
 0x227   : > { %2552 = vst.msk [vmem:[#allocation3 + $0x270] sm:$0xff] %vm2525_vm7, %v2482_v42 }
 0x228   : > { %2553 = vst.msk [vmem:[#allocation3 + $0x288] sm:$0xff] %vm2525_vm7, %v2484_v62  ;;  %vm646_vm1 = vcmp.gt.s32.totalorder %v614_v11, 0 }
 0x229   : > { %1175 = vrot.lane.b32.xlu2 %v5838_v28, %s7281_s26  ;;  %v1975_v28 = vmul.f32 %v6058_v8, %v6127_v16  ;;  %v6250_v20 = vsel %vm646_vm1, 1.0, %v5022_v1  ;;  %v786_v8 = vld [vmem:[#allocation2 + $0xe0] sm:$0xff] }
 0x22a   : > { %v818_v33 = vmul.f32 %v786_v8, %v6127_v16  ;;  %v1320_v43 = vmul.f32 %v5989_v34, %v6250_v20  ;;  %v6267_v34 = vld [vmem:[#allocation2 + $0xba] sm:$0xff] }
 0x22b   : > { %1601 = vrot.lane.b32.xlu1 %v6227_v26, %s7282_s17  ;;  %v981_v15 = vpop.permute.xlu2 %980  ;;  %v1743_v12 = vmul.f32 %v6267_v34, %v6156_v21 }
 0x22c   : > { %1177 = vrot.lane.b32.xlu0 %v1096_v56, %s7281_s26  ;;  %1046 = vst.msk [vmem:[#allocation3 + $0x2e8] sm:$0xff] %vm1014_vm10, %v981_v15  ;;  %v2394_v15 = vmul.f32 %v6095_v61, %v6111_v63  ;;  %v1739_v61 = vmul.f32 %v6022_v60, %v6220_v9  ;;  %v6314_v63 = vld [vmem:[#allocation2 + $0xc1] sm:$0xff] }
 0x22d   : > { %v2040_v10 = vpop.permute.xlu1 %2039  ;;  %850 = vst.msk [vmem:[#allocation3 + $0x2a0] sm:$0xff] %vm525_vm0, %v818_v33 }
 0x22e   : > { %v1817_v29 = vpop.permute.xlu0 %1816  ;;  %v2584_v52 = vld [vmem:[#allocation3 + $0x270] sm:$0xff]  ;;  %2122 = vst.msk [vmem:[#allocation3 + $0x150] sm:$0xff] %vm2107_vm4, %v2040_v10  ;;  %v6325_v10 = vld [vmem:[%s7235_s2] ss:$0 sm:$0xff] }
 0x22f   : > { %1898 = vst.msk [vmem:[#allocation3 + $0x168] sm:$0xff] %vm1882_vm3, %v1817_v29  ;;  %v2585_v36 = vld [vmem:[#allocation3 + $0x288] sm:$0xff] }
 0x230   : > { %2123 = vst.msk [vmem:[#allocation3 + $0x168] sm:$0xff] %vm2107_vm4, %v2042_v40  ;;  %v2603_v38 = vpack.c.bf16 %v2585_v36, %v2584_v52 }
 0x231   : > { %1603 = vrot.lane.b32.xlu2 %v6240_v45, %s7282_s17 }
 0x232   : > { %4681 = vmatmul.msk.bf16.gmra.mxu2 %vm2621_vm8, %v2603_v38  ;;  %v6333_v38 = vld [vmem:[%s7236_s3] ss:$0 sm:$0xff] }
 0x233   : > { %2069 = vrot.lane.b32.xlu1 %v6068_v32, %s7283_s16  ;;  %v1429_v50 = vpop.permute.xlu2 %1428  ;;  %v6258_v32 = vld [vmem:[#allocation2 + $0xb2] sm:$0xff] }
 0x234   : > { %2067 = vrot.lane.b32.xlu0 %v1975_v28, %s7283_s16 }
 0x235   : > { %v2235_v40 = vpop.permute.xlu1 %2234 }
 0x236   : > { %v2233_v59 = vpop.permute.xlu0 %2232  ;;  %2316 = vst.msk [vmem:[#allocation3 + $0x168] sm:$0xff] %vm2300_vm5, %v2235_v40  ;;  %v774_v40 = vld [vmem:[#allocation2 + $0x80] sm:$0xff] }
 0x237   : > { %2315 = vst.msk [vmem:[#allocation3 + $0x150] sm:$0xff] %vm2300_vm5, %v2233_v59  ;;  %v6339_v59 = vld [vmem:[#allocation2 + $0xc9] sm:$0xff] }
 0x238   : > { %2540 = vst.msk [vmem:[#allocation3 + $0x150] sm:$0xff] %vm2525_vm7, %v2458_v53 }
 0x239   : > { %1400 = vrot.lane.b32.xlu2 %v1320_v43, %s7287_s27 }
 0x23b   : > { %1826 = vrot.lane.b32.xlu1 %v6258_v32, %s7288_s20  ;;  %v1624_v16 = vpop.permute.xlu2 %1623 }
 0x23c   : > { %1402 = vrot.lane.b32.xlu0 %v6006_v39, %s7287_s27 }
 0x23d   : > { %v979_v7 = vpop.permute.xlu1 %978 }
 0x23e   : > { %v2460_v13 = vpop.permute.xlu0 %2459  ;;  %1045 = vst.msk [vmem:[#allocation3 + $0x2d0] sm:$0xff] %vm1014_vm10, %v979_v7 }
 0x23f   : > { %2541 = vst.msk [vmem:[#allocation3 + $0x168] sm:$0xff] %vm2525_vm7, %v2460_v13  ;;  %v2572_v39 = vld [vmem:[#allocation3 + $0x150] sm:$0xff]  ;;  %v806_v13 = vmul.f32 %v774_v40, %v6250_v20 }
 0x241   : > { %1828 = vrot.lane.b32.xlu2 %v1743_v12, %s7288_s20  ;;  %838 = vst.msk [vmem:[#allocation3 + $0x180] sm:$0xff] %vm525_vm0, %v806_v13  ;;  %v585_v13 = vadd.s32 152, %v5182_v2 }
 0x243   : > { %2262 = vrot.lane.b32.xlu1 %v6081_v23, %s7284_s30  ;;  %v1847_v22 = vpop.permute.xlu2 %1846  ;;  %v6290_v23 = vld [vmem:[#allocation2 + $0xa0] sm:$0xff] }
 0x244   : > { %2260 = vrot.lane.b32.xlu0 %v6070_v57, %s7284_s30  ;;  %v1967_v57 = vmul.f32 %v5857_v58, %v6186_v14  ;;  %v810_v62 = vmul.f32 %v6290_v23, %v6186_v14 }
 0x245   : > { %v1206_v53 = vpop.permute.xlu1 %1205 }
 0x246   : > { %v1204_v17 = vpop.permute.xlu0 %1203  ;;  %v2573_v5 = vld [vmem:[#allocation3 + $0x168] sm:$0xff]  ;;  %1271 = vst.msk [vmem:[#allocation3 + $0x2e8] sm:$0xff] %vm1239_vm11, %v1206_v53  ;;  %v775_v53 = vld [vmem:[#allocation2 + $0x88] sm:$0xff] }
 0x247   : > { %1270 = vst.msk [vmem:[#allocation3 + $0x2d0] sm:$0xff] %vm1239_vm11, %v1204_v17  ;;  %v2597_v42 = vpack.c.bf16 %v2573_v5, %v2572_v39  ;;  %v2386_v17 = vmul.f32 %v6347_v24, %v6156_v21  ;;  %v6357_v5 = vld [vmem:[#allocation2 + $0xc2] sm:$0xff] }
 0x248   : > { %1495 = vst.msk [vmem:[#allocation3 + $0x2d0] sm:$0xff] %vm1464_vm12, %v1429_v50  ;;  %v1963_v50 = vmul.f32 %v6290_v23, %v6250_v20 }
 0x249   : > { %4675 = vmatmul.msk.bf16.gmra.mxu0 %vm2621_vm8, %v2597_v42  ;;  %1593 = vrot.lane.b32.xlu2 %v6008_v44, %s7282_s17  ;;  %842 = vst.msk [vmem:[#allocation3 + $0x1e0] sm:$0xff] %vm525_vm0, %v810_v62 }
 0x24a   : > { %839 = vst.msk [vmem:[#allocation3 + $0x198] sm:$0xff] %vm525_vm0, %v775_v53 }
 0x24b   : > { %2051 = vrot.lane.b32.xlu1 %v1967_v57, %s7283_s16  ;;  %v1202_v56 = vpop.permute.xlu2 %1201 }
 0x24c   : > { %1595 = vrot.lane.b32.xlu0 %v6010_v47, %s7282_s17 }
 0x24d   : > { %v1622_v58 = vpop.permute.xlu1 %1621 }
 0x24e   : > { %v1431_v27 = vpop.permute.xlu0 %1430  ;;  %1688 = vst.msk [vmem:[#allocation3 + $0x2d0] sm:$0xff] %vm1657_vm2, %v1622_v58  ;;  %v589_v58 = vadd.s32 184, %v5182_v2 }
 0x24f   : > { %1496 = vst.msk [vmem:[#allocation3 + $0x2e8] sm:$0xff] %vm1464_vm12, %v1431_v27  ;;  %v2382_v27 = vmul.f32 %v6158_v41, %v6220_v9 }
 0x250   : > { %1689 = vst.msk [vmem:[#allocation3 + $0x2e8] sm:$0xff] %vm1657_vm2, %v1624_v16 }
 0x251   : > { %1913 = vst.msk [vmem:[#allocation3 + $0x2d0] sm:$0xff] %vm1882_vm3, %v1847_v22  ;;  %2053 = vrot.lane.b32.xlu2 %v5854_v49, %s7283_s16 }
 0x253   : > { %2487 = vrot.lane.b32.xlu1 %v2394_v15, %s7285_s23  ;;  %v959_v14 = vpop.permute.xlu2 %958 }
 0x254   : > { %2485 = vrot.lane.b32.xlu0 %v6102_v30, %s7285_s23  ;;  %1035 = vst.msk [vmem:[#allocation3 + $0x1e0] sm:$0xff] %vm1014_vm10, %v959_v14 }
 0x255   : > { %v977_v29 = vpop.permute.xlu1 %976 }
 0x256   : > { %v975_v11 = vpop.permute.xlu0 %974  ;;  %1044 = vst.msk [vmem:[#allocation3 + $0x2b8] sm:$0xff] %vm1014_vm10, %v977_v29  ;;  %v621_v29 = vand.u32 15, %v589_v58 }
 0x257   : > { %1043 = vst.msk [vmem:[#allocation3 + $0x2a0] sm:$0xff] %vm1014_vm10, %v975_v11 }
 0x258   : > { %1269 = vst.msk [vmem:[#allocation3 + $0x2b8] sm:$0xff] %vm1239_vm11, %v1202_v56  ;;  %vm717_vm9 = vcmp.lt.s32.totalorder %v621_v29, 15 }
 0x259   : > { %1818 = vrot.lane.b32.xlu2 %v6030_v3, %s7288_s20 }
 0x25b   : > { %2244 = vrot.lane.b32.xlu1 %v6314_v63, %s7284_s30  ;;  %v2746_v49 = vpop.f32.mrf.mxu2  ;;  %v1427_v30 = vpop.permute.xlu2 %1426 }
 0x25c   : > { %1820 = vrot.lane.b32.xlu0 %v1739_v61, %s7288_s20  ;;  %v2794_v52 = vmul.f32 %v6325_v10, %v2746_v49  ;;  %1494 = vst.msk [vmem:[#allocation3 + $0x2b8] sm:$0xff] %vm1464_vm12, %v1427_v30 }
 0x25d   : > { %v1200_v28 = vpop.permute.xlu1 %1199 }
 0x25e   : > { %v1849_v36 = vpop.permute.xlu0 %1848  ;;  %v2830_v8 = vadd.f32 %v6333_v38, %v2794_v52  ;;  %1268 = vst.msk [vmem:[#allocation3 + $0x2a0] sm:$0xff] %vm1239_vm11, %v1200_v28  ;;  %v588_v52 = vadd.s32 176, %v5182_v2 }
 0x25f   : > { %1914 = vst.msk [vmem:[#allocation3 + $0x2e8] sm:$0xff] %vm1882_vm3, %v1849_v36 }
 0x260   : > { %v2862_v33 = vmax.f32 %v2830_v8, 0.0  ;;  %v6394_v8 = vsel %vm717_vm9, 1.0, %v5022_v1 }
 0x261   : > { %2246 = vrot.lane.b32.xlu2 %v6339_v59, %s7284_s30 }
 0x262   : > { %2895 = vst.msk [vmem:[#allocation4 + $0xc0] sm:$0xff] %vm2870_vm6, %v2862_v33  ;;  %v620_v33 = vand.u32 15, %v588_v52  ;;  %v1938_v52 = vld [vmem:[#allocation2 + $0xd8] sm:$0xff] }
 0x263   : > { %2045 = vrot.lane.b32.xlu1 %v6278_v4, %s7283_s16  ;;  %v2748_v43 = vpop.f32.mrf.mxu2  ;;  %v1184_v16 = vpop.permute.xlu2 %1183 }
 0x264   : > { %2043 = vrot.lane.b32.xlu0 %v1963_v50, %s7283_s16  ;;  %v2795_v7 = vmul.f32 %v6325_v10, %v2748_v43  ;;  %1260 = vst.msk [vmem:[#allocation3 + $0x1e0] sm:$0xff] %vm1239_vm11, %v1184_v16  ;;  %v1102_v16 = vmul.f32 %v6267_v34, %v6394_v8  ;;  %vm652_vm13 = vcmp.gt.s32.totalorder %v620_v33, 0  ;;  %v2163_v33 = vld [vmem:[#allocation2 + $0xd9] sm:$0xff] }
 0x265   : > { %v2074_v39 = vpop.permute.xlu1 %2073 }
 0x266   : > { %v2072_v12 = vpop.permute.xlu0 %2071  ;;  %v2831_v22 = vadd.f32 %v6333_v38, %v2795_v7  ;;  %2139 = vst.msk [vmem:[#allocation3 + $0x2e8] sm:$0xff] %vm2107_vm4, %v2074_v39  ;;  %v6409_v7 = vsel %vm652_vm13, 1.0, %v5022_v1 }
 0x267   : > { %2138 = vst.msk [vmem:[#allocation3 + $0x2d0] sm:$0xff] %vm2107_vm4, %v2072_v12  ;;  %v1294_v12 = vld [vmem:[#allocation2 + $0xc0] sm:$0xff] }
 0x268   : > { %v2863_v20 = vmax.f32 %v2831_v22, 0.0  ;;  %v617_v22 = vand.u32 15, %v585_v13  ;;  %v1326_v53 = vmul.f32 %v1294_v12, %v6409_v7 }
 0x269   : > { %2469 = vrot.lane.b32.xlu2 %v6357_v5, %s7285_s23 }
 0x26a   : > { %2896 = vst.msk [vmem:[#allocation4 + $0xc8] sm:$0xff] %vm2870_vm6, %v2863_v20  ;;  %vm713_vm14 = vcmp.lt.s32.totalorder %v617_v22, 15 }
 0x26b   : > { %2236 = vrot.lane.b32.xlu1 %v6135_v46, %s7284_s30  ;;  %v1620_v42 = vpop.permute.xlu2 %1619 }
 0x26c   : > { %2471 = vrot.lane.b32.xlu0 %v2386_v17, %s7285_s23  ;;  %1687 = vst.msk [vmem:[#allocation3 + $0x2b8] sm:$0xff] %vm1657_vm2, %v1620_v42  ;;  %v6421_v42 = vsel %vm713_vm14, 1.0, %v5022_v1 }
 0x26d   : > { %v1425_v57 = vpop.permute.xlu1 %1424 }
 0x26e   : > { %v961_v21 = vpop.permute.xlu0 %960  ;;  %v2716_v62 = vpop.f32.mrf.mxu0  ;;  %1493 = vst.msk [vmem:[#allocation3 + $0x2a0] sm:$0xff] %vm1464_vm12, %v1425_v57 }
 0x26f   : > { %1036 = vst.msk [vmem:[#allocation3 + $0x1f8] sm:$0xff] %vm1014_vm10, %v961_v21  ;;  %v2782_v56 = vmul.f32 %v6325_v10, %v2716_v62 }
 0x271   : > { %v2818_v15 = vadd.f32 %v6333_v38, %v2782_v56  ;;  %2238 = vrot.lane.b32.xlu2 %v6138_v35, %s7284_s30 }
 0x273   : > { %v2850_v14 = vmax.f32 %v2818_v15, 0.0  ;;  %2463 = vrot.lane.b32.xlu1 %v2382_v27, %s7285_s23  ;;  %v951_v11 = vpop.permute.xlu2 %950  ;;  %v1098_v15 = vmul.f32 %v6022_v60, %v6421_v42 }
 0x274   : > { %2461 = vrot.lane.b32.xlu0 %v6164_v48, %s7285_s23  ;;  %1031 = vst.msk [vmem:[#allocation3 + $0x180] sm:$0xff] %vm1014_vm10, %v951_v11 }
 0x275   : > { %2883 = vst.msk [vmem:[#allocation4 + $0x60] sm:$0xff] %vm2870_vm6, %v2850_v14  ;;  %v2267_v9 = vpop.permute.xlu1 %2266 }
 0x276   : > { %v2265_v61 = vpop.permute.xlu0 %2264  ;;  %v2718_v49 = vpop.f32.mrf.mxu0  ;;  %2332 = vst.msk [vmem:[#allocation3 + $0x2e8] sm:$0xff] %vm2300_vm5, %v2267_v9 }
 0x277   : > { %2331 = vst.msk [vmem:[#allocation3 + $0x2d0] sm:$0xff] %vm2300_vm5, %v2265_v61  ;;  %v2783_v30 = vmul.f32 %v6325_v10, %v2718_v49 }
 0x279   : > { %v2819_v36 = vadd.f32 %v6333_v38, %v2783_v30  ;;  %962 = vrot.lane.b32.xlu2 %v6227_v26, %s7286_s0 }
 0x27b   : > { %v2851_v28 = vmax.f32 %v2819_v36, 0.0  ;;  %1187 = vrot.lane.b32.xlu1 %v6258_v32, %s7281_s26  ;;  %v1411_v50 = vpop.permute.xlu2 %1410 }
 0x27c   : > { %964 = vrot.lane.b32.xlu0 %v6240_v45, %s7286_s0 }
 0x27d   : > { %2884 = vst.msk [vmem:[#allocation4 + $0x68] sm:$0xff] %vm2870_vm6, %v2851_v28  ;;  %v1618_v43 = vpop.permute.xlu1 %1617  ;;  %v1741_v28 = vmul.f32 %v6158_v41, %v6421_v42 }
 0x27e   : > { %v1186_v40 = vpop.permute.xlu0 %1185  ;;  %1686 = vst.msk [vmem:[#allocation3 + $0x2a0] sm:$0xff] %vm1657_vm2, %v1618_v43 }
 0x27f   : > { %1261 = vst.msk [vmem:[#allocation3 + $0x1f8] sm:$0xff] %vm1239_vm11, %v1186_v40 }
 0x280   : > { %1486 = vst.msk [vmem:[#allocation3 + $0x1f8] sm:$0xff] %vm1464_vm12, %v1411_v50  ;;  %v2162_v50 = vld [vmem:[#allocation2 + $0xd1] sm:$0xff] }
 0x281   : > { %1189 = vrot.lane.b32.xlu2 %v1102_v16, %s7281_s26 }
 0x283   : > { %956 = vrot.lane.b32.xlu1 %v6010_v47, %s7286_s0  ;;  %v1176_v39 = vpop.permute.xlu2 %1175  ;;  %v584_v47 = vadd.s32 144, %v5182_v2 }
 0x284   : > { %954 = vrot.lane.b32.xlu0 %v6008_v44, %s7286_s0  ;;  %1256 = vst.msk [vmem:[#allocation3 + $0x180] sm:$0xff] %vm1239_vm11, %v1176_v39  ;;  %v1295_v44 = vld [vmem:[#allocation2 + $0xc8] sm:$0xff]  ;;  %v2355_v39 = vld [vmem:[#allocation2 + $0xd2] sm:$0xff]  ;;  %s5033_s0 = smov 8  }
 0x285   : > { %v2492_v20 = vpop.permute.xlu1 %2491  ;;  %v616_v57 = vand.u32 15, %v584_v47 }
 0x286   : > { %v2490_v17 = vpop.permute.xlu0 %2489  ;;  %2557 = vst.msk [vmem:[#allocation3 + $0x2e8] sm:$0xff] %vm2525_vm7, %v2492_v20 }
 0x287   : > { %2556 = vst.msk [vmem:[#allocation3 + $0x2d0] sm:$0xff] %vm2525_vm7, %v2490_v17  ;;  %vm648_vm15 = vcmp.gt.s32.totalorder %v616_v57, 0  ;;  %v2356_v17 = vld [vmem:[#allocation2 + $0xda] sm:$0xff] }
 0x288   : > { %v2388_v57 = vmul.f32 %v2356_v17, %v6394_v8 }
 0x289   : > { %1412 = vrot.lane.b32.xlu2 %v1326_v53, %s7287_s27 }
 0x28b   : > { %1179 = vrot.lane.b32.xlu1 %v6030_v3, %s7281_s26  ;;  %v1604_v21 = vpop.permute.xlu2 %1603  ;;  %v6435_v3 = vsel %vm648_vm15, 1.0, %v5022_v1 }
 0x28c   : > { %1414 = vrot.lane.b32.xlu0 %v1295_v44, %s7287_s27  ;;  %1679 = vst.msk [vmem:[#allocation3 + $0x1f8] sm:$0xff] %vm1657_vm2, %v1604_v21  ;;  %v1322_v61 = vmul.f32 %v6290_v23, %v6435_v3  ;;  %v1745_v23 = vmul.f32 %v6347_v24, %v6394_v8  ;;  %v1965_v13 = vmul.f32 %v6188_v25, %v6435_v3 }
 0x28d   : > { %v1409_v27 = vpop.permute.xlu1 %1408  ;;  %v2589_v58 = vld [vmem:[#allocation3 + $0x2e8] sm:$0xff] }
 0x28e   : > { %v953_v62 = vpop.permute.xlu0 %952  ;;  %v2588_v56 = vld [vmem:[#allocation3 + $0x2d0] sm:$0xff]  ;;  %1485 = vst.msk [vmem:[#allocation3 + $0x1e0] sm:$0xff] %vm1464_vm12, %v1409_v27 }
 0x28f   : > { %1032 = vst.msk [vmem:[#allocation3 + $0x198] sm:$0xff] %vm1014_vm10, %v953_v62  ;;  %v2605_v14 = vpack.c.bf16 %v2589_v58, %v2588_v56 }
 0x291   : > { %4683 = vmatmul.msk.bf16.vlgmr.msra.gmra.mxu3 %vm2621_vm8, %v2605_v14  ;;  %1181 = vrot.lane.b32.xlu2 %v1098_v15, %s7281_s26  ;;  %v2384_v15 = vmul.f32 %v6267_v34, %v6421_v42  ;;  %s5036_s26 = smov 40  }
 0x293   : > { %1607 = vrot.lane.b32.xlu1 %v6339_v59, %s7282_s17  ;;  %v1401_v11 = vpop.permute.xlu2 %1400 }
 0x294   : > { %1605 = vrot.lane.b32.xlu0 %v6314_v63, %s7282_s17  ;;  %1481 = vst.msk [vmem:[#allocation3 + $0x180] sm:$0xff] %vm1464_vm12, %v1401_v11 }
 0x295   : > { %v1845_v60 = vpop.permute.xlu1 %1844 }
 0x296   : > { %v1843_v29 = vpop.permute.xlu0 %1842  ;;  %1912 = vst.msk [vmem:[#allocation3 + $0x2b8] sm:$0xff] %vm1882_vm3, %v1845_v60 }
 0x297   : > { %1911 = vst.msk [vmem:[#allocation3 + $0x2a0] sm:$0xff] %vm1882_vm3, %v1843_v29 }
 0x299   : > { %1404 = vrot.lane.b32.xlu2 %v1322_v61, %s7287_s27 }
 0x29b   : > { %1830 = vrot.lane.b32.xlu1 %v6357_v5, %s7288_s20  ;;  %v1829_v63 = vpop.permute.xlu2 %1828 }
 0x29c   : > { %1406 = vrot.lane.b32.xlu0 %v6278_v4, %s7287_s27  ;;  %1904 = vst.msk [vmem:[#allocation3 + $0x1f8] sm:$0xff] %vm1882_vm3, %v1829_v63  ;;  %v1937_v4 = vld [vmem:[#allocation2 + $0xd0] sm:$0xff]  ;;  %s5035_s27 = smov 32  }
 0x29d   : > { %v1602_v9 = vpop.permute.xlu1 %1601  ;;  %v1969_v24 = vmul.f32 %v1937_v4, %v6409_v7 }
 0x29e   : > { %v1178_v59 = vpop.permute.xlu0 %1177  ;;  %1678 = vst.msk [vmem:[#allocation3 + $0x1e0] sm:$0xff] %vm1657_vm2, %v1602_v9  ;;  %v776_v9 = vld [vmem:[#allocation2 + $0x90] sm:$0xff] }
 0x29f   : > { %1257 = vst.msk [vmem:[#allocation3 + $0x198] sm:$0xff] %vm1239_vm11, %v1178_v59 }
 0x2a1   : > { %1832 = vrot.lane.b32.xlu2 %v1745_v23, %s7288_s20 }
 0x2a3   : > { %1599 = vrot.lane.b32.xlu1 %v6138_v35, %s7282_s17  ;;  %v1594_v5 = vpop.permute.xlu2 %1593 }
 0x2a4   : > { %1597 = vrot.lane.b32.xlu0 %v6135_v46, %s7282_s17  ;;  %1674 = vst.msk [vmem:[#allocation3 + $0x180] sm:$0xff] %vm1657_vm2, %v1594_v5  ;;  %v808_v5 = vmul.f32 %v776_v9, %v6435_v3  ;;  %s5039_s17 = smov 64  }
 0x2a5   : > { %v2070_v30 = vpop.permute.xlu1 %2069 }
 0x2a6   : > { %v2068_v49 = vpop.permute.xlu0 %2067  ;;  %2137 = vst.msk [vmem:[#allocation3 + $0x2b8] sm:$0xff] %vm2107_vm4, %v2070_v30  ;;  %v777_v30 = vld [vmem:[#allocation2 + $0x98] sm:$0xff] }
 0x2a7   : > { %2136 = vst.msk [vmem:[#allocation3 + $0x2a0] sm:$0xff] %vm2107_vm4, %v2068_v49 }
 0x2a8   : > { %840 = vst.msk [vmem:[#allocation3 + $0x1b0] sm:$0xff] %vm525_vm0, %v808_v5 }
 0x2a9   : > { %2055 = vrot.lane.b32.xlu2 %v1969_v24, %s7283_s16  ;;  %841 = vst.msk [vmem:[#allocation3 + $0x1c8] sm:$0xff] %vm525_vm0, %v777_v30  ;;  %v3038_v30 = vld [vmem:[#allocation4 + $0x109] sm:$0xff] }
 0x2ab   : > { %1822 = vrot.lane.b32.xlu1 %v6164_v48, %s7288_s20  ;;  %v2054_v46 = vpop.permute.xlu2 %2053 }
 0x2ac   : > { %2057 = vrot.lane.b32.xlu0 %v1938_v52, %s7283_s16  ;;  %2129 = vst.msk [vmem:[#allocation3 + $0x1f8] sm:$0xff] %vm2107_vm4, %v2054_v46 }
 0x2ad   : > { %v1827_v36 = vpop.permute.xlu1 %1826 }
 0x2ae   : > { %v1403_v35 = vpop.permute.xlu0 %1402  ;;  %1903 = vst.msk [vmem:[#allocation3 + $0x1e0] sm:$0xff] %vm1882_vm3, %v1827_v36 }
 0x2af   : > { %1482 = vst.msk [vmem:[#allocation3 + $0x198] sm:$0xff] %vm1464_vm12, %v1403_v35 }
 0x2b1   : > { %1824 = vrot.lane.b32.xlu2 %v1741_v28, %s7288_s20  ;;  %s5034_s20 = smov 16  }
 0x2b3   : > { %2250 = vrot.lane.b32.xlu1 %v2163_v33, %s7284_s30  ;;  %v1819_v48 = vpop.permute.xlu2 %1818 }
 0x2b4   : > { %2248 = vrot.lane.b32.xlu0 %v2162_v50, %s7284_s30  ;;  %1899 = vst.msk [vmem:[#allocation3 + $0x180] sm:$0xff] %vm1882_vm3, %v1819_v48 }
 0x2b5   : > { %v2751_v40 = vpop.f32.mrf.mxu2  ;;  %v2263_v41 = vpop.permute.xlu1 %2262 }
 0x2b6   : > { %v2261_v43 = vpop.permute.xlu0 %2260  ;;  %v2796_v16 = vmul.f32 %v6325_v10, %v2751_v40  ;;  %2330 = vst.msk [vmem:[#allocation3 + $0x2b8] sm:$0xff] %vm2300_vm5, %v2263_v41 }
 0x2b7   : > { %2329 = vst.msk [vmem:[#allocation3 + $0x2a0] sm:$0xff] %vm2300_vm5, %v2261_v43 }
 0x2b8   : > { %v2832_v12 = vadd.f32 %v6333_v38, %v2796_v16 }
 0x2b9   : > { %2047 = vrot.lane.b32.xlu2 %v1965_v13, %s7283_s16 }
 0x2ba   : > { %v2864_v22 = vmax.f32 %v2832_v12, 0.0 }
 0x2bb   : > { %2473 = vrot.lane.b32.xlu1 %v2355_v39, %s7285_s23  ;;  %v2247_v20 = vpop.permute.xlu2 %2246 }
 0x2bc   : > { %2049 = vrot.lane.b32.xlu0 %v6179_v51, %s7283_s16  ;;  %2897 = vst.msk [vmem:[#allocation4 + $0xd0] sm:$0xff] %vm2870_vm6, %v2864_v22  ;;  %v812_v51 = vmul.f32 %v6188_v25, %v6409_v7  ;;  %s5038_s16 = smov 56  }
 0x2bd   : > { %v2753_v53 = vpop.f32.mrf.mxu2  ;;  %2322 = vst.msk [vmem:[#allocation3 + $0x1f8] sm:$0xff] %vm2300_vm5, %v2247_v20  ;;  %v2052_v21 = vpop.permute.xlu1 %2051 }
 0x2be   : > { %v1596_v44 = vpop.permute.xlu0 %1595  ;;  %v2797_v47 = vmul.f32 %v6325_v10, %v2753_v53  ;;  %2128 = vst.msk [vmem:[#allocation3 + $0x1e0] sm:$0xff] %vm2107_vm4, %v2052_v21 }
 0x2bf   : > { %1675 = vst.msk [vmem:[#allocation3 + $0x198] sm:$0xff] %vm1657_vm2, %v1596_v44 }
 0x2c0   : > { %v2833_v62 = vadd.f32 %v6333_v38, %v2797_v47  ;;  %844 = vst.msk [vmem:[#allocation3 + $0x210] sm:$0xff] %vm525_vm0, %v812_v51  ;;  %vm3864_vm0 = vcmask 122880  }
 0x2c1   : > { %2475 = vrot.lane.b32.xlu2 %v2388_v57, %s7285_s23 }
 0x2c2   : > { %v2865_v56 = vmax.f32 %v2833_v62, 0.0 }
 0x2c3   : > { %2242 = vrot.lane.b32.xlu1 %v6240_v45, %s7284_s30  ;;  %v2470_v8 = vpop.permute.xlu2 %2469 }
 0x2c4   : > { %2240 = vrot.lane.b32.xlu0 %v6227_v26, %s7284_s30  ;;  %2898 = vst.msk [vmem:[#allocation4 + $0xd8] sm:$0xff] %vm2870_vm6, %v2865_v56  ;;  %s5037_s30 = smov 48  }
 0x2c5   : > { %v2488_v25 = vpop.permute.xlu1 %2487 }
 0x2c6   : > { %v2486_v27 = vpop.permute.xlu0 %2485  ;;  %v2721_v58 = vpop.f32.mrf.mxu0  ;;  %2555 = vst.msk [vmem:[#allocation3 + $0x2b8] sm:$0xff] %vm2525_vm7, %v2488_v25 }
 0x2c7   : > { %2554 = vst.msk [vmem:[#allocation3 + $0x2a0] sm:$0xff] %vm2525_vm7, %v2486_v27  ;;  %v2784_v7 = vmul.f32 %v6325_v10, %v2721_v58 }
 0x2c9   : > { %v2820_v26 = vadd.f32 %v6333_v38, %v2784_v7  ;;  %2465 = vrot.lane.b32.xlu2 %v6258_v32, %s7285_s23 }
 0x2cb   : > { %v2852_v14 = vmax.f32 %v2820_v26, 0.0  ;;  %v2239_v45 = vpop.permute.xlu2 %2238 }
 0x2cc   : > { %2467 = vrot.lane.b32.xlu0 %v2384_v15, %s7285_s23 }
 0x2cd   : > { %2885 = vst.msk [vmem:[#allocation4 + $0x70] sm:$0xff] %vm2870_vm6, %v2852_v14  ;;  %v2245_v61 = vpop.permute.xlu1 %2244  ;;  %v2587_v34 = vld [vmem:[#allocation3 + $0x2b8] sm:$0xff] }
 0x2ce   : > { %v1821_v11 = vpop.permute.xlu0 %1820  ;;  %v2723_v29 = vpop.f32.mrf.mxu0  ;;  %v2586_v60 = vld [vmem:[#allocation3 + $0x2a0] sm:$0xff]  ;;  %2321 = vst.msk [vmem:[#allocation3 + $0x1e0] sm:$0xff] %vm2300_vm5, %v2245_v61 }
 0x2cf   : > { %1900 = vst.msk [vmem:[#allocation3 + $0x198] sm:$0xff] %vm1882_vm3, %v1821_v11  ;;  %v2785_v63 = vmul.f32 %v6325_v10, %v2723_v29  ;;  %v2604_v42 = vpack.c.bf16 %v2587_v34, %v2586_v60 }
 0x2d0   : > { %2546 = vst.msk [vmem:[#allocation3 + $0x1e0] sm:$0xff] %vm2525_vm7, %v2470_v8 }
 0x2d1   : > { %v2821_v59 = vadd.f32 %v6333_v38, %v2785_v63  ;;  %4682 = vmatmul.msk.bf16.gmra.mxu2 %vm2621_vm8, %v2604_v42  ;;  %v3004_v42 = vld [vmem:[#allocation4 + $0x108] sm:$0xff] }
 0x2d3   : > { %v2853_v32 = vmax.f32 %v2821_v59, 0.0  ;;  %v963_v23 = vpop.permute.xlu2 %962 }
 0x2d4   : > { %1037 = vst.msk [vmem:[#allocation3 + $0x210] sm:$0xff] %vm1014_vm10, %v963_v23 }
 0x2d5   : > { %2886 = vst.msk [vmem:[#allocation4 + $0x78] sm:$0xff] %vm2870_vm6, %v2853_v32  ;;  %v2046_v49 = vpop.permute.xlu1 %2045  ;;  %v3003_v32 = vld [vmem:[#allocation4 + $0x100] sm:$0xff] }
 0x2d6   : > { %v2044_v4 = vpop.permute.xlu0 %2043  ;;  %2125 = vst.msk [vmem:[#allocation3 + $0x198] sm:$0xff] %vm2107_vm4, %v2046_v49 }
 0x2d7   : > { %2124 = vst.msk [vmem:[#allocation3 + $0x180] sm:$0xff] %vm2107_vm4, %v2044_v4  ;;  %v2578_v3 = vld [vmem:[#allocation3 + $0x1e0] sm:$0xff] }
 0x2d8   : > { %2318 = vst.msk [vmem:[#allocation3 + $0x198] sm:$0xff] %vm2300_vm5, %v2239_v45 }
 0x2db   : > { %v1190_v24 = vpop.permute.xlu2 %1189 }
 0x2dd   : > { %v2237_v46 = vpop.permute.xlu1 %2236 }
 0x2de   : > { %v2472_v52 = vpop.permute.xlu0 %2471  ;;  %2317 = vst.msk [vmem:[#allocation3 + $0x180] sm:$0xff] %vm2300_vm5, %v2237_v46 }
 0x2df   : > { %2547 = vst.msk [vmem:[#allocation3 + $0x1f8] sm:$0xff] %vm2525_vm7, %v2472_v52 }
 0x2e3   : > { %v1413_v35 = vpop.permute.xlu2 %1412 }
 0x2e5   : > { %v2464_v50 = vpop.permute.xlu1 %2463 }
 0x2e6   : > { %v2462_v36 = vpop.permute.xlu0 %2461  ;;  %v2579_v28 = vld [vmem:[#allocation3 + $0x1f8] sm:$0xff]  ;;  %2543 = vst.msk [vmem:[#allocation3 + $0x198] sm:$0xff] %vm2525_vm7, %v2464_v50 }
 0x2e7   : > { %2542 = vst.msk [vmem:[#allocation3 + $0x180] sm:$0xff] %vm2525_vm7, %v2462_v36  ;;  %v2600_v33 = vpack.c.bf16 %v2579_v28, %v2578_v3 }
 0x2e9   : > { %4678 = vmatmul.msk.bf16.vlgmr.msra.gmra.mxu1 %vm2621_vm8, %v2600_v33 }
 0x2eb   : > { %v1182_v48 = vpop.permute.xlu2 %1181 }
 0x2ed   : > { %v1188_v16 = vpop.permute.xlu1 %1187  ;;  %v2575_v41 = vld [vmem:[#allocation3 + $0x198] sm:$0xff] }
 0x2ee   : > { %v965_v40 = vpop.permute.xlu0 %964  ;;  %v2574_v43 = vld [vmem:[#allocation3 + $0x180] sm:$0xff]  ;;  %1262 = vst.msk [vmem:[#allocation3 + $0x210] sm:$0xff] %vm1239_vm11, %v1188_v16 }
 0x2ef   : > { %1038 = vst.msk [vmem:[#allocation3 + $0x228] sm:$0xff] %vm1014_vm10, %v965_v40  ;;  %v2598_v13 = vpack.c.bf16 %v2575_v41, %v2574_v43 }
 0x2f0   : > { %1263 = vst.msk [vmem:[#allocation3 + $0x228] sm:$0xff] %vm1239_vm11, %v1190_v24 }
 0x2f1   : > { %4676 = vmatmul.msk.bf16.gmra.mxu0 %vm2621_vm8, %v2598_v13  ;;  %1487 = vst.msk [vmem:[#allocation3 + $0x210] sm:$0xff] %vm1464_vm12, %v1413_v35  ;;  %v3037_v35 = vld [vmem:[#allocation4 + $0x101] sm:$0xff] }
 0x2f3   : > { %v1405_v12 = vpop.permute.xlu2 %1404 }
 0x2f5   : > { %v957_v22 = vpop.permute.xlu1 %956 }
 0x2f6   : > { %v955_v39 = vpop.permute.xlu0 %954  ;;  %1034 = vst.msk [vmem:[#allocation3 + $0x1c8] sm:$0xff] %vm1014_vm10, %v957_v22 }
 0x2f7   : > { %1033 = vst.msk [vmem:[#allocation3 + $0x1b0] sm:$0xff] %vm1014_vm10, %v955_v39  ;;  %vm3854_vm10 = vcmask 130048  }
 0x2f8   : > { %1259 = vst.msk [vmem:[#allocation3 + $0x1c8] sm:$0xff] %vm1239_vm11, %v1182_v48 }
 0x2fb   : > { %v1833_v20 = vpop.permute.xlu2 %1832 }
 0x2fd   : > { %v1180_v53 = vpop.permute.xlu1 %1179 }
 0x2fe   : > { %v1415_v17 = vpop.permute.xlu0 %1414  ;;  %1258 = vst.msk [vmem:[#allocation3 + $0x1b0] sm:$0xff] %vm1239_vm11, %v1180_v53 }
 0x2ff   : > { %1488 = vst.msk [vmem:[#allocation3 + $0x228] sm:$0xff] %vm1464_vm12, %v1415_v17 }
 0x300   : > { %1483 = vst.msk [vmem:[#allocation3 + $0x1b0] sm:$0xff] %vm1464_vm12, %v1405_v12 }
 0x303   : > { %v2056_v21 = vpop.permute.xlu2 %2055 }
 0x305   : > { %v1608_v47 = vpop.permute.xlu1 %1607 }
 0x306   : > { %v1606_v44 = vpop.permute.xlu0 %1605  ;;  %1681 = vst.msk [vmem:[#allocation3 + $0x228] sm:$0xff] %vm1657_vm2, %v1608_v47 }
 0x307   : > { %1680 = vst.msk [vmem:[#allocation3 + $0x210] sm:$0xff] %vm1657_vm2, %v1606_v44 }
 0x308   : > { %1906 = vst.msk [vmem:[#allocation3 + $0x228] sm:$0xff] %vm1882_vm3, %v1833_v20 }
 0x30b   : > { %v1825_v62 = vpop.permute.xlu2 %1824 }
 0x30d   : > { %v1831_v51 = vpop.permute.xlu1 %1830 }
 0x30e   : > { %v1407_v57 = vpop.permute.xlu0 %1406  ;;  %1905 = vst.msk [vmem:[#allocation3 + $0x210] sm:$0xff] %vm1882_vm3, %v1831_v51 }
 0x30f   : > { %1484 = vst.msk [vmem:[#allocation3 + $0x1c8] sm:$0xff] %vm1464_vm12, %v1407_v57 }
 0x310   : > { %2130 = vst.msk [vmem:[#allocation3 + $0x210] sm:$0xff] %vm2107_vm4, %v2056_v21 }
 0x313   : > { %v2048_v15 = vpop.permute.xlu2 %2047 }
 0x314   : > { %v2761_v56 = vpop.f32.mrf.mxu3 }
 0x315   : > { %v2800_v8 = vmul.f32 %v6325_v10, %v2761_v56  ;;  %v1600_v58 = vpop.permute.xlu1 %1599 }
 0x316   : > { %v1598_v27 = vpop.permute.xlu0 %1597  ;;  %1677 = vst.msk [vmem:[#allocation3 + $0x1c8] sm:$0xff] %vm1657_vm2, %v1600_v58 }
 0x317   : > { %1676 = vst.msk [vmem:[#allocation3 + $0x1b0] sm:$0xff] %vm1657_vm2, %v1598_v27  ;;  %v2836_v25 = vadd.f32 %v6333_v38, %v2800_v8 }
 0x318   : > { %1902 = vst.msk [vmem:[#allocation3 + $0x1c8] sm:$0xff] %vm1882_vm3, %v1825_v62 }
 0x319   : > { %v2868_v7 = vmax.f32 %v2836_v25, 0.0 }
 0x31b   : > { %2901 = vst.msk [vmem:[#allocation4 + $0xf0] sm:$0xff] %vm2870_vm6, %v2868_v7  ;;  %v2476_v63 = vpop.permute.xlu2 %2475 }
 0x31c   : > { %v2763_v26 = vpop.f32.mrf.mxu3 }
 0x31d   : > { %v2801_v14 = vmul.f32 %v6325_v10, %v2763_v26  ;;  %v1823_v11 = vpop.permute.xlu1 %1822 }
 0x31e   : > { %v2058_v45 = vpop.permute.xlu0 %2057  ;;  %1901 = vst.msk [vmem:[#allocation3 + $0x1b0] sm:$0xff] %vm1882_vm3, %v1823_v11 }
 0x31f   : > { %2131 = vst.msk [vmem:[#allocation3 + $0x228] sm:$0xff] %vm2107_vm4, %v2058_v45  ;;  %v2837_v29 = vadd.f32 %v6333_v38, %v2801_v14  ;;  %v2934_v45 = vld [vmem:[#allocation4 + $0xd8] sm:$0xff] }
 0x320   : > { %2126 = vst.msk [vmem:[#allocation3 + $0x1b0] sm:$0xff] %vm2107_vm4, %v2048_v15 }
 0x321   : > { %v2869_v60 = vmax.f32 %v2837_v29, 0.0 }
 0x322   : > { %v2937_v59 = vld [vmem:[#allocation4 + $0xf0] sm:$0xff] }
 0x323   : > { %2902 = vst.msk [vmem:[#allocation4 + $0xf8] sm:$0xff] %vm2870_vm6, %v2869_v60  ;;  %v2466_v48 = vpop.permute.xlu2 %2465 }
 0x325   : > { %v2251_v34 = vpop.permute.xlu1 %2250 }
 0x326   : > { %v2249_v61 = vpop.permute.xlu0 %2248  ;;  %2324 = vst.msk [vmem:[#allocation3 + $0x228] sm:$0xff] %vm2300_vm5, %v2251_v34 }
 0x327   : > { %2323 = vst.msk [vmem:[#allocation3 + $0x210] sm:$0xff] %vm2300_vm5, %v2249_v61 }
 0x328   : > { %2549 = vst.msk [vmem:[#allocation3 + $0x228] sm:$0xff] %vm2525_vm7, %v2476_v63 }
 0x32a   : > { %v2938_v9 = vld [vmem:[#allocation4 + $0xf8] sm:$0xff] }
 0x32b   : > { %v6561_v23 = vld [vmem:[#allocation4 + $0xf9] sm:$0xff]  ;;  %v6563_v4 = vld [vmem:[#allocation4 + $0xf1] sm:$0xff] }
 0x32c   : > { %v3002_v5 = vmax.f32 %v2938_v9, %v6561_v23  ;;  %v3001_v49 = vmax.f32 %v2937_v59, %v6563_v4 }
 0x32d   : > { %v2474_v3 = vpop.permute.xlu1 %2473 }
 0x32e   : > { %v2050_v24 = vpop.permute.xlu0 %2049  ;;  %v3036_v52 = vmax.f32 %v3002_v5, %v3004_v42  ;;  %v3035_v46 = vmax.f32 %v3001_v49, %v3003_v32  ;;  %2548 = vst.msk [vmem:[#allocation3 + $0x210] sm:$0xff] %vm2525_vm7, %v2474_v3  ;;  %v2965_v42 = vld [vmem:[#allocation4 + $0xd1] sm:$0xff] }
 0x32f   : > { %2127 = vst.msk [vmem:[#allocation3 + $0x1c8] sm:$0xff] %vm2107_vm4, %v2050_v24  ;;  %v2581_v50 = vld [vmem:[#allocation3 + $0x228] sm:$0xff]  ;;  %v2933_v24 = vld [vmem:[#allocation4 + $0xd0] sm:$0xff] }
 0x330   : > { %v3070_v36 = vmax.f32 %v3036_v52, %v3038_v30  ;;  %v3069_v28 = vmax.f32 %v3035_v46, %v3037_v35  ;;  %v6588_v52 = vld [vmem:[#allocation4 + $0xc9] sm:$0xff] }
 0x331   : > { %v2932_v35 = vld [vmem:[#allocation4 + $0xc8] sm:$0xff] }
 0x332   : > { %3187 = vmatpush.msrb.mxu2 %v3070_v36  ;;  %v2931_v36 = vld [vmem:[#allocation4 + $0xc0] sm:$0xff] }
 0x334   : > { %3188 = vmatpush.msrb.mxu2 %v3069_v28  ;;  %v6592_v28 = vld [vmem:[#allocation4 + $0xc1] sm:$0xff] }
 0x335   : > { %v2580_v40 = vld [vmem:[#allocation3 + $0x210] sm:$0xff]  ;;  %v2243_v43 = vpop.permute.xlu1 %2242 }
 0x336   : > { %v2241_v33 = vpop.permute.xlu0 %2240  ;;  %v2601_v16 = vpack.c.bf16 %v2581_v50, %v2580_v40  ;;  %2320 = vst.msk [vmem:[#allocation3 + $0x1c8] sm:$0xff] %vm2300_vm5, %v2243_v43 }
 0x337   : > { %2319 = vst.msk [vmem:[#allocation3 + $0x1b0] sm:$0xff] %vm2300_vm5, %v2241_v33 }
 0x338   : > { %2544 = vst.msk [vmem:[#allocation3 + $0x1b0] sm:$0xff] %vm2525_vm7, %v2466_v48  ;;  %4679 = vmatmul.msk.bf16.gmra.mxu1 %vm2621_vm8, %v2601_v16  ;;  %v2996_v48 = vmax.f32 %v2932_v35, %v6588_v52 }
 0x33a   : > { %v3030_v43 = vmax.f32 %v2996_v48, %v2934_v45 }
 0x33e   : > { %v2468_v41 = vpop.permute.xlu0 %2467 }
 0x33f   : > { %2545 = vst.msk [vmem:[#allocation3 + $0x1c8] sm:$0xff] %vm2525_vm7, %v2468_v41  ;;  %v2576_v13 = vld [vmem:[#allocation3 + $0x1b0] sm:$0xff] }
 0x346   : > { %v2577_v12 = vld [vmem:[#allocation3 + $0x1c8] sm:$0xff] }
 0x347   : > { %v2599_v39 = vpack.c.bf16 %v2577_v12, %v2576_v13 }
 0x349   : > { %4677 = vmatmul.msk.bf16.gmra.mxu0 %vm2621_vm8, %v2599_v39 }
 0x354   : > { %v2756_v22 = vpop.f32.mrf.mxu2 }
 0x355   : > { %v2798_v17 = vmul.f32 %v6325_v10, %v2756_v22 }
 0x357   : > { %v2834_v20 = vadd.f32 %v6333_v38, %v2798_v17 }
 0x359   : > { %v2866_v53 = vmax.f32 %v2834_v20, 0.0 }
 0x35b   : > { %2899 = vst.msk [vmem:[#allocation4 + $0xe0] sm:$0xff] %vm2870_vm6, %v2866_v53 }
 0x35c   : > { %v2758_v44 = vpop.f32.mrf.mxu2 }
 0x35d   : > { %v2799_v47 = vmul.f32 %v6325_v10, %v2758_v44 }
 0x35f   : > { %v2835_v21 = vadd.f32 %v6333_v38, %v2799_v47 }
 0x361   : > { %v2867_v57 = vmax.f32 %v2835_v21, 0.0 }
 0x362   : > { %v2935_v8 = vld [vmem:[#allocation4 + $0xe0] sm:$0xff] }
 0x363   : > { %2900 = vst.msk [vmem:[#allocation4 + $0xe8] sm:$0xff] %vm2870_vm6, %v2867_v57  ;;  %v2966_v27 = vld [vmem:[#allocation4 + $0xd9] sm:$0xff] }
 0x364   : > { %v2998_v61 = vmax.f32 %v2934_v45, %v2966_v27  ;;  %v3064_v13 = vmax.f32 %v3030_v43, %v2966_v27  ;;  %v6609_v27 = vld [vmem:[#allocation4 + $0x41] sm:$0xff] }
 0x366   : > { %v2736_v51 = vpop.f32.mrf.mxu1 }
 0x367   : > { %v2790_v62 = vmul.f32 %v6325_v10, %v2736_v51 }
 0x369   : > { %v2826_v56 = vadd.f32 %v6333_v38, %v2790_v62 }
 0x36a   : > { %v2936_v25 = vld [vmem:[#allocation4 + $0xe8] sm:$0xff] }
 0x36b   : > { %v2858_v58 = vmax.f32 %v2826_v56, 0.0  ;;  %v2968_v7 = vld [vmem:[#allocation4 + $0xe9] sm:$0xff]  ;;  %v2967_v15 = vld [vmem:[#allocation4 + $0xe1] sm:$0xff]  ;;  %v3032_v49 = vmax.f32 %v2998_v61, %v2936_v25 }
 0x36c   : > { %v3000_v26 = vmax.f32 %v2936_v25, %v2968_v7  ;;  %v2999_v14 = vmax.f32 %v2935_v8, %v2967_v15  ;;  %v6612_v25 = vld [vmem:[#allocation4 + $0x40] sm:$0xff] }
 0x36d   : > { %2891 = vst.msk [vmem:[#allocation4 + $0xa0] sm:$0xff] %vm2870_vm6, %v2858_v58 }
 0x36e   : > { %v2738_v11 = vpop.f32.mrf.mxu1  ;;  %v3034_v29 = vmax.f32 %v3000_v26, %v2938_v9  ;;  %v3033_v60 = vmax.f32 %v2999_v14, %v2937_v59  ;;  %v2726_v63 = vpop.f32.mrf.mxu0  ;;  %v2997_v9 = vmax.f32 %v2933_v24, %v2965_v42 }
 0x36f   : > { %v2791_v34 = vmul.f32 %v6325_v10, %v2738_v11  ;;  %v2786_v32 = vmul.f32 %v6325_v10, %v2726_v63 }
 0x370   : > { %v3068_v5 = vmax.f32 %v3034_v29, %v6561_v23  ;;  %v3067_v59 = vmax.f32 %v3033_v60, %v6563_v4  ;;  %v3066_v23 = vmax.f32 %v3032_v49, %v2968_v7  ;;  %v3031_v33 = vmax.f32 %v2997_v9, %v2935_v8  ;;  %v6607_v8 = vld [vmem:[#allocation4 + $0x48] sm:$0xff]  ;;  %v6615_v7 = vld [vmem:[#allocation4 + $0x39] sm:$0xff]  ;;  %v2953_v9 = vld [vmem:[#allocation4 + $0x71] sm:$0xff] }
 0x371   : > { %v2827_v30 = vadd.f32 %v6333_v38, %v2791_v34  ;;  %v2822_v46 = vadd.f32 %v6333_v38, %v2786_v32  ;;  %v2995_v4 = vmax.f32 %v2931_v36, %v6592_v28  ;;  %3865 = vst.msk [vmem:[#allocation4 + $0x48] sm:$0x1] %vm3864_vm0, %v5022_v1 }
 0x372   : > { %3189 = vmatpush.msrb.mxu2 %v3068_v5  ;;  %v3065_v40 = vmax.f32 %v3031_v33, %v2967_v15  ;;  %3863 = vst.msk [vmem:[#allocation4 + $0x40] sm:$0xff] %vm3854_vm10, %v5022_v1 }
 0x373   : > { %v2859_v3 = vmax.f32 %v2827_v30, 0.0  ;;  %v2854_v50 = vmax.f32 %v2822_v46, 0.0  ;;  %v3029_v12 = vmax.f32 %v2995_v4, %v2933_v24  ;;  %v2922_v24 = vld [vmem:[#allocation4 + $0x78] sm:$0xff] }
 0x374   : > { %3190 = vmatpush.msrb.mxu2 %v3067_v59 }
 0x375   : > { %2892 = vst.msk [vmem:[#allocation4 + $0xa8] sm:$0xff] %vm2870_vm6, %v2859_v3  ;;  %v3063_v22 = vmax.f32 %v3029_v12, %v2965_v42 }
 0x376   : > { %2887 = vst.msk [vmem:[#allocation4 + $0x80] sm:$0xff] %vm2870_vm6, %v2854_v50  ;;  %3191 = vmatpush.msrb.mxu2 %v3066_v23  ;;  %v2728_v16 = vpop.f32.mrf.mxu0 }
 0x377   : > { %v2787_v41 = vmul.f32 %v6325_v10, %v2728_v16  ;;  %v2927_v16 = vld [vmem:[#allocation4 + $0xa0] sm:$0xff] }
 0x378   : > { %3192 = vmatpush.msrb.mxu2 %v3065_v40 }
 0x379   : > { %v2823_v39 = vadd.f32 %v6333_v38, %v2787_v41  ;;  %v2920_v41 = vld [vmem:[#allocation4 + $0x68] sm:$0xff] }
 0x37a   : > { %3193 = vmatpush.msrb.mxu2 %v3064_v13 }
 0x37b   : > { %v2855_v17 = vmax.f32 %v2823_v39, 0.0  ;;  %v2951_v39 = vld [vmem:[#allocation4 + $0x61] sm:$0xff] }
 0x37c   : > { %3194 = vmatpush.msrb.mxu2 %v3063_v22  ;;  %v6624_v5 = vld [vmem:[#allocation4 + $0xa8] sm:$0xff] }
 0x37d   : > { %2888 = vst.msk [vmem:[#allocation4 + $0x88] sm:$0xff] %vm2870_vm6, %v2855_v17  ;;  %v2954_v42 = vld [vmem:[#allocation4 + $0x79] sm:$0xff]  ;;  %v6631_v23 = vld [vmem:[#allocation4 + $0xa1] sm:$0xff] }
 0x37e   : > { %v2986_v50 = vmax.f32 %v2922_v24, %v2954_v42  ;;  %v6634_v40 = vld [vmem:[#allocation4 + $0x80] sm:$0xff] }
 0x384   : > { %v6626_v46 = vld [vmem:[#allocation4 + $0x88] sm:$0xff] }
 0x385   : > { %v3020_v43 = vmax.f32 %v2986_v50, %v6626_v46  ;;  %v6640_v12 = vld [vmem:[#allocation4 + $0x81] sm:$0xff] }
 0x3b5   : > { %v2741_v20 = vpop.f32.mrf.mxu1 }
 0x3b6   : > { %v2792_v53 = vmul.f32 %v6325_v10, %v2741_v20 }
 0x3b8   : > { %v2828_v44 = vadd.f32 %v6333_v38, %v2792_v53 }
 0x3ba   : > { %v2860_v47 = vmax.f32 %v2828_v44, 0.0 }
 0x3bc   : > { %2893 = vst.msk [vmem:[#allocation4 + $0xb0] sm:$0xff] %vm2870_vm6, %v2860_v47  ;;  %v2919_v47 = vld [vmem:[#allocation4 + $0x60] sm:$0xff] }
 0x3bd   : > { %v2743_v21 = vpop.f32.mrf.mxu1 }
 0x3be   : > { %v2793_v57 = vmul.f32 %v6325_v10, %v2743_v21  ;;  %v2950_v21 = vld [vmem:[#allocation4 + $0x59] sm:$0xff] }
 0x3c0   : > { %v2829_v51 = vadd.f32 %v6333_v38, %v2793_v57 }
 0x3c2   : > { %v2861_v62 = vmax.f32 %v2829_v51, 0.0  ;;  %v2983_v51 = vmax.f32 %v2919_v47, %v2951_v39 }
 0x3c3   : > { %v2929_v14 = vld [vmem:[#allocation4 + $0xb0] sm:$0xff] }
 0x3c4   : > { %2894 = vst.msk [vmem:[#allocation4 + $0xb8] sm:$0xff] %vm2870_vm6, %v2861_v62  ;;  %v6620_v45 = vld [vmem:[#allocation4 + $0xa9] sm:$0xff]  ;;  %v2949_v62 = vld [vmem:[#allocation4 + $0x51] sm:$0xff] }
 0x3c5   : > { %v2992_v59 = vmax.f32 %v6624_v5, %v6620_v45 }
 0x3c6   : > { %v2731_v56 = vpop.f32.mrf.mxu0 }
 0x3c7   : > { %v2788_v58 = vmul.f32 %v6325_v10, %v2731_v56 }
 0x3c9   : > { %v2824_v15 = vadd.f32 %v6333_v38, %v2788_v58  ;;  %v2918_v58 = vld [vmem:[#allocation4 + $0x58] sm:$0xff] }
 0x3cb   : > { %v2856_v26 = vmax.f32 %v2824_v15, 0.0  ;;  %v2930_v11 = vld [vmem:[#allocation4 + $0xb8] sm:$0xff] }
 0x3cc   : > { %v2962_v29 = vld [vmem:[#allocation4 + $0xb9] sm:$0xff]  ;;  %v2961_v60 = vld [vmem:[#allocation4 + $0xb1] sm:$0xff]  ;;  %v3026_v48 = vmax.f32 %v2992_v59, %v2930_v11 }
 0x3cd   : > { %2889 = vst.msk [vmem:[#allocation4 + $0x90] sm:$0xff] %vm2870_vm6, %v2856_v26  ;;  %v2994_v63 = vmax.f32 %v2930_v11, %v2962_v29  ;;  %v2993_v34 = vmax.f32 %v2929_v14, %v2961_v60  ;;  %v2982_v11 = vmax.f32 %v2918_v58, %v2950_v21 }
 0x3ce   : > { %v2733_v61 = vpop.f32.mrf.mxu0  ;;  %v3060_v53 = vmax.f32 %v3026_v48, %v2962_v29  ;;  %v3074_v29 = vshra.s32 %v5182_v2, 3  ;;  %v2979_v48 = vmax.f32 %v6612_v25, %v6609_v27 }
 0x3cf   : > { %v2789_v32 = vmul.f32 %v6325_v10, %v2733_v61  ;;  %v3028_v49 = vmax.f32 %v2994_v63, %v2932_v35  ;;  %v3027_v30 = vmax.f32 %v2993_v34, %v2931_v36  ;;  %v2921_v10 = vld [vmem:[#allocation4 + $0x70] sm:$0xff] }
 0x3d0   : > { %v2952_v35 = vld [vmem:[#allocation4 + $0x69] sm:$0xff]  ;;  %v2985_v4 = vmax.f32 %v2921_v10, %v2953_v9  ;;  %v3017_v26 = vmax.f32 %v2983_v51, %v2921_v10 }
 0x3d1   : > { %v2825_v3 = vadd.f32 %v6333_v38, %v2789_v32  ;;  %v3062_v33 = vmax.f32 %v3028_v49, %v6588_v52  ;;  %v3061_v13 = vmax.f32 %v3027_v30, %v6592_v28  ;;  %v2991_v52 = vmax.f32 %v2927_v16, %v6631_v23  ;;  %v2917_v61 = vld [vmem:[#allocation4 + $0x50] sm:$0xff] }
 0x3d2   : > { %v3019_v17 = vmax.f32 %v2985_v4, %v6634_v40  ;;  %v2984_v20 = vmax.f32 %v2920_v41, %v2952_v35  ;;  %v6647_v63 = vld [vmem:[#allocation4 + $0x49] sm:$0xff]  ;;  %v3051_v34 = vmax.f32 %v3017_v26, %v2953_v9  ;;  %v3016_v32 = vmax.f32 %v2982_v11, %v2920_v41  ;;  %v2911_v11 = vld [vmem:[#allocation4 + $0x20] sm:$0xff] }
 0x3d3   : > { %v2857_v36 = vmax.f32 %v2825_v3, 0.0  ;;  %3195 = vmatpush.msrb.mxu2 %v3062_v33  ;;  %v3025_v44 = vmax.f32 %v2991_v52, %v2929_v14  ;;  %v2981_v14 = vmax.f32 %v2917_v61, %v2949_v62  ;;  %v6651_v30 = vand.u32 7, %v5182_v2 }
 0x3d4   : > { %v6638_v38 = vld [vmem:[#allocation4 + $0x89] sm:$0xff]  ;;  %v3053_v28 = vmax.f32 %v3019_v17, %v6640_v12  ;;  %v3018_v57 = vmax.f32 %v2984_v20, %v2922_v24  ;;  %v3050_v50 = vmax.f32 %v3016_v32, %v2952_v35  ;;  %v6660_v4 = vand.u32 127, %v565_v0  ;;  %v2910_v32 = vld [vmem:[#allocation4 + $0x18] sm:$0xff] }
 0x3d5   : > { %2890 = vst.msk [vmem:[#allocation4 + $0x98] sm:$0xff] %vm2870_vm6, %v2857_v36  ;;  %v3054_v22 = vmax.f32 %v3020_v43, %v6638_v38  ;;  %3196 = vmatpush.msrb.mxu2 %v3061_v13  ;;  %v3059_v56 = vmax.f32 %v3025_v44, %v2961_v60  ;;  %v2925_v49 = vld [vmem:[#allocation4 + $0x90] sm:$0xff]  ;;  %v3015_v60 = vmax.f32 %v2981_v14, %v2919_v47  ;;  %v3082_v41 = vmul.u32 32, %v3074_v29 }
 0x3d6   : > { %v3052_v15 = vmax.f32 %v3018_v57, %v2954_v42  ;;  %v2980_v42 = vmax.f32 %v6607_v8, %v6647_v63  ;;  %v6657_v43 = vld [vmem:[#allocation4 + $0x31] sm:$0xff]  ;;  %v2988_v13 = vmax.f32 %v6626_v46, %v6638_v38  ;;  %v3098_v17 = vmul.u32 2, %v6651_v30  ;;  %v2944_v57 = vld [vmem:[#allocation4 + $0x29] sm:$0xff] }
 0x3d7   : > { %3146 = vmatpush.msrb.mxu1 %v3054_v22  ;;  %3197 = vmatpush.msrb.mxu2 %v3060_v53  ;;  %v3049_v9 = vmax.f32 %v3015_v60, %v2951_v39  ;;  %v2914_v22 = vld [vmem:[#allocation4 + $0x38] sm:$0xff]  ;;  %v3013_v20 = vmax.f32 %v2979_v48, %v2917_v61  ;;  %v2913_v53 = vld [vmem:[#allocation4 + $0x30] sm:$0xff]  ;;  %v2987_v46 = vmax.f32 %v6634_v40, %v6640_v12  ;;  %v6673_v38 = vadd.s32 128, %v6660_v4 }
 0x3d8   : > { %v3014_v36 = vmax.f32 %v2980_v42, %v2918_v58  ;;  %v2978_v39 = vmax.f32 %v2914_v22, %v6615_v7  ;;  %v3075_v58 = vshra.s32 %v5196_v6, 3 }
 0x3d9   : > { %3147 = vmatpush.msrb.mxu1 %v3053_v28  ;;  %3198 = vmatpush.msrb.mxu2 %v3059_v56  ;;  %v2977_v28 = vmax.f32 %v2913_v53, %v6657_v43  ;;  %v2943_v56 = vld [vmem:[#allocation4 + $0x21] sm:$0xff]  ;;  %v3021_v26 = vmax.f32 %v2987_v46, %v2925_v49 }
 0x3da   : > { %v3048_v44 = vmax.f32 %v3014_v36, %v2950_v21  ;;  %v2912_v21 = vld [vmem:[#allocation4 + $0x28] sm:$0xff]  ;;  %v2975_v29 = vmax.f32 %v2911_v11, %v2943_v56  ;;  %v3083_v60 = vmul.u32 32, %v3075_v58  ;;  %v3079_v58 = vshra.s32 %v5301_v54, 3 }
 0x3db   : > { %3148 = vmatpush.msrb.mxu1 %v3052_v15  ;;  %v6680_v15 = vand.u32 7, %v5196_v6  ;;  %v3011_v40 = vmax.f32 %v2977_v28, %v6612_v25  ;;  %v2976_v12 = vmax.f32 %v2912_v21, %v2944_v57  ;;  %v2941_v25 = vld [vmem:[#allocation4 + $0x11] sm:$0xff]  ;;  %v3077_v28 = vshra.s32 %v5236_v31, 3 }
 0x3dc   : > { %v2926_v24 = vld [vmem:[#allocation4 + $0x98] sm:$0xff] }
 0x3dd   : > { %v2958_v59 = vld [vmem:[#allocation4 + $0x99] sm:$0xff]  ;;  %v2957_v3 = vld [vmem:[#allocation4 + $0x91] sm:$0xff]  ;;  %3149 = vmatpush.msrb.mxu1 %v3051_v34  ;;  %v3022_v47 = vmax.f32 %v2988_v13, %v2926_v24  ;;  %v3045_v61 = vmax.f32 %v3011_v40, %v6609_v27  ;;  %v3010_v14 = vmax.f32 %v2976_v12, %v2914_v22  ;;  %v3099_v42 = vmul.u32 2, %v6680_v15 }
 0x3de   : > { %v2990_v33 = vmax.f32 %v2926_v24, %v2958_v59  ;;  %v2989_v10 = vmax.f32 %v2925_v49, %v2957_v3  ;;  %v3055_v34 = vmax.f32 %v3021_v26, %v2957_v3  ;;  %v3009_v24 = vmax.f32 %v2975_v29, %v2913_v53  ;;  %v2909_v27 = vld [vmem:[#allocation4 + $0x10] sm:$0xff]  ;;  %v2907_v22 = vld [vmem:[#allocation4] sm:$0xff] }
 0x3df   : > { %3150 = vmatpush.msrb.mxu1 %v3050_v50  ;;  %v3044_v49 = vmax.f32 %v3010_v14, %v6615_v7  ;;  %v2973_v3 = vmax.f32 %v2909_v27, %v2941_v25  ;;  %v3107_v36 = vadd.s32 %v3099_v42, %v3083_v60  ;;  %v6693_v13 = vand.u32 7, %v5250_v37 }
 0x3e0   : > { %v3024_v52 = vmax.f32 %v2990_v33, %v6624_v5  ;;  %v3023_v35 = vmax.f32 %v2989_v10, %v2927_v16  ;;  %v3047_v5 = vmax.f32 %v3013_v20, %v2949_v62  ;;  %v3012_v16 = vmax.f32 %v2978_v39, %v6607_v8  ;;  %v2908_v10 = vld [vmem:[#allocation4 + $0x8] sm:$0xff] }
 0x3e1   : > { %3151 = vmatpush.msrb.mxu1 %v3049_v9  ;;  %v3056_v62 = vmax.f32 %v3022_v47, %v2958_v59  ;;  %v2940_v59 = vld [vmem:[#allocation4 + $0x9] sm:$0xff]  ;;  %v5032_v33 = vmov 1.0   ;;  %v3043_v48 = vmax.f32 %v3009_v24, %v6657_v43  ;;  %v2939_v9 = vld [vmem:[#allocation4 + $0x1] sm:$0xff]  ;;  %vm3117_vm12 = vcmp.eq.s32.totalorder %v6673_v38, %v3107_v36 }
 0x3e2   : > { %v3058_v0 = vmax.f32 %v3024_v52, %v6620_v45  ;;  %v3057_v51 = vmax.f32 %v3023_v35, %v6631_v23  ;;  %v6676_v45 = vadd.s32 %v3098_v17, %v3082_v41  ;;  %v3046_v8 = vmax.f32 %v3012_v16, %v6647_v63  ;;  %v2942_v23 = vld [vmem:[#allocation4 + $0x19] sm:$0xff] }
 0x3e3   : > { %3152 = vmatpush.msrb.mxu1 %v3048_v44  ;;  %v2974_v63 = vmax.f32 %v2910_v32, %v2942_v23  ;;  %v3076_v41 = vshra.s32 %v5250_v37, 3  ;;  %v2972_v7 = vmax.f32 %v2908_v10, %v2940_v59  ;;  %v3007_v35 = vmax.f32 %v2973_v3, %v2911_v11 }
 0x3e4   : > { %3199 = vmatpush.msrb.mxu2 %v3058_v0  ;;  %vm3115_vm11 = vcmp.eq.s32.totalorder %v6673_v38, %v6676_v45  ;;  %v2971_v20 = vmax.f32 %v2907_v22, %v2939_v9  ;;  %v3100_v53 = vmul.u32 2, %v6693_v13  ;;  %vm3114_vm2 = vcmp.eq.s32.totalorder %v6660_v4, %v6676_v45 }
 0x3e5   : > { %3153 = vmatpush.msrb.mxu1 %v3047_v5  ;;  %v3008_v50 = vmax.f32 %v2974_v63, %v2912_v21  ;;  %v3006_v17 = vmax.f32 %v2972_v7, %v2910_v32  ;;  %v3041_v39 = vmax.f32 %v3007_v35, %v2943_v56  ;;  %v3084_v43 = vmul.u32 32, %v3076_v41 }
 0x3e6   : > { %3200 = vmatpush.msrb.mxu2 %v3057_v51  ;;  %v3005_v44 = vmax.f32 %v2971_v20, %v2909_v27  ;;  %v3085_v46 = vmul.u32 32, %v3077_v28  ;;  %vm3116_vm4 = vcmp.eq.s32.totalorder %v6660_v4, %v3107_v36  ;;  %v3078_v51 = vshra.s32 %v5304_v55, 3 }
 0x3e7   : > { %3154 = vmatpush.msrb.mxu1 %v3046_v8  ;;  %v3042_v52 = vmax.f32 %v3008_v50, %v2944_v57  ;;  %v3040_v0 = vmax.f32 %v3006_v17, %v2942_v23  ;;  %v3108_v37 = vadd.s32 %v3100_v53, %v3084_v43  ;;  %v6702_v57 = vand.u32 7, %v5236_v31 }
 0x3e8   : > { %3201 = vmatpush.msrb.mxu2 %v3056_v62  ;;  %v3039_v47 = vmax.f32 %v3005_v44, %v2941_v25  ;;  %v6711_v21 = vand.u32 7, %v5304_v55  ;;  %v3086_v31 = vmul.u32 32, %v3078_v51  ;;  %v6720_v40 = vand.u32 7, %v5301_v54 }
 0x3e9   : > { %3155 = vmatpush.msrb.mxu1 %v3045_v61  ;;  %vm3119_vm3 = vcmp.eq.s32.totalorder %v6673_v38, %v3108_v37  ;;  %v3101_v5 = vmul.u32 2, %v6702_v57  ;;  %vm3118_vm7 = vcmp.eq.s32.totalorder %v6660_v4, %v3108_v37  ;;  %v3087_v55 = vmul.u32 32, %v3079_v58 }
 0x3ea   : > { %3202 = vmatpush.msrb.mxu2 %v3055_v34  ;;  %v3102_v56 = vmul.u32 2, %v6711_v21  ;;  %v3103_v12 = vmul.u32 2, %v6720_v40  ;;  %v3080_v62 = vshra.s32 %v5380_v19, 3  ;;  %v6729_v26 = vand.u32 7, %v5380_v19 }
 0x3eb   : > { %4692 = vmatmul.msk.f32.vlgmr.msrb.gmra.mxu2 %vm3115_vm11, %v5032_v33  ;;  %3156 = vmatpush.msrb.mxu1 %v3044_v49  ;;  %v3109_v16 = vadd.s32 %v3101_v5, %v3085_v46  ;;  %v3081_v61 = vshra.s32 %v5377_v18, 3  ;;  %v6738_v14 = vand.u32 7, %v5377_v18  ;;  %v3296_v18 = vld [vmem:[#allocation2 + $0x1] sm:$0xff] }
 0x3ec   : > { %v3110_v45 = vadd.s32 %v3102_v56, %v3086_v31  ;;  %v3111_v8 = vadd.s32 %v3103_v12, %v3087_v55  ;;  %v3088_v54 = vmul.u32 32, %v3080_v62  ;;  %v3104_v11 = vmul.u32 2, %v6729_v26  ;;  %3312 = vrot.lane.b32.xlu1 %v3296_v18, %s5033_s0 }
 0x3ed   : > { %3157 = vmatpush.msrb.mxu1 %v3043_v48  ;;  %vm3121_vm5 = vcmp.eq.s32.totalorder %v6673_v38, %v3109_v16  ;;  %vm3120_vm1 = vcmp.eq.s32.totalorder %v6660_v4, %v3109_v16  ;;  %v3089_v19 = vmul.u32 32, %v3081_v61  ;;  %v3105_v29 = vmul.u32 2, %v6738_v14 }
 0x3ee   : > { %vm3123_vm8 = vcmp.eq.s32.totalorder %v6673_v38, %v3110_v45  ;;  %vm3125_vm9 = vcmp.eq.s32.totalorder %v6673_v38, %v3111_v8  ;;  %vm3122_vm13 = vcmp.eq.s32.totalorder %v6660_v4, %v3110_v45  ;;  %v3112_v23 = vadd.s32 %v3104_v11, %v3088_v54 }
 0x3ef   : > { %3158 = vmatpush.msrb.mxu1 %v3042_v52  ;;  %vm3124_vm15 = vcmp.eq.s32.totalorder %v6660_v4, %v3111_v8  ;;  %v3113_v34 = vadd.s32 %v3105_v29, %v3089_v19 }
 0x3f0   : > { %vm3127_vm14 = vcmp.eq.s32.totalorder %v6673_v38, %v3112_v23  ;;  %vm3126_vm11 = vcmp.eq.s32.totalorder %v6660_v4, %v3112_v23 }
 0x3f1   : > { %3159 = vmatpush.msrb.mxu1 %v3041_v39  ;;  %vm3129_vm0 = vcmp.eq.s32.totalorder %v6673_v38, %v3113_v34 }
 0x3f3   : > { %4693 = vmatmul.msk.f32.gmra.mxu2 %vm3117_vm12, %v5032_v33  ;;  %3160 = vmatpush.msrb.mxu1 %v3040_v0  ;;  %vm3128_vm12 = vcmp.eq.s32.totalorder %v6660_v4, %v3113_v34 }
 0x3f5   : > { %3161 = vmatpush.msrb.mxu1 %v3039_v47 }
 0x3f6   : > { %4684 = vmatmul.msk.f32.vlgmr.msrb.gmra.mxu1 %vm3114_vm2, %v5032_v33  ;;  %vm3256_vm2 = vcmp.lt.s32.totalorder %v6651_v30, 7 }
 0x3f7   : > { %v6757_v63 = vsel %vm3256_vm2, 1.0, %v5022_v1  ;;  %vm3952_vm2 = vcmask 126976  }
 0x3fb   : > { %4694 = vmatmul.msk.f32.gmra.mxu2 %vm3119_vm3, %v5032_v33  ;;  %vm3241_vm3 = vcmp.gt.s32.totalorder %v6680_v15, 0 }
 0x3fc   : > { %v3249_v49 = vsel %vm3241_vm3, 1.0, %v5022_v1  ;;  %vm3336_vm3 = vcmask 130112  }
 0x3fe   : > { %4685 = vmatmul.msk.f32.gmra.mxu1 %vm3116_vm4, %v5032_v33  ;;  %vm3240_vm4 = vcmp.gt.s32.totalorder %v6651_v30, 0 }
 0x3ff   : > { %v6768_v10 = vsel %vm3240_vm4, 1.0, %v5022_v1  ;;  %vm3450_vm4 = vcmask 261312  }
 0x403   : > { %4695 = vmatmul.msk.f32.gmra.mxu2 %vm3121_vm5, %v5032_v33  ;;  %vm3257_vm5 = vcmp.lt.s32.totalorder %v6680_v15, 7 }
 0x404   : > { %v6772_v36 = vsel %vm3257_vm5, 1.0, %v5022_v1  ;;  %vm3789_vm5 = vcmask 1043456  }
 0x406   : > { %4686 = vmatmul.msk.f32.gmra.mxu1 %vm3118_vm7, %v5032_v33  ;;  %vm3242_vm7 = vcmp.gt.s32.totalorder %v6693_v13, 0 }
 0x407   : > { %v6776_v7 = vsel %vm3242_vm7, 1.0, %v5022_v1  ;;  %vm3262_vm7 = vcmp.lt.s32.totalorder %v6729_v26, 7 }
 0x40b   : > { %4696 = vmatmul.msk.f32.gmra.mxu2 %vm3123_vm8, %v5032_v33  ;;  %vm3243_vm8 = vcmp.gt.s32.totalorder %v6702_v57, 0 }
 0x40c   : > { %v6787_v53 = vsel %vm3243_vm8, 1.0, %v5022_v1  ;;  %vm3499_vm8 = vcmask 326912  }
 0x40e   : > { %4687 = vmatmul.msk.f32.gmra.mxu1 %vm3120_vm1, %v5032_v33  ;;  %vm3244_vm1 = vcmp.gt.s32.totalorder %v6711_v21, 0 }
 0x40f   : > { %v6799_v31 = vsel %vm3244_vm1, 1.0, %v5022_v1  ;;  %vm3263_vm1 = vcmp.lt.s32.totalorder %v6738_v14, 7 }
 0x413   : > { %4697 = vmatmul.msk.f32.gmra.mxu2 %vm3125_vm9, %v5032_v33  ;;  %vm3245_vm9 = vcmp.gt.s32.totalorder %v6720_v40, 0 }
 0x414   : > { %v6810_v54 = vsel %vm3245_vm9, 1.0, %v5022_v1  ;;  %vm3556_vm9 = vcmask 392512  }
 0x416   : > { %4688 = vmatmul.msk.f32.gmra.mxu1 %vm3122_vm13, %v5032_v33  ;;  %vm3259_vm13 = vcmp.lt.s32.totalorder %v6702_v57, 7 }
 0x41b   : > { %4698 = vmatmul.msk.f32.gmra.mxu2 %vm3127_vm14, %v5032_v33  ;;  %vm3246_vm14 = vcmp.gt.s32.totalorder %v6729_v26, 0  ;;  %v4850_v26 = vld [vmem:[%s7237_s4 + $0x8] sm:$0xff] }
 0x41e   : > { %4689 = vmatmul.msk.f32.gmra.mxu1 %vm3124_vm15, %v5032_v33  ;;  %vm3258_vm15 = vcmp.lt.s32.totalorder %v6693_v13, 7 }
 0x423   : > { %4699 = vmatmul.msk.f32.gmra.mxu2 %vm3129_vm0, %v5032_v33  ;;  %vm3247_vm0 = vcmp.gt.s32.totalorder %v6738_v14, 0 }
 0x426   : > { %4690 = vmatmul.msk.f32.gmra.mxu1 %vm3126_vm11, %v5032_v33  ;;  %vm3260_vm11 = vcmp.lt.s32.totalorder %v6711_v21, 7 }
 0x42e   : > { %4691 = vmatmul.msk.f32.gmra.mxu1 %vm3128_vm12, %v5032_v33  ;;  %vm3261_vm12 = vcmp.lt.s32.totalorder %v6720_v40, 7 }
 0x46e   : > { %v3204_v32 = vpop.f32.mrf.mxu2 }
 0x473   : > { %v3163_v25 = vpop.f32.mrf.mxu1 }
 0x474   : > { %v3205_v60 = vadd.f32 %v3204_v32, %v3163_v25  ;;  %v6832_v32 = vsel %vm3246_vm14, 1.0, %v5022_v1  ;;  %v3267_v25 = vsel %vm3259_vm13, 1.0, %v5022_v1  ;;  %vm3613_vm13 = vcmask 458112  }
 0x475   : > { %vm3662_vm14 = vcmask 523712  }
 0x476   : > { %v3207_v42 = vpop.f32.mrf.mxu2  ;;  %3230 = vst.msk [vmem:[#allocation2 + $0x9] sm:$0xff] %vm2870_vm6, %v3205_v60 }
 0x47b   : > { %v3166_v38 = vpop.f32.mrf.mxu1 }
 0x47c   : > { %v3208_v24 = vadd.f32 %v3207_v42, %v3166_v38  ;;  %v3266_v42 = vsel %vm3258_vm15, 1.0, %v5022_v1  ;;  %vm3719_vm15 = vcmask 589312  }
 0x47d   : > { %v3297_v27 = vld [vmem:[#allocation2 + $0x9] sm:$0xff] }
 0x47e   : > { %v3345_v59 = vld [vmem:[#allocation2 + $0x2] sm:$0xff]  ;;  %3231 = vst.msk [vmem:[#allocation2 + $0x11] sm:$0xff] %vm2870_vm6, %v3208_v24  ;;  %3314 = vrot.lane.b32.xlu2 %v3297_v27, %s5033_s0  ;;  %v3210_v48 = vpop.f32.mrf.mxu2 }
 0x47f   : > { %v3402_v50 = vld [vmem:[#allocation2 + $0x8] sm:$0xff]  ;;  %v3353_v33 = vmul.f32 %v3345_v59, %v6757_v63 }
 0x480   : > { %v3281_v3 = vmul.f32 %v3402_v50, %v3249_v49  ;;  %v3410_v30 = vmul.f32 %v3402_v50, %v6768_v10 }
 0x481   : > { %3369 = vrot.lane.b32.xlu0 %v3353_v33, %s5034_s20 }
 0x482   : > { %3289 = vst.msk [vmem:[#allocation3 + $0x18] sm:$0xff] %vm2870_vm6, %v3281_v3 }
 0x483   : > { %v3169_v9 = vpop.f32.mrf.mxu1 }
 0x484   : > { %v3211_v41 = vadd.f32 %v3210_v48, %v3169_v9 }
 0x485   : > { %v3346_v52 = vld [vmem:[#allocation2 + $0xa] sm:$0xff] }
 0x486   : > { %v3403_v35 = vld [vmem:[#allocation2 + $0x10] sm:$0xff]  ;;  %3232 = vst.msk [vmem:[#allocation2 + $0x19] sm:$0xff] %vm2870_vm6, %v3211_v41  ;;  %3426 = vrot.lane.b32.xlu2 %v3410_v30, %s7285_s23  ;;  %v3354_v15 = vmul.f32 %v3346_v52, %v6772_v36  ;;  %v3213_v20 = vpop.f32.mrf.mxu2  ;;  %v3516_v47 = vmul.f32 %v3346_v52, %v6757_v63  ;;  %v6858_v52 = vsel %vm3247_vm0, 1.0, %v5022_v1  ;;  %vm3776_vm0 = vcmask 588800  }
 0x487   : > { %v3411_v22 = vmul.f32 %v3403_v35, %v3249_v49  ;;  %v3282_v17 = vmul.f32 %v3403_v35, %v6776_v7  ;;  %v3460_v44 = vld [vmem:[#allocation2 + $0x11] sm:$0xff]  ;;  %v3573_v16 = vmul.f32 %v3403_v35, %v6768_v10 }
 0x488   : > { %3371 = vrot.lane.b32.xlu1 %v3354_v15, %s5034_s20 }
 0x489   : > { %3428 = vrot.lane.b32.xlu0 %v3411_v22, %s7285_s23  ;;  %3290 = vst.msk [vmem:[#allocation3 + $0x30] sm:$0xff] %vm2870_vm6, %v3282_v17 }
 0x48b   : > { %v3172_v39 = vpop.f32.mrf.mxu1 }
 0x48c   : > { %v3214_v43 = vadd.f32 %v3213_v20, %v3172_v39 }
 0x48d   : > { %v3566_v0 = vld [vmem:[#allocation2 + $0x18] sm:$0xff] }
 0x48e   : > { %3233 = vst.msk [vmem:[#allocation2 + $0x21] sm:$0xff] %vm2870_vm6, %v3214_v43  ;;  %3477 = vrot.lane.b32.xlu2 %v3460_v44, %s5035_s27  ;;  %v3283_v37 = vmul.f32 %v3566_v0, %v6787_v53  ;;  %v3216_v28 = vpop.f32.mrf.mxu2  ;;  %v3509_v46 = vld [vmem:[#allocation2 + $0x12] sm:$0xff]  ;;  %v3574_v58 = vmul.f32 %v3566_v0, %v3249_v49 }
 0x48f   : > { %v3517_v45 = vmul.f32 %v3509_v46, %v6772_v36  ;;  %v3623_v11 = vld [vmem:[#allocation2 + $0x19] sm:$0xff]  ;;  %v3679_v61 = vmul.f32 %v3509_v46, %v6757_v63  ;;  %v3355_v13 = vmul.f32 %v3509_v46, %v3266_v42  ;;  %v3412_v63 = vmul.f32 %v3566_v0, %v6776_v7 }
 0x490   : > { %3475 = vrot.lane.b32.xlu1 %v3297_v27, %s5035_s27  ;;  %3291 = vst.msk [vmem:[#allocation3 + $0x48] sm:$0xff] %vm2870_vm6, %v3283_v37  ;;  %v3269_v37 = vsel %vm3261_vm12, 1.0, %v5022_v1 }
 0x491   : > { %3532 = vrot.lane.b32.xlu0 %v3516_v47, %s5036_s26  ;;  %v3313_v47 = vpop.permute.xlu1 %3312  ;;  %3956 = vst.msk [vmem:[#allocation2 + $0x15] sm:$0x1f] %vm3952_vm2, %v5022_v1 }
 0x493   : > { %v3175_v5 = vpop.f32.mrf.mxu1 }
 0x494   : > { %v3217_v51 = vadd.f32 %v3216_v28, %v3175_v5 }
 0x495   : > { %v3405_v56 = vld [vmem:[#allocation2 + $0x20] sm:$0xff] }
 0x496   : > { %3589 = vrot.lane.b32.xlu2 %v3573_v16, %s5037_s30  ;;  %3234 = vst.msk [vmem:[#allocation2 + $0x29] sm:$0xff] %vm2870_vm6, %v3217_v51  ;;  %v3284_v55 = vmul.f32 %v3405_v56, %v6799_v31  ;;  %v3219_v12 = vpop.f32.mrf.mxu2  ;;  %v3672_v29 = vld [vmem:[#allocation2 + $0x1a] sm:$0xff]  ;;  %v3413_v59 = vmul.f32 %v3405_v56, %v6787_v53  ;;  %v3575_v9 = vmul.f32 %v3405_v56, %v6776_v7 }
 0x497   : > { %v3680_v34 = vmul.f32 %v3672_v29, %v6772_v36  ;;  %v3356_v38 = vmul.f32 %v3672_v29, %v3267_v25  ;;  %v3462_v50 = vld [vmem:[#allocation2 + $0x21] sm:$0xff]  ;;  %v3518_v48 = vmul.f32 %v3672_v29, %v3266_v42 }
 0x498   : > { %3534 = vrot.lane.b32.xlu1 %v3517_v45, %s5036_s26  ;;  %3292 = vst.msk [vmem:[#allocation3 + $0x60] sm:$0xff] %vm2870_vm6, %v3284_v55 }
 0x499   : > { %3591 = vrot.lane.b32.xlu0 %v3574_v58, %s5037_s30 }
 0x49b   : > { %v3178_v8 = vpop.f32.mrf.mxu1 }
 0x49c   : > { %v3220_v62 = vadd.f32 %v3219_v12, %v3178_v8 }
 0x49d   : > { %v6812_v23 = vld [vmem:[#allocation2 + $0x28] sm:$0xff] }
 0x49e   : > { %3640 = vrot.lane.b32.xlu2 %v3623_v11, %s5038_s16  ;;  %3235 = vst.msk [vmem:[#allocation2 + $0x31] sm:$0xff] %vm2870_vm6, %v3220_v62  ;;  %v3285_v19 = vmul.f32 %v6812_v23, %v6810_v54  ;;  %v3222_v24 = vpop.f32.mrf.mxu2  ;;  %v3511_v33 = vld [vmem:[#allocation2 + $0x22] sm:$0xff]  ;;  %v3576_v7 = vmul.f32 %v6812_v23, %v6787_v53  ;;  %v3268_v53 = vsel %vm3260_vm11, 1.0, %v5022_v1  ;;  %v3414_v46 = vmul.f32 %v6812_v23, %v6799_v31 }
 0x49f   : > { %v3519_v3 = vmul.f32 %v3511_v33, %v3267_v25  ;;  %v3625_v17 = vld [vmem:[#allocation2 + $0x29] sm:$0xff]  ;;  %v3681_v43 = vmul.f32 %v3511_v33, %v3266_v42  ;;  %v3357_v21 = vmul.f32 %v3511_v33, %v3268_v53  ;;  %v3270_v42 = vsel %vm3262_vm7, 1.0, %v5022_v1 }
 0x4a0   : > { %3638 = vrot.lane.b32.xlu1 %v3460_v44, %s5038_s16  ;;  %3293 = vst.msk [vmem:[#allocation3 + $0x78] sm:$0xff] %vm2870_vm6, %v3285_v19  ;;  %v4852_v19 = vld [vmem:[%s7237_s4 + $0x18] sm:$0xff]  ;;  %vm4202_vm11 = vcmask 258048  }
 0x4a1   : > { %3695 = vrot.lane.b32.xlu0 %v3679_v61, %s5039_s17 }
 0x4a3   : > { %v3181_v49 = vpop.f32.mrf.mxu1 }
 0x4a4   : > { %v3223_v27 = vadd.f32 %v3222_v24, %v3181_v49 }
 0x4a5   : > { %v6829_v18 = vld [vmem:[#allocation2 + $0x30] sm:$0xff] }
 0x4a6   : > { %3316 = vrot.lane.b32.xlu2 %v3460_v44, %s5033_s0  ;;  %v6837_v60 = vmul.f32 %v6829_v18, %v6799_v31  ;;  %v3286_v57 = vmul.f32 %v6829_v18, %v6832_v32  ;;  %3236 = vst.msk [vmem:[#allocation2 + $0x39] sm:$0xff] %vm2870_vm6, %v3223_v27  ;;  %v3225_v41 = vpop.f32.mrf.mxu2  ;;  %v3674_v20 = vld [vmem:[#allocation2 + $0x2a] sm:$0xff]  ;;  %v3272_v44 = vld [vmem:[#allocation2] sm:$0xff]  ;;  %v3415_v28 = vmul.f32 %v6829_v18, %v6810_v54  ;;  %v3271_v27 = vsel %vm3263_vm1, 1.0, %v5022_v1 }
 0x4a7   : > { %v3682_v39 = vmul.f32 %v3674_v20, %v3267_v25  ;;  %v3280_v0 = vmul.f32 %v3272_v44, %v6768_v10  ;;  %3953 = vst.msk [vmem:[#allocation2] sm:$0x1f] %vm3952_vm2, %v5022_v1  ;;  %v3358_v40 = vmul.f32 %v3674_v20, %v3269_v37  ;;  %v3520_v51 = vmul.f32 %v3674_v20, %v3268_v53  ;;  %v3464_v45 = vld [vmem:[#allocation2 + $0x31] sm:$0xff]  ;;  %v3748_v31 = vld [vmem:[%s7237_s4 + $0x20] sm:$0xf] }
 0x4a8   : > { %3697 = vrot.lane.b32.xlu1 %v3680_v34, %s5039_s17  ;;  %3294 = vst.msk [vmem:[#allocation3 + $0x90] sm:$0xff] %vm2870_vm6, %v3286_v57  ;;  %v3766_v8 = vunpack.c.l.b16 %v3748_v31  ;;  %v4851_v25 = vld [vmem:[%s7237_s4 + $0x10] sm:$0xff]  ;;  %vm3922_vm2 = vcmask 523264   ;;  %vm3981_vm1 = vcmask 261248  }
 0x4a9   : > { %3318 = vrot.lane.b32.xlu0 %v3623_v11, %s5033_s0  ;;  %3288 = vst.msk [vmem:[#allocation3] sm:$0xff] %vm2870_vm6, %v3280_v0  ;;  %v3678_v0 = vld [vmem:[#allocation2 + $0x4a] sm:$0xff] }
 0x4aa   : > { %3337 = vst.msk [vmem:[#allocation3] sm:$0xff] %vm3336_vm3, %v3313_v47 }
 0x4ab   : > { %v3184_v36 = vpop.f32.mrf.mxu1 }
 0x4ac   : > { %v3226_v35 = vadd.f32 %v3225_v41, %v3184_v36 }
 0x4ad   : > { %v3570_v30 = vld [vmem:[#allocation2 + $0x38] sm:$0xff] }
 0x4ae   : > { %3375 = vrot.lane.b32.xlu2 %v3356_v38, %s5034_s20  ;;  %v6861_v15 = vmul.f32 %v3570_v30, %v6832_v32  ;;  %v3287_v22 = vmul.f32 %v3570_v30, %v6858_v52  ;;  %3237 = vst.msk [vmem:[#allocation2 + $0x41] sm:$0xff] %vm2870_vm6, %v3226_v35  ;;  %v3513_v16 = vld [vmem:[#allocation2 + $0x32] sm:$0xff]  ;;  %v3578_v55 = vmul.f32 %v3570_v30, %v6810_v54 }
 0x4af   : > { %v3521_v56 = vmul.f32 %v3513_v16, %v3269_v37  ;;  %v3683_v23 = vmul.f32 %v3513_v16, %v3268_v53  ;;  %v3627_v34 = vld [vmem:[#allocation2 + $0x39] sm:$0xff]  ;;  %v3359_v38 = vmul.f32 %v3513_v16, %v3270_v42  ;;  %v3629_v53 = vld [vmem:[#allocation2 + $0x49] sm:$0xff] }
 0x4b0   : > { %3373 = vrot.lane.b32.xlu1 %v3355_v13, %s5034_s20  ;;  %3295 = vst.msk [vmem:[#allocation3 + $0xa8] sm:$0xff] %vm2870_vm6, %v3287_v22  ;;  %vm3393_vm6 = vcmask 195712  }
 0x4b1   : > { %3430 = vrot.lane.b32.xlu0 %v3412_v63, %s7285_s23  ;;  %v4849_v63 = vld [vmem:[%s7237_s4] sm:$0xff] }
 0x4b5   : > { %v3676_v54 = vld [vmem:[#allocation2 + $0x3a] sm:$0xff]  ;;  %v3572_v22 = vld [vmem:[#allocation2 + $0x48] sm:$0xff] }
 0x4b6   : > { %3479 = vrot.lane.b32.xlu2 %v3623_v11, %s5035_s27  ;;  %v3771_v11 = vpack.c.b16 %v3766_v8, %v3766_v8  ;;  %v3684_v29 = vmul.f32 %v3676_v54, %v3269_v37  ;;  %v3360_v14 = vmul.f32 %v3676_v54, %v3271_v27  ;;  %v3522_v36 = vmul.f32 %v3676_v54, %v3270_v42 }
 0x4b7   : > { %v3580_v20 = vmul.f32 %v3572_v22, %v6858_v52 }
 0x4b8   : > { %3432 = vrot.lane.b32.xlu1 %v3413_v59, %s7285_s23  ;;  %v3791_v61 = vsel %vm3789_vm5, %v3771_v11, 0  ;;  %v3409_v59 = vld [vmem:[#allocation2 + $0x40] sm:$0xff] }
 0x4b9   : > { %3481 = vrot.lane.b32.xlu0 %v3462_v50, %s5035_s27  ;;  %3796 = vmatpush.bf16.msrb.mxu3 %v3791_v61 }
 0x4bd   : > { %3797 = vmatpush.bf16.msrb.mxu3 %v4852_v19 }
 0x4be   : > { %3538 = vrot.lane.b32.xlu2 %v3519_v3, %s5036_s26 }
 0x4c0   : > { %3536 = vrot.lane.b32.xlu1 %v3518_v48, %s5036_s26 }
 0x4c1   : > { %3593 = vrot.lane.b32.xlu0 %v3575_v9, %s5037_s30  ;;  %3798 = vmatpush.bf16.msrb.mxu3 %v4851_v25  ;;  %v3466_v9 = vld [vmem:[#allocation2 + $0x41] sm:$0xff] }
 0x4c5   : > { %3799 = vmatpush.bf16.msrb.mxu3 %v4850_v26 }
 0x4c6   : > { %3642 = vrot.lane.b32.xlu2 %v3462_v50, %s5038_s16 }
 0x4c8   : > { %3595 = vrot.lane.b32.xlu1 %v3576_v7, %s5037_s30  ;;  %v3579_v7 = vmul.f32 %v3409_v59, %v6832_v32 }
 0x4c9   : > { %3644 = vrot.lane.b32.xlu0 %v3625_v17, %s5038_s16  ;;  %3800 = vmatpush.bf16.msrb.mxu3 %v4849_v63 }
 0x4ce   : > { %3701 = vrot.lane.b32.xlu2 %v3682_v39, %s5039_s17 }
 0x4d0   : > { %3699 = vrot.lane.b32.xlu1 %v3681_v43, %s5039_s17 }
 0x4d1   : > { %3320 = vrot.lane.b32.xlu0 %v3462_v50, %s5033_s0  ;;  %v3417_v50 = vmul.f32 %v3409_v59, %v6858_v52 }
 0x4d6   : > { %3377 = vrot.lane.b32.xlu2 %v3357_v21, %s5034_s20 }
 0x4d8   : > { %3322 = vrot.lane.b32.xlu1 %v3625_v17, %s5033_s0  ;;  %v3315_v10 = vpop.permute.xlu2 %3314 }
 0x4d9   : > { %3379 = vrot.lane.b32.xlu0 %v3358_v40, %s5034_s20  ;;  %3338 = vst.msk [vmem:[#allocation3 + $0x18] sm:$0xff] %vm3336_vm3, %v3315_v10 }
 0x4de   : > { %3436 = vrot.lane.b32.xlu2 %v3415_v28, %s7285_s23  ;;  %v3686_v28 = vmul.f32 %v3678_v0, %v3271_v27 }
 0x4e0   : > { %3434 = vrot.lane.b32.xlu1 %v3414_v46, %s7285_s23  ;;  %v3427_v5 = vpop.permute.xlu2 %3426 }
 0x4e1   : > { %3483 = vrot.lane.b32.xlu0 %v3625_v17, %s5035_s27 }
 0x4e6   : > { %3540 = vrot.lane.b32.xlu2 %v3520_v51, %s5036_s26 }
 0x4e8   : > { %3485 = vrot.lane.b32.xlu1 %v3464_v45, %s5035_s27  ;;  %v3478_v58 = vpop.permute.xlu2 %3477 }
 0x4e9   : > { %3542 = vrot.lane.b32.xlu0 %v3521_v56, %s5036_s26 }
 0x4ee   : > { %3599 = vrot.lane.b32.xlu2 %v3578_v55, %s5037_s30 }
 0x4f0   : > { %3597 = vrot.lane.b32.xlu1 %v6837_v60, %s5037_s30  ;;  %v3590_v12 = vpop.permute.xlu2 %3589 }
 0x4f1   : > { %3646 = vrot.lane.b32.xlu0 %v3464_v45, %s5038_s16 }
 0x4f3   : > { %v3370_v62 = vpop.permute.xlu0 %3369 }
 0x4f4   : > { %3394 = vst.msk [vmem:[#allocation3] sm:$0xff] %vm3393_vm6, %v3370_v62 }
 0x4f5   : > { %3451 = vst.msk [vmem:[#allocation3] sm:$0xff] %vm3450_vm4, %v3427_v5 }
 0x4f6   : > { %3703 = vrot.lane.b32.xlu2 %v3683_v23, %s5039_s17 }
 0x4f8   : > { %3648 = vrot.lane.b32.xlu1 %v3627_v34, %s5038_s16  ;;  %v3641_v18 = vpop.permute.xlu2 %3640 }
 0x4f9   : > { %3705 = vrot.lane.b32.xlu0 %v3684_v29, %s5039_s17 }
 0x4fa   : > { %v3372_v60 = vpop.permute.xlu1 %3371 }
 0x4fb   : > { %v3429_v57 = vpop.permute.xlu0 %3428  ;;  %3395 = vst.msk [vmem:[#allocation3 + $0x18] sm:$0xff] %vm3393_vm6, %v3372_v60 }
 0x4fc   : > { %3452 = vst.msk [vmem:[#allocation3 + $0x18] sm:$0xff] %vm3450_vm4, %v3429_v57 }
 0x4fd   : > { %3501 = vst.msk [vmem:[#allocation3 + $0x18] sm:$0xff] %vm3499_vm8, %v3478_v58 }
 0x4fe   : > { %3326 = vrot.lane.b32.xlu2 %v3627_v34, %s5033_s0 }
 0x500   : > { %3324 = vrot.lane.b32.xlu1 %v3464_v45, %s5033_s0  ;;  %v3317_v13 = vpop.permute.xlu2 %3316 }
 0x501   : > { %3381 = vrot.lane.b32.xlu0 %v3359_v38, %s5034_s20  ;;  %3339 = vst.msk [vmem:[#allocation3 + $0x30] sm:$0xff] %vm3336_vm3, %v3317_v13 }
 0x502   : > { %v3476_v49 = vpop.permute.xlu1 %3475 }
 0x503   : > { %v3533_v24 = vpop.permute.xlu0 %3532  ;;  %3500 = vst.msk [vmem:[#allocation3] sm:$0xff] %vm3499_vm8, %v3476_v49 }
 0x504   : > { %3557 = vst.msk [vmem:[#allocation3] sm:$0xff] %vm3556_vm9, %v3533_v24 }
 0x505   : > { %3614 = vst.msk [vmem:[#allocation3] sm:$0xff] %vm3613_vm13, %v3590_v12 }
 0x506   : > { %3438 = vrot.lane.b32.xlu2 %v6861_v15, %s7285_s23  ;;  %v3515_v15 = vld [vmem:[#allocation2 + $0x42] sm:$0xff] }
 0x507   : > { %v3523_v17 = vmul.f32 %v3515_v15, %v3271_v27  ;;  %v3685_v32 = vmul.f32 %v3515_v15, %v3270_v42 }
 0x508   : > { %3383 = vrot.lane.b32.xlu1 %v3360_v14, %s5034_s20  ;;  %v3376_v33 = vpop.permute.xlu2 %3375 }
 0x509   : > { %3440 = vrot.lane.b32.xlu0 %v3417_v50, %s7285_s23 }
 0x50a   : > { %v3535_v3 = vpop.permute.xlu1 %3534 }
 0x50b   : > { %v3592_v48 = vpop.permute.xlu0 %3591  ;;  %3558 = vst.msk [vmem:[#allocation3 + $0x18] sm:$0xff] %vm3556_vm9, %v3535_v3 }
 0x50c   : > { %3615 = vst.msk [vmem:[#allocation3 + $0x18] sm:$0xff] %vm3613_vm13, %v3592_v48 }
 0x50d   : > { %3664 = vst.msk [vmem:[#allocation3 + $0x18] sm:$0xff] %vm3662_vm14, %v3641_v18 }
 0x50e   : > { %3489 = vrot.lane.b32.xlu2 %v3466_v9, %s5035_s27 }
 0x510   : > { %3487 = vrot.lane.b32.xlu1 %v3627_v34, %s5035_s27  ;;  %v3480_v41 = vpop.permute.xlu2 %3479 }
 0x511   : > { %3544 = vrot.lane.b32.xlu0 %v3522_v36, %s5036_s26 }
 0x512   : > { %v3639_v30 = vpop.permute.xlu1 %3638 }
 0x513   : > { %v3696_v35 = vpop.permute.xlu0 %3695  ;;  %3663 = vst.msk [vmem:[#allocation3] sm:$0xff] %vm3662_vm14, %v3639_v30 }
 0x514   : > { %3720 = vst.msk [vmem:[#allocation3] sm:$0xff] %vm3719_vm15, %v3696_v35 }
 0x516   : > { %3601 = vrot.lane.b32.xlu2 %v3579_v7, %s5037_s30 }
 0x518   : > { %3546 = vrot.lane.b32.xlu1 %v3523_v17, %s5036_s26  ;;  %v3539_v39 = vpop.permute.xlu2 %3538 }
 0x519   : > { %3603 = vrot.lane.b32.xlu0 %v3580_v20, %s5037_s30 }
 0x51a   : > { %v3698_v43 = vpop.permute.xlu1 %3697 }
 0x51b   : > { %v3319_v44 = vpop.permute.xlu0 %3318  ;;  %3721 = vst.msk [vmem:[#allocation3 + $0x18] sm:$0xff] %vm3719_vm15, %v3698_v43  ;;  %v3728_v21 = vld [vmem:[#allocation3] sm:$0xff] }
 0x51c   : > { %3340 = vst.msk [vmem:[#allocation3 + $0x48] sm:$0xff] %vm3336_vm3, %v3319_v44  ;;  %v4950_v44 = vld [vmem:[%s7238_s5] ss:$0 sm:$0xff] }
 0x51d   : > { %3397 = vst.msk [vmem:[#allocation3 + $0x48] sm:$0xff] %vm3393_vm6, %v3376_v33 }
 0x51e   : > { %3652 = vrot.lane.b32.xlu2 %v3629_v53, %s5038_s16  ;;  %v4951_v53 = vld [vmem:[%s7239_s6] ss:$0 sm:$0xff] }
 0x520   : > { %3650 = vrot.lane.b32.xlu1 %v3466_v9, %s5038_s16  ;;  %v3643_v52 = vpop.permute.xlu2 %3642 }
 0x521   : > { %3707 = vrot.lane.b32.xlu0 %v3685_v32, %s5039_s17 }
 0x522   : > { %v3374_v47 = vpop.permute.xlu1 %3373  ;;  %v3729_v40 = vld [vmem:[#allocation3 + $0x18] sm:$0xff] }
 0x523   : > { %v3431_v37 = vpop.permute.xlu0 %3430  ;;  %3396 = vst.msk [vmem:[#allocation3 + $0x30] sm:$0xff] %vm3393_vm6, %v3374_v47  ;;  %v3736_v10 = vpack.c.bf16 %v3729_v40, %v3728_v21 }
 0x524   : > { %3453 = vst.msk [vmem:[#allocation3 + $0x30] sm:$0xff] %vm3450_vm4, %v3431_v37 }
 0x525   : > { %3502 = vst.msk [vmem:[#allocation3 + $0x30] sm:$0xff] %vm3499_vm8, %v3480_v41  ;;  %4716 = vmatmul.msk.bf16.vlgmr.msrb.gmra.mxu3 %vm3776_vm0, %v3736_v10 }
 0x528   : > { %3709 = vrot.lane.b32.xlu1 %v3686_v28, %s5039_s17  ;;  %v3702_v46 = vpop.permute.xlu2 %3701 }
 0x52a   : > { %v3433_v5 = vpop.permute.xlu1 %3432 }
 0x52b   : > { %v3482_v16 = vpop.permute.xlu0 %3481  ;;  %3454 = vst.msk [vmem:[#allocation3 + $0x48] sm:$0xff] %vm3450_vm4, %v3433_v5 }
 0x52c   : > { %3503 = vst.msk [vmem:[#allocation3 + $0x48] sm:$0xff] %vm3499_vm8, %v3482_v16 }
 0x52d   : > { %3560 = vst.msk [vmem:[#allocation3 + $0x48] sm:$0xff] %vm3556_vm9, %v3539_v39 }
 0x530   : > { %v3378_v51 = vpop.permute.xlu2 %3377 }
 0x532   : > { %v3537_v56 = vpop.permute.xlu1 %3536 }
 0x533   : > { %v3594_v45 = vpop.permute.xlu0 %3593  ;;  %3559 = vst.msk [vmem:[#allocation3 + $0x30] sm:$0xff] %vm3556_vm9, %v3537_v56 }
 0x534   : > { %3616 = vst.msk [vmem:[#allocation3 + $0x30] sm:$0xff] %vm3613_vm13, %v3594_v45 }
 0x535   : > { %3665 = vst.msk [vmem:[#allocation3 + $0x30] sm:$0xff] %vm3662_vm14, %v3643_v52 }
 0x538   : > { %v3437_v58 = vpop.permute.xlu2 %3436 }
 0x53a   : > { %v3596_v55 = vpop.permute.xlu1 %3595 }
 0x53b   : > { %v3645_v31 = vpop.permute.xlu0 %3644  ;;  %3617 = vst.msk [vmem:[#allocation3 + $0x48] sm:$0xff] %vm3613_vm13, %v3596_v55 }
 0x53c   : > { %3666 = vst.msk [vmem:[#allocation3 + $0x48] sm:$0xff] %vm3662_vm14, %v3645_v31 }
 0x53d   : > { %3723 = vst.msk [vmem:[#allocation3 + $0x48] sm:$0xff] %vm3719_vm15, %v3702_v46 }
 0x540   : > { %v3541_v12 = vpop.permute.xlu2 %3540 }
 0x542   : > { %v3700_v8 = vpop.permute.xlu1 %3699 }
 0x543   : > { %v3321_v62 = vpop.permute.xlu0 %3320  ;;  %3722 = vst.msk [vmem:[#allocation3 + $0x30] sm:$0xff] %vm3719_vm15, %v3700_v8 }
 0x544   : > { %3341 = vst.msk [vmem:[#allocation3 + $0x60] sm:$0xff] %vm3336_vm3, %v3321_v62  ;;  %v3731_v19 = vld [vmem:[#allocation3 + $0x48] sm:$0xff] }
 0x545   : > { %3398 = vst.msk [vmem:[#allocation3 + $0x60] sm:$0xff] %vm3393_vm6, %v3378_v51 }
 0x548   : > { %v3600_v11 = vpop.permute.xlu2 %3599 }
 0x54a   : > { %v3323_v54 = vpop.permute.xlu1 %3322  ;;  %v3730_v61 = vld [vmem:[#allocation3 + $0x30] sm:$0xff] }
 0x54b   : > { %v3380_v23 = vpop.permute.xlu0 %3379  ;;  %3342 = vst.msk [vmem:[#allocation3 + $0x78] sm:$0xff] %vm3336_vm3, %v3323_v54  ;;  %v3737_v29 = vpack.c.bf16 %v3731_v19, %v3730_v61 }
 0x54c   : > { %3399 = vst.msk [vmem:[#allocation3 + $0x78] sm:$0xff] %vm3393_vm6, %v3380_v23 }
 0x54d   : > { %3456 = vst.msk [vmem:[#allocation3 + $0x78] sm:$0xff] %vm3450_vm4, %v3437_v58  ;;  %4717 = vmatmul.msk.bf16.gmra.mxu3 %vm3776_vm0, %v3737_v29 }
 0x550   : > { %v3704_v34 = vpop.permute.xlu2 %3703 }
 0x552   : > { %v3435_v18 = vpop.permute.xlu1 %3434 }
 0x553   : > { %v3484_v25 = vpop.permute.xlu0 %3483  ;;  %3455 = vst.msk [vmem:[#allocation3 + $0x60] sm:$0xff] %vm3450_vm4, %v3435_v18 }
 0x554   : > { %3504 = vst.msk [vmem:[#allocation3 + $0x60] sm:$0xff] %vm3499_vm8, %v3484_v25 }
 0x555   : > { %3561 = vst.msk [vmem:[#allocation3 + $0x60] sm:$0xff] %vm3556_vm9, %v3541_v12 }
 0x558   : > { %v3327_v60 = vpop.permute.xlu2 %3326 }
 0x559   : > { %3344 = vst.msk [vmem:[#allocation3 + $0xa8] sm:$0xff] %vm3336_vm3, %v3327_v60 }
 0x55a   : > { %v3486_v57 = vpop.permute.xlu1 %3485 }
 0x55b   : > { %v3543_v42 = vpop.permute.xlu0 %3542  ;;  %3505 = vst.msk [vmem:[#allocation3 + $0x78] sm:$0xff] %vm3499_vm8, %v3486_v57 }
 0x55c   : > { %3562 = vst.msk [vmem:[#allocation3 + $0x78] sm:$0xff] %vm3556_vm9, %v3543_v42 }
 0x55d   : > { %3619 = vst.msk [vmem:[#allocation3 + $0x78] sm:$0xff] %vm3613_vm13, %v3600_v11 }
 0x560   : > { %v3439_v49 = vpop.permute.xlu2 %3438 }
 0x562   : > { %v3598_v26 = vpop.permute.xlu1 %3597 }
 0x563   : > { %v3647_v38 = vpop.permute.xlu0 %3646  ;;  %3618 = vst.msk [vmem:[#allocation3 + $0x60] sm:$0xff] %vm3613_vm13, %v3598_v26 }
 0x564   : > { %3667 = vst.msk [vmem:[#allocation3 + $0x60] sm:$0xff] %vm3662_vm14, %v3647_v38 }
 0x565   : > { %3724 = vst.msk [vmem:[#allocation3 + $0x60] sm:$0xff] %vm3719_vm15, %v3704_v34 }
 0x568   : > { %v3490_v33 = vpop.permute.xlu2 %3489 }
 0x56a   : > { %v3649_v13 = vpop.permute.xlu1 %3648 }
 0x56b   : > { %v3706_v63 = vpop.permute.xlu0 %3705  ;;  %3668 = vst.msk [vmem:[#allocation3 + $0x78] sm:$0xff] %vm3662_vm14, %v3649_v13  ;;  %v3890_v13 = vld [vmem:[#allocation4 + $0x40] sm:$0xff] }
 0x56c   : > { %3725 = vst.msk [vmem:[#allocation3 + $0x78] sm:$0xff] %vm3719_vm15, %v3706_v63  ;;  %v3732_v59 = vld [vmem:[#allocation3 + $0x60] sm:$0xff] }
 0x570   : > { %v3602_v9 = vpop.permute.xlu2 %3601 }
 0x572   : > { %v3325_v24 = vpop.permute.xlu1 %3324 }
 0x573   : > { %v3382_v27 = vpop.permute.xlu0 %3381  ;;  %3343 = vst.msk [vmem:[#allocation3 + $0x90] sm:$0xff] %vm3336_vm3, %v3325_v24  ;;  %v3733_v14 = vld [vmem:[#allocation3 + $0x78] sm:$0xff] }
 0x574   : > { %3400 = vst.msk [vmem:[#allocation3 + $0x90] sm:$0xff] %vm3393_vm6, %v3382_v27  ;;  %v3738_v50 = vpack.c.bf16 %v3733_v14, %v3732_v59 }
 0x575   : > { %3457 = vst.msk [vmem:[#allocation3 + $0x90] sm:$0xff] %vm3450_vm4, %v3439_v49 }
 0x576   : > { %4718 = vmatmul.msk.bf16.gmra.mxu3 %vm3776_vm0, %v3738_v50 }
 0x578   : > { %v3653_v30 = vpop.permute.xlu2 %3652 }
 0x57a   : > { %v3384_v3 = vpop.permute.xlu1 %3383 }
 0x57b   : > { %v3441_v48 = vpop.permute.xlu0 %3440  ;;  %3401 = vst.msk [vmem:[#allocation3 + $0xa8] sm:$0xff] %vm3393_vm6, %v3384_v3 }
 0x57c   : > { %3458 = vst.msk [vmem:[#allocation3 + $0xa8] sm:$0xff] %vm3450_vm4, %v3441_v48 }
 0x57d   : > { %3507 = vst.msk [vmem:[#allocation3 + $0xa8] sm:$0xff] %vm3499_vm8, %v3490_v33  ;;  %v3899_v33 = vld [vmem:[#allocation4 + $0x41] sm:$0xff] }
 0x582   : > { %v3488_v36 = vpop.permute.xlu1 %3487 }
 0x583   : > { %v3545_v41 = vpop.permute.xlu0 %3544  ;;  %3506 = vst.msk [vmem:[#allocation3 + $0x90] sm:$0xff] %vm3499_vm8, %v3488_v36 }
 0x584   : > { %3563 = vst.msk [vmem:[#allocation3 + $0x90] sm:$0xff] %vm3556_vm9, %v3545_v41 }
 0x585   : > { %3620 = vst.msk [vmem:[#allocation3 + $0x90] sm:$0xff] %vm3613_vm13, %v3602_v9 }
 0x58a   : > { %v3547_v35 = vpop.permute.xlu1 %3546 }
 0x58b   : > { %v3604_v15 = vpop.permute.xlu0 %3603  ;;  %3564 = vst.msk [vmem:[#allocation3 + $0xa8] sm:$0xff] %vm3556_vm9, %v3547_v35  ;;  %vm3996_vm9 = vcmask 392448  }
 0x58c   : > { %3621 = vst.msk [vmem:[#allocation3 + $0xa8] sm:$0xff] %vm3613_vm13, %v3604_v15  ;;  %v3908_v15 = vshra.s32 %v5182_v2, 2  ;;  %vm4011_vm13 = vcmask 523648  }
 0x58d   : > { %3670 = vst.msk [vmem:[#allocation3 + $0xa8] sm:$0xff] %vm3662_vm14, %v3653_v30 }
 0x592   : > { %v3651_v22 = vpop.permute.xlu1 %3650 }
 0x593   : > { %v3708_v7 = vpop.permute.xlu0 %3707  ;;  %3669 = vst.msk [vmem:[#allocation3 + $0x90] sm:$0xff] %vm3662_vm14, %v3651_v22  ;;  %v3912_v22 = vand.u32 3, %v5182_v2  ;;  %vm4024_vm14 = vcmask 654848  }
 0x594   : > { %3726 = vst.msk [vmem:[#allocation3 + $0x90] sm:$0xff] %vm3719_vm15, %v3708_v7 }
 0x595   : > { %vm3957_vm6 = vcmp.gt.s32.totalorder %v3912_v22, 0  ;;  %vm3961_vm4 = vcmp.lt.s32.totalorder %v3912_v22, 3 }
 0x59a   : > { %v3710_v17 = vpop.permute.xlu1 %3709 }
 0x59b   : > { %3727 = vst.msk [vmem:[#allocation3 + $0xa8] sm:$0xff] %vm3719_vm15, %v3710_v17  ;;  %v3734_v20 = vld [vmem:[#allocation3 + $0x90] sm:$0xff]  ;;  %vm4039_vm15 = vcmask 786048  }
 0x5a2   : > { %v3735_v39 = vld [vmem:[#allocation3 + $0xa8] sm:$0xff] }
 0x5a3   : > { %v3739_v43 = vpack.c.bf16 %v3735_v39, %v3734_v20 }
 0x5a5   : > { %4719 = vmatmul.msk.bf16.gmra.mxu3 %vm3776_vm0, %v3739_v43  ;;  %vm4054_vm0 = vcmask 917248  }
 0x5a8   : > { %v3802_v32 = vpop.f32.mrf.mxu3 }
 0x5a9   : > { %v3826_v52 = vmul.f32 %v4950_v44, %v3802_v32  ;;  %v3914_v32 = vmul.u32 2, %v3912_v22 }
 0x5ab   : > { %v3838_v0 = vadd.f32 %v4951_v53, %v3826_v52 }
 0x5ad   : > { %v3846_v47 = vmax.f32 %v3838_v0, 0.0 }
 0x5af   : > { %3855 = vst.msk [vmem:[#allocation4] sm:$0xff] %vm3854_vm10, %v3846_v47 }
 0x5b0   : > { %v3804_v37 = vpop.f32.mrf.mxu3 }
 0x5b1   : > { %v3827_v21 = vmul.f32 %v4950_v44, %v3804_v37 }
 0x5b3   : > { %v3839_v40 = vadd.f32 %v4951_v53, %v3827_v21 }
 0x5b5   : > { %v3847_v10 = vmax.f32 %v3839_v40, 0.0 }
 0x5b7   : > { %3856 = vst.msk [vmem:[#allocation4 + $0x8] sm:$0xff] %vm3854_vm10, %v3847_v10 }
 0x5be   : > { %v3867_v37 = vld [vmem:[#allocation4 + $0x8] sm:$0xff] }
 0x5bf   : > { %v3874_v21 = vld [vmem:[#allocation4 + $0x1] sm:$0xff] }
 0x5d0   : > { %v3807_v28 = vpop.f32.mrf.mxu3 }
 0x5d1   : > { %v3828_v46 = vmul.f32 %v4950_v44, %v3807_v28 }
 0x5d3   : > { %v3840_v5 = vadd.f32 %v4951_v53, %v3828_v46  ;;  %v3866_v46 = vld [vmem:[#allocation4] sm:$0xff] }
 0x5d5   : > { %v3848_v16 = vmax.f32 %v3840_v5, 0.0 }
 0x5d7   : > { %3857 = vst.msk [vmem:[#allocation4 + $0x10] sm:$0xff] %vm3854_vm10, %v3848_v16  ;;  %v3909_v16 = vshra.s32 %v5196_v6, 2 }
 0x5d8   : > { %v3809_v51 = vpop.f32.mrf.mxu3 }
 0x5d9   : > { %v3829_v56 = vmul.f32 %v4950_v44, %v3809_v51  ;;  %v3913_v51 = vand.u32 3, %v5196_v6 }
 0x5db   : > { %v3841_v45 = vadd.f32 %v4951_v53, %v3829_v56  ;;  %vm3958_vm7 = vcmp.gt.s32.totalorder %v3913_v51, 0  ;;  %vm3962_vm8 = vcmp.lt.s32.totalorder %v3913_v51, 3 }
 0x5dd   : > { %v3849_v58 = vmax.f32 %v3841_v45, 0.0 }
 0x5de   : > { %v3868_v60 = vld [vmem:[#allocation4 + $0x10] sm:$0xff] }
 0x5df   : > { %3858 = vst.msk [vmem:[#allocation4 + $0x18] sm:$0xff] %vm3854_vm10, %v3849_v58  ;;  %v7024_v42 = vld [vmem:[#allocation4 + $0x9] sm:$0xff]  ;;  %v3882_v58 = vmax.f32 %v3866_v46, %v3874_v21  ;;  %v4858_v21 = vld [vmem:[%s7240_s7 + $0x28] sm:$0xff] }
 0x5e0   : > { %v3883_v28 = vmax.f32 %v3867_v37, %v7024_v42  ;;  %v4855_v46 = vld [vmem:[%s7240_s7 + $0x10] sm:$0xff] }
 0x5e6   : > { %v3876_v57 = vld [vmem:[#allocation4 + $0x11] sm:$0xff] }
 0x5e7   : > { %4203 = vst.msk [vmem:[#allocation4 + $0x10] sm:$0x1f] %vm4202_vm11, %v5022_v1  ;;  %v3869_v20 = vld [vmem:[#allocation4 + $0x18] sm:$0xff]  ;;  %v3884_v47 = vmax.f32 %v3868_v60, %v3876_v57  ;;  %vm4067_vm11 = vcmask 1048448  }
 0x5e9   : > { %v3893_v45 = vmax.f32 %v3884_v47, %v3869_v20  ;;  %v4860_v47 = vld [vmem:[%s7240_s7 + $0x38] sm:$0xff] }
 0x5ea   : > { %4157 = vmatpush.bf16.msra.mxu1 %v4860_v47  ;;  %v4869_v47 = vld [vmem:[%s7243_s10 + $0x38] sm:$0xff] }
 0x5f9   : > { %v3812_v55 = vpop.f32.mrf.mxu3 }
 0x5fa   : > { %v3830_v31 = vmul.f32 %v4950_v44, %v3812_v55 }
 0x5fc   : > { %v3842_v12 = vadd.f32 %v4951_v53, %v3830_v31  ;;  %v3892_v31 = vmax.f32 %v3883_v28, %v3868_v60 }
 0x5fe   : > { %v3850_v8 = vmax.f32 %v3842_v12, 0.0  ;;  %v3911_v12 = vmul.u32 16, %v3909_v16 }
 0x600   : > { %3859 = vst.msk [vmem:[#allocation4 + $0x20] sm:$0xff] %vm3854_vm10, %v3850_v8  ;;  %v3915_v8 = vmul.u32 2, %v3913_v51  ;;  %v4854_v51 = vld [vmem:[%s7240_s7 + $0x8] sm:$0xff] }
 0x601   : > { %v3814_v62 = vpop.f32.mrf.mxu3 }
 0x602   : > { %v3831_v11 = vmul.f32 %v4950_v44, %v3814_v62  ;;  %v3901_v62 = vmax.f32 %v3892_v31, %v3876_v57  ;;  %v3917_v6 = vadd.s32 %v3915_v8, %v3911_v12 }
 0x604   : > { %v3843_v54 = vadd.f32 %v4951_v53, %v3831_v11  ;;  %v3891_v11 = vmax.f32 %v3882_v58, %v3867_v37  ;;  %vm3919_vm3 = vcmp.eq.s32.totalorder %v6660_v4, %v3917_v6  ;;  %v4859_v37 = vld [vmem:[%s7240_s7 + $0x30] sm:$0xff] }
 0x605   : > { %4158 = vmatpush.bf16.msra.mxu1 %v4859_v37  ;;  %v4876_v37 = vld [vmem:[%s7243_s10 + $0x70] sm:$0xff] }
 0x606   : > { %v3851_v23 = vmax.f32 %v3843_v54, 0.0  ;;  %v3900_v54 = vmax.f32 %v3891_v11, %v7024_v42 }
 0x607   : > { %v3870_v30 = vld [vmem:[#allocation4 + $0x20] sm:$0xff] }
 0x608   : > { %3860 = vst.msk [vmem:[#allocation4 + $0x28] sm:$0xff] %vm3854_vm10, %v3851_v23  ;;  %v3877_v35 = vld [vmem:[#allocation4 + $0x19] sm:$0xff] }
 0x609   : > { %v3902_v55 = vmax.f32 %v3893_v45, %v3877_v35  ;;  %4159 = vmatpush.bf16.msra.mxu1 %v4858_v21  ;;  %v4868_v21 = vld [vmem:[%s7243_s10 + $0x30] sm:$0xff] }
 0x60f   : > { %v3871_v3 = vld [vmem:[#allocation4 + $0x28] sm:$0xff] }
 0x610   : > { %v3878_v48 = vld [vmem:[#allocation4 + $0x21] sm:$0xff] }
 0x611   : > { %v3886_v17 = vmax.f32 %v3870_v30, %v3878_v48 }
 0x613   : > { %v3895_v0 = vmax.f32 %v3886_v17, %v3871_v3 }
 0x628   : > { %v3817_v61 = vpop.f32.mrf.mxu3 }
 0x629   : > { %v3832_v19 = vmul.f32 %v4950_v44, %v3817_v61  ;;  %v3921_v61 = vsel %vm3919_vm3, 1.0, %v5022_v1 }
 0x62b   : > { %v3844_v29 = vadd.f32 %v4951_v53, %v3832_v19  ;;  %v4861_v19 = vld [vmem:[%s7240_s7 + $0x40] sm:$0xff] }
 0x62c   : > { %4178 = vmatpush.bf16.msra.mxu2 %v4861_v19 }
 0x62d   : > { %v3852_v34 = vmax.f32 %v3844_v29, 0.0 }
 0x62f   : > { %3861 = vst.msk [vmem:[#allocation4 + $0x30] sm:$0xff] %vm3854_vm10, %v3852_v34  ;;  %v3959_v34 = vsel %vm3957_vm6, 1.0, %v5022_v1 }
 0x630   : > { %v3819_v18 = vpop.f32.mrf.mxu3 }
 0x631   : > { %v3833_v25 = vmul.f32 %v4950_v44, %v3819_v18  ;;  %v3885_v44 = vmax.f32 %v3869_v20, %v3877_v35  ;;  %v3963_v18 = vsel %vm3961_vm4, 1.0, %v5022_v1 }
 0x633   : > { %v3845_v26 = vadd.f32 %v4951_v53, %v3833_v25  ;;  %v3910_v53 = vmul.u32 16, %v3908_v15  ;;  %v3894_v10 = vmax.f32 %v3885_v44, %v3870_v30 }
 0x635   : > { %v3853_v38 = vmax.f32 %v3845_v26, 0.0  ;;  %v3916_v5 = vadd.s32 %v3914_v32, %v3910_v53  ;;  %v3903_v56 = vmax.f32 %v3894_v10, %v3878_v48  ;;  %v4856_v10 = vld [vmem:[%s7240_s7 + $0x18] sm:$0xff] }
 0x636   : > { %v3872_v63 = vld [vmem:[#allocation4 + $0x30] sm:$0xff] }
 0x637   : > { %3862 = vst.msk [vmem:[#allocation4 + $0x38] sm:$0xff] %vm3854_vm10, %v3853_v38  ;;  %v3879_v49 = vld [vmem:[#allocation4 + $0x29] sm:$0xff]  ;;  %vm3918_vm12 = vcmp.eq.s32.totalorder %v6660_v4, %v3916_v5 }
 0x638   : > { %v3887_v41 = vmax.f32 %v3871_v3, %v3879_v49  ;;  %v3904_v40 = vmax.f32 %v3895_v0, %v3879_v49  ;;  %v3920_v23 = vsel %vm3918_vm12, 1.0, %v5022_v1  ;;  %v3960_v49 = vsel %vm3958_vm7, 1.0, %v5022_v1 }
 0x639   : > { %vm4248_vm12 = vcmask 256000   ;;  %vm4265_vm7 = vcmask 519424  }
 0x63a   : > { %v3896_v43 = vmax.f32 %v3887_v41, %v3872_v63 }
 0x63e   : > { %v3873_v24 = vld [vmem:[#allocation4 + $0x38] sm:$0xff] }
 0x63f   : > { %v3881_v27 = vld [vmem:[#allocation4 + $0x39] sm:$0xff]  ;;  %v3880_v59 = vld [vmem:[#allocation4 + $0x31] sm:$0xff] }
 0x640   : > { %v3889_v14 = vmax.f32 %v3873_v24, %v3881_v27  ;;  %v3888_v50 = vmax.f32 %v3872_v63, %v3880_v59  ;;  %v3905_v52 = vmax.f32 %v3896_v43, %v3880_v59 }
 0x642   : > { %v3898_v9 = vmax.f32 %v3889_v14, %v3890_v13  ;;  %v3897_v36 = vmax.f32 %v3888_v50, %v3873_v24  ;;  %v3964_v24 = vsel %vm3962_vm8, 1.0, %v5022_v1  ;;  %vm4273_vm8 = vcmask 781824  }
 0x644   : > { %v3907_v7 = vmax.f32 %v3898_v9, %v3899_v33  ;;  %v3906_v39 = vmax.f32 %v3897_v36, %v3881_v27 }
 0x646   : > { %3937 = vmatpush.msra.mxu3 %v3907_v7 }
 0x648   : > { %3938 = vmatpush.msra.mxu3 %v3906_v39 }
 0x64a   : > { %3939 = vmatpush.msra.mxu3 %v3905_v52 }
 0x64c   : > { %3940 = vmatpush.msra.mxu3 %v3904_v40  ;;  %v4857_v40 = vld [vmem:[%s7240_s7 + $0x20] sm:$0xff] }
 0x64d   : > { %4160 = vmatpush.bf16.msra.mxu1 %v4857_v40  ;;  %v4875_v40 = vld [vmem:[%s7243_s10 + $0x68] sm:$0xff] }
 0x64e   : > { %3941 = vmatpush.msra.mxu3 %v3903_v56  ;;  %v4853_v56 = vld [vmem:[%s7240_s7] sm:$0xff] }
 0x650   : > { %3942 = vmatpush.msra.mxu3 %v3902_v55 }
 0x651   : > { %4161 = vmatpush.bf16.msra.mxu1 %v4856_v10  ;;  %v4867_v10 = vld [vmem:[%s7243_s10 + $0x28] sm:$0xff] }
 0x652   : > { %3943 = vmatpush.msra.mxu3 %v3901_v62 }
 0x654   : > { %3944 = vmatpush.msra.mxu3 %v3900_v54 }
 0x655   : > { %4720 = vmatmul.msk.f32.vlgmr.msra.gmra.mxu3 %vm3922_vm2, %v3920_v23  ;;  %4162 = vmatpush.bf16.msra.mxu1 %v4855_v46 }
 0x659   : > { %4163 = vmatpush.bf16.msra.mxu1 %v4854_v51 }
 0x65d   : > { %4721 = vmatmul.msk.f32.gmra.mxu3 %vm3922_vm2, %v3921_v61  ;;  %4164 = vmatpush.bf16.msra.mxu1 %v4853_v56  ;;  %vm4199_vm2 = vcmask 261120  }
 0x661   : > { %4461 = vmatpush.bf16.msrb.mxu1 %v4869_v47 }
 0x665   : > { %4462 = vmatpush.bf16.msrb.mxu1 %v4868_v21 }
 0x669   : > { %4463 = vmatpush.bf16.msrb.mxu1 %v4867_v10 }
 0x6d8   : > { %v3946_v29 = vpop.f32.mrf.mxu3 }
 0x6d9   : > { %3954 = vst.msk [vmem:[#allocation2 + $0x5] sm:$0xff] %vm3854_vm10, %v3946_v29 }
 0x6e0   : > { %v3949_v25 = vpop.f32.mrf.mxu3  ;;  %v3999_v60 = vld [vmem:[#allocation2 + $0x4] sm:$0xff] }
 0x6e1   : > { %v3971_v57 = vld [vmem:[#allocation2 + $0x1] sm:$0xff]  ;;  %3955 = vst.msk [vmem:[#allocation2 + $0xd] sm:$0xff] %vm3854_vm10, %v3949_v25  ;;  %v4001_v26 = vmul.f32 %v3999_v60, %v3959_v34  ;;  %v4953_v60 = vld [vmem:[%s7242_s9] ss:$0 sm:$0xff] }
 0x6e2   : > { %v3984_v42 = vld [vmem:[#allocation2 + $0x2] sm:$0xff]  ;;  %3975 = vrot.lane.b32.xlu2 %v3971_v57, %s5034_s20 }
 0x6e3   : > { %v3986_v38 = vmul.f32 %v3984_v42, %v3963_v18  ;;  %v3965_v13 = vld [vmem:[#allocation2] sm:$0xff]  ;;  %4005 = vrot.lane.b32.xlu0 %v4001_v26, %s5037_s30 }
 0x6e4   : > { %v3967_v63 = vmul.f32 %v3965_v13, %v3959_v34  ;;  %v4014_v59 = vld [vmem:[#allocation2 + $0x5] sm:$0xff]  ;;  %4249 = vst.msk [vmem:[#allocation2] sm:$0x7] %vm4248_vm12, %v5022_v1 }
 0x6e5   : > { %3990 = vrot.lane.b32.xlu1 %v3986_v38, %s5035_s27 }
 0x6e6   : > { %3969 = vst.msk [vmem:[#allocation3] sm:$0xff] %vm3854_vm10, %v3967_v63 }
 0x6e8   : > { %v4070_v27 = vld [vmem:[#allocation2 + $0xa] sm:$0xff]  ;;  %v4071_v3 = vld [vmem:[#allocation2 + $0x12] sm:$0xff] }
 0x6e9   : > { %v4000_v14 = vld [vmem:[#allocation2 + $0xc] sm:$0xff]  ;;  %v4072_v50 = vmul.f32 %v4070_v27, %v3963_v18  ;;  %v4073_v9 = vmul.f32 %v4071_v3, %v3964_v24  ;;  %v3987_v35 = vmul.f32 %v4070_v27, %v3964_v24 }
 0x6ea   : > { %4018 = vrot.lane.b32.xlu2 %v4014_v59, %s5039_s17  ;;  %v4002_v33 = vmul.f32 %v4000_v14, %v3960_v49  ;;  %v3972_v48 = vld [vmem:[#allocation2 + $0x9] sm:$0xff]  ;;  %v4058_v52 = vld [vmem:[#allocation2 + $0x11] sm:$0xff]  ;;  %v4218_v59 = vshra.s32 %v5182_v2, 1  ;;  %v4220_v14 = vand.u32 1, %v5182_v2 }
 0x6eb   : > { %v4042_v36 = vld [vmem:[#allocation2 + $0x8] sm:$0xff]  ;;  %4074 = vst.msk [vmem:[#allocation3 + $0x8] sm:$0xff] %vm3854_vm10, %v4072_v50  ;;  %3977 = vrot.lane.b32.xlu0 %v3972_v48, %s5034_s20  ;;  %v4043_v43 = vld [vmem:[#allocation2 + $0x10] sm:$0xff]  ;;  %s5041_s20 = smov 96  }
 0x6ec   : > { %4075 = vst.msk [vmem:[#allocation3 + $0x20] sm:$0xff] %vm3854_vm10, %v4073_v9  ;;  %v3968_v41 = vmul.f32 %v4042_v36, %v3960_v49  ;;  %v4027_v30 = vld [vmem:[#allocation2 + $0x6] sm:$0xff]  ;;  %v4028_v20 = vld [vmem:[#allocation2 + $0xe] sm:$0xff]  ;;  %v4044_v53 = vmul.f32 %v4042_v36, %v3959_v34  ;;  %v4045_v32 = vmul.f32 %v4043_v43, %v3960_v49  ;;  %v4952_v34 = vld [vmem:[%s7241_s8] ss:$0 sm:$0xff]  ;;  %v4219_v50 = vmul.u32 8, %v4218_v59 }
 0x6ed   : > { %4007 = vrot.lane.b32.xlu1 %v4002_v33, %s5037_s30  ;;  %v4029_v15 = vmul.f32 %v4027_v30, %v3963_v18  ;;  %v4015_v22 = vld [vmem:[#allocation2 + $0xd] sm:$0xff]  ;;  %v4030_v44 = vmul.f32 %v4028_v20, %v3964_v24  ;;  %s5042_s30 = smov 112   ;;  %4252 = vst.msk [vmem:[#allocation2 + $0x7] sm:$0x7] %vm4248_vm12, %v5022_v1  ;;  %v4221_v33 = vmul.u32 2, %v4220_v14  ;;  %vm4255_vm6 = vcmp.lt.s32.totalorder %v4220_v14, 1 }
 0x6ee   : > { %3970 = vst.msk [vmem:[#allocation3 + $0x18] sm:$0xff] %vm3854_vm10, %v3968_v41  ;;  %vm4253_vm4 = vcmp.gt.s32.totalorder %v4220_v14, 0 }
 0x6ef   : > { %v4222_v9 = vadd.s32 %v4221_v33, %v4219_v50  ;;  %v4254_v51 = vsel %vm4253_vm4, 1.0, %v5022_v1 }
 0x6f1   : > { %vm4223_vm3 = vcmp.eq.s32.totalorder %v6660_v4, %v4222_v9 }
 0x6f2   : > { %3992 = vrot.lane.b32.xlu2 %v3987_v35, %s5035_s27  ;;  %v4077_v7 = vld [vmem:[#allocation3 + $0x8] sm:$0xff] }
 0x6f3   : > { %4020 = vrot.lane.b32.xlu0 %v4015_v22, %s5039_s17  ;;  %v4079_v17 = vld [vmem:[#allocation3 + $0x20] sm:$0xff] }
 0x6f4   : > { %v4081_v39 = vpack.c.bf16 %v4079_v17, %v4077_v7 }
 0x6f5   : > { %4033 = vrot.lane.b32.xlu1 %v4029_v15, %s5040_s24 }
 0x6f6   : > { %4758 = vmatmul.msk.bf16.vlgmr.msra.gmra.mxu2 %vm3854_vm10, %v4081_v39 }
 0x6fa   : > { %4035 = vrot.lane.b32.xlu2 %v4030_v44, %s5040_s24  ;;  %s485_s24 = sand.u32 1, %s5012_s19  }
 0x6fb   : > { %4048 = vrot.lane.b32.xlu0 %v4044_v53, %s5041_s20  ;;  %v4224_v53 = vsel %vm4223_vm3, 1.0, %v5022_v1  ;;  %s4587_s16 = scalar_lea.sflag [#allocation6], %s485_s24 }
 0x6fd   : > { %4050 = vrot.lane.b32.xlu1 %v4045_v32, %s5041_s20  ;;  %v4879_v32 = vld [vmem:[%s7243_s10 + $0x88] sm:$0xff] }
 0x702   : > { %4061 = vrot.lane.b32.xlu2 %v3972_v48, %s5042_s30 }
 0x703   : > { %4063 = vrot.lane.b32.xlu0 %v4058_v52, %s5042_s30  ;;  %v4878_v52 = vld [vmem:[%s7243_s10 + $0x80] sm:$0xff]  ;;  %s4978_s30 = scalar_lea.hbm %s7248_s15, 2 }
 0x73c   : > { %v3976_v0 = vpop.permute.xlu2 %3975 }
 0x73d   : > { %3982 = vst.msk [vmem:[#allocation3] sm:$0xff] %vm3981_vm1, %v3976_v0  ;;  %v4877_v0 = vld [vmem:[%s7243_s10 + $0x78] sm:$0xff] }
 0x73e   : > { %4474 = vmatpush.bf16.msrb.mxu2 %v4877_v0 }
 0x742   : > { %4475 = vmatpush.bf16.msrb.mxu2 %v4876_v37 }
 0x744   : > { %v4019_v28 = vpop.permute.xlu2 %4018 }
 0x746   : > { %4476 = vmatpush.bf16.msrb.mxu2 %v4875_v40 }
 0x74c   : > { %v3993_v45 = vpop.permute.xlu2 %3992 }
 0x754   : > { %v4036_v31 = vpop.permute.xlu2 %4035 }
 0x755   : > { %v4006_v5 = vpop.permute.xlu0 %4005 }
 0x757   : > { %v3991_v16 = vpop.permute.xlu1 %3990 }
 0x758   : > { %3997 = vst.msk [vmem:[#allocation3] sm:$0xff] %vm3996_vm9, %v3991_v16  ;;  %v4256_v16 = vsel %vm4255_vm6, 1.0, %v5022_v1 }
 0x759   : > { %4012 = vst.msk [vmem:[#allocation3] sm:$0xff] %vm4011_vm13, %v4006_v5  ;;  %v4873_v5 = vld [vmem:[%s7243_s10 + $0x58] sm:$0xff] }
 0x75a   : > { %4025 = vst.msk [vmem:[#allocation3] sm:$0xff] %vm4024_vm14, %v4019_v28  ;;  %v4874_v28 = vld [vmem:[%s7243_s10 + $0x60] sm:$0xff] }
 0x75b   : > { %4477 = vmatpush.bf16.msrb.mxu2 %v4874_v28 }
 0x75c   : > { %v4062_v54 = vpop.permute.xlu2 %4061 }
 0x75d   : > { %v3978_v58 = vpop.permute.xlu0 %3977 }
 0x75e   : > { %3983 = vst.msk [vmem:[#allocation3 + $0x18] sm:$0xff] %vm3981_vm1, %v3978_v58  ;;  %vm4281_vm1 = vcmask 1044224  }
 0x75f   : > { %v4008_v55 = vpop.permute.xlu1 %4007  ;;  %3998 = vst.msk [vmem:[#allocation3 + $0x18] sm:$0xff] %vm3996_vm9, %v3993_v45  ;;  %4478 = vmatpush.bf16.msrb.mxu2 %v4873_v5 }
 0x760   : > { %4013 = vst.msk [vmem:[#allocation3 + $0x18] sm:$0xff] %vm4011_vm13, %v4008_v55  ;;  %vm4523_vm13 = vcmask 31744  }
 0x765   : > { %v4021_v12 = vpop.permute.xlu0 %4020 }
 0x766   : > { %4026 = vst.msk [vmem:[#allocation3 + $0x18] sm:$0xff] %vm4024_vm14, %v4021_v12 }
 0x767   : > { %v4034_v8 = vpop.permute.xlu1 %4033  ;;  %4041 = vst.msk [vmem:[#allocation3 + $0x18] sm:$0xff] %vm4039_vm15, %v4036_v31 }
 0x768   : > { %4040 = vst.msk [vmem:[#allocation3] sm:$0xff] %vm4039_vm15, %v4034_v8 }
 0x76d   : > { %v4049_v62 = vpop.permute.xlu0 %4048 }
 0x76e   : > { %4055 = vst.msk [vmem:[#allocation3] sm:$0xff] %vm4054_vm0, %v4049_v62 }
 0x76f   : > { %v4051_v11 = vpop.permute.xlu1 %4050  ;;  %4068 = vst.msk [vmem:[#allocation3] sm:$0xff] %vm4067_vm11, %v4062_v54 }
 0x770   : > { %4056 = vst.msk [vmem:[#allocation3 + $0x18] sm:$0xff] %vm4054_vm0, %v4051_v11 }
 0x775   : > { %v4064_v23 = vpop.permute.xlu0 %4063 }
 0x776   : > { %4069 = vst.msk [vmem:[#allocation3 + $0x18] sm:$0xff] %vm4067_vm11, %v4064_v23  ;;  %v4076_v6 = vld [vmem:[#allocation3] sm:$0xff] }
 0x779   : > { %v4180_v29 = vpop.f32.mrf.mxu2 }
 0x77d   : > { %v4078_v61 = vld [vmem:[#allocation3 + $0x18] sm:$0xff] }
 0x77e   : > { %v4080_v19 = vpack.c.bf16 %v4078_v61, %v4076_v6 }
 0x780   : > { %4165 = vmatmul.bf16.vlgmr.msra.gmra.mxu1 %v4080_v19 }
 0x781   : > { %v4182_v38 = vpop.f32.mrf.mxu2 }
 0x7fd   : > { %v4166_v18 = vpop.f32.mrf.mxu1 }
 0x7fe   : > { %v4181_v25 = vadd.f32 %v4180_v29, %v4166_v18 }
 0x800   : > { %v4189_v57 = vmul.f32 %v4952_v34, %v4181_v25  ;;  %v4866_v25 = vld [vmem:[%s7243_s10 + $0x20] sm:$0xff] }
 0x801   : > { %4464 = vmatpush.bf16.msrb.mxu1 %v4866_v25 }
 0x802   : > { %v4195_v42 = vadd.f32 %v4953_v60, %v4189_v57  ;;  %v4865_v57 = vld [vmem:[%s7243_s10 + $0x18] sm:$0xff] }
 0x804   : > { %v4197_v26 = vmax.f32 %v4195_v42, 0.0  ;;  %v4871_v42 = vld [vmem:[%s7243_s10 + $0x48] sm:$0xff] }
 0x805   : > { %v4168_v13 = vpop.f32.mrf.mxu1  ;;  %4465 = vmatpush.bf16.msrb.mxu1 %v4865_v57 }
 0x806   : > { %4200 = vst.msk [vmem:[#allocation4] sm:$0xff] %vm4199_vm2, %v4197_v26  ;;  %v4183_v63 = vadd.f32 %v4182_v38, %v4168_v13  ;;  %v4864_v26 = vld [vmem:[%s7243_s10 + $0x10] sm:$0xff]  ;;  %v4870_v38 = vld [vmem:[%s7243_s10 + $0x40] sm:$0xff]  ;;  %v4863_v13 = vld [vmem:[%s7243_s10 + $0x8] sm:$0xff] }
 0x808   : > { %v4190_v49 = vmul.f32 %v4952_v34, %v4183_v63  ;;  %v4862_v63 = vld [vmem:[%s7243_s10] sm:$0xff] }
 0x809   : > { %4466 = vmatpush.bf16.msrb.mxu1 %v4864_v26 }
 0x80a   : > { %v4196_v24 = vadd.f32 %v4953_v60, %v4190_v49  ;;  %v4872_v60 = vld [vmem:[%s7243_s10 + $0x50] sm:$0xff] }
 0x80b   : > { %4479 = vmatpush.bf16.msrb.mxu2 %v4872_v60 }
 0x80c   : > { %v4198_v27 = vmax.f32 %v4196_v24, 0.0 }
 0x80d   : > { %v4204_v41 = vld [vmem:[#allocation4] sm:$0xff]  ;;  %4467 = vmatpush.bf16.msrb.mxu1 %v4863_v13 }
 0x80e   : > { %4201 = vst.msk [vmem:[#allocation4 + $0x8] sm:$0xff] %vm4199_vm2, %v4198_v27 }
 0x80f   : > { %4480 = vmatpush.bf16.msrb.mxu2 %v4871_v42 }
 0x811   : > { %4468 = vmatpush.bf16.msrb.mxu1 %v4862_v63 }
 0x813   : > { %4481 = vmatpush.bf16.msrb.mxu2 %v4870_v38 }
 0x815   : > { %v4205_v3 = vld [vmem:[#allocation4 + $0x8] sm:$0xff] }
 0x816   : > { %v4207_v48 = vld [vmem:[#allocation4 + $0x9] sm:$0xff]  ;;  %v4206_v30 = vld [vmem:[#allocation4 + $0x1] sm:$0xff] }
 0x817   : > { %v4209_v36 = vmax.f32 %v4205_v3, %v4207_v48  ;;  %v4211_v35 = vld [vmem:[#allocation4 + $0xc] sm:$0xff]  ;;  %v4208_v15 = vmax.f32 %v4204_v41, %v4206_v30  ;;  %v4210_v22 = vld [vmem:[#allocation4 + $0x4] sm:$0xff] }
 0x818   : > { %v4214_v7 = vld [vmem:[#allocation4 + $0x5] sm:$0xff]  ;;  %v4215_v20 = vld [vmem:[#allocation4 + $0xd] sm:$0xff] }
 0x819   : > { %v4213_v17 = vmax.f32 %v4209_v36, %v4211_v35  ;;  %4512 = vst.msk [vmem:[#allocation4 + $0x4] sm:$0x7] %vm4248_vm12, %v5022_v1  ;;  %v4212_v39 = vmax.f32 %v4208_v15, %v4210_v22  ;;  %v4954_v22 = vld [vmem:[%s7244_s11] ss:$0 sm:$0xff] }
 0x81b   : > { %v4217_v43 = vmax.f32 %v4213_v17, %v4215_v20  ;;  %v4216_v44 = vmax.f32 %v4212_v39, %v4214_v7  ;;  %v4955_v17 = vld [vmem:[%s7245_s12] ss:$0 sm:$0xff] }
 0x81d   : > { %4242 = vmatpush.msrb.mxu3 %v4217_v43 }
 0x81f   : > { %4243 = vmatpush.msrb.mxu3 %v4216_v44 }
 0x820   : > { %4759 = vmatmul.msk.f32.vlgmr.msrb.gmra.mxu3 %vm3854_vm10, %v4224_v53  ;;  %vm4250_vm10 = vcmask 257024  }
 0x821   : > { %4493 = vmatpush.bf16.msra.mxu3 %v4879_v32  ;;  %v4520_v32 = vmul.u32 4, %v5182_v2  ;;  %v4880_v2 = vld [vmem:[%s7246_s13] sm:$0xff] }
 0x823   : > { %vm4521_vm9 = vcmp.eq.s32.totalorder %v6660_v4, %v4520_v32 }
 0x824   : > { %v4522_v28 = vsel %vm4521_vm9, 1.0, %v5022_v1  ;;  %v4555_v1 = vld [vmem:[%s7247_s14] sm:$0x1] }
 0x825   : > { %4494 = vmatpush.bf16.msra.mxu3 %v4878_v52 }
 0x8a3   : > { %v4245_v46 = vpop.f32.mrf.mxu3 }
 0x8a4   : > { %4251 = vst.msk [vmem:[#allocation2 + $0x3] sm:$0xf] %vm4250_vm10, %v4245_v46  ;;  %v4881_v46 = vld [vmem:[%s7246_s13 + $0x8] sm:$0xff] }
 0x8ab   : > { %v4285_v56 = vld [vmem:[#allocation2 + $0x4] sm:$0xf]  ;;  %v4257_v12 = vld [vmem:[#allocation2] sm:$0xf] }
 0x8ac   : > { %v4305_v45 = vld [vmem:[#allocation2 + $0x6] sm:$0xf]  ;;  %v4286_v55 = vmul.f32 %v4285_v56, %v4256_v16  ;;  %v4258_v8 = vmul.f32 %v4257_v12, %v4254_v51  ;;  %v4275_v23 = vld [vmem:[#allocation2 + $0x2] sm:$0xf] }
 0x8ad   : > { %v4299_v58 = vld [vmem:[#allocation2 + $0x5] sm:$0xf]  ;;  %v4306_v31 = vmul.f32 %v4305_v45, %v4256_v16  ;;  %v4276_v6 = vmul.f32 %v4275_v23, %v4254_v51  ;;  %v4260_v19 = vld [vmem:[#allocation2 + $0x1] sm:$0xf] }
 0x8ae   : > { %4301 = vrot.lane.b32.xlu0 %v4299_v58, %s5041_s20  ;;  %v4292_v62 = vld [vmem:[#allocation2 + $0x4] sm:$0xf]  ;;  %4288 = vrot.lane.b32.xlu1 %v4286_v55, %s5035_s27  ;;  %4259 = vst.msk [vmem:[#allocation3] sm:$0xf] %vm4250_vm10, %v4258_v8 }
 0x8af   : > { %v4283_v11 = vld [vmem:[#allocation2 + $0x3] sm:$0xf]  ;;  %4307 = vst.msk [vmem:[#allocation3 + $0x10] sm:$0xf] %vm4250_vm10, %v4306_v31  ;;  %v4293_v54 = vmul.f32 %v4292_v62, %v4254_v51 }
 0x8b0   : > { %4284 = vst.msk [vmem:[#allocation3 + $0x8] sm:$0xf] %vm4250_vm10, %v4283_v11  ;;  %v4267_v61 = vld [vmem:[#allocation2 + $0x2] sm:$0xf] }
 0x8b1   : > { %4295 = vrot.lane.b32.xlu2 %v4293_v54, %s5039_s17  ;;  %v4268_v34 = vmul.f32 %v4267_v61, %v4256_v16 }
 0x8b6   : > { %4278 = vrot.lane.b32.xlu0 %v4276_v6, %s5041_s20  ;;  %v4310_v29 = vld [vmem:[#allocation3 + $0x10] sm:$0xf]  ;;  %4262 = vrot.lane.b32.xlu1 %v4260_v19, %s5035_s27  ;;  %s486_s20 = scalar_lea.vmem [#allocation5], %s485_s24  ;;  %s4599_s27 = sshll.u32 %s4595_s18, 4  ;;  %s4600_s27 = int_to_ptr.hbm [resolvable:$true] %s4599_s27 }
 0x8b7   : > { %v4313_v18 = vpack.c.bf16 %v4310_v29, %v4310_v29  ;;  %s4597_s26 = sshll.u32 %s486_s20, 4  ;;  %s4598_s26 = int_to_ptr.vmem [resolvable:$true] %s4597_s26 }
 0x8b9   : > { %4270 = vrot.lane.b32.xlu2 %v4268_v34, %s5039_s17  ;;  %4832 = vmatmul.msk.bf16.vlgmr.msra.gmra.mxu3 %vm4199_vm2, %v4313_v18  ;;  %s4972_s17 = sshra.s32 %s4600_s27, 4  ;;  %s4973_s17 = int_to_ptr.hbm [resolvable:$true] %s4972_s17 }
 0x8ba   : > { %s4974_s21 = scalar_lea.hbm %s4973_s17, 1  ;;  %p4979_p0 = scmp.lt.s32.totalorder %s4973_s17, %s7248_s15 }
 0x8bb   : > { %p4975_p11 = scmp.ne.s32.totalorder %s4973_s17, %s4974_s21  ;;  %p4980_p1 = scmp.lt.s32.totalorder %s4978_s30, %s4974_s21 }
 0x8bd   : > { %p4976_p12 = pnand %p4975_p11, %p5161_p5  ;;  %p4981_p2 = por %p4980_p1, %p4979_p0 }
 0x8bf   : > { %p4977_p13 = pneg %p4976_p12 }
 0x8c1   : > { %p4982_p3 = pnand %p4981_p2, %p4977_p13 }
 0x90b   : > { %v4296_v49 = vpop.permute.xlu2 %4295 }
 0x913   : > { %v4271_v14 = vpop.permute.xlu2 %4270 }
 0x920   : > { %v4289_v24 = vpop.permute.xlu1 %4288  ;;  %v4302_v27 = vpop.permute.xlu0 %4301 }
 0x921   : > { %4291 = vst.msk [vmem:[#allocation3 + $0x8] sm:$0xf] %vm4265_vm7, %v4289_v24 }
 0x922   : > { %4298 = vst.msk [vmem:[#allocation3 + $0x8] sm:$0xf] %vm4273_vm8, %v4296_v49 }
 0x923   : > { %4304 = vst.msk [vmem:[#allocation3 + $0x8] sm:$0xf] %vm4281_vm1, %v4302_v27 }
 0x928   : > { %v4263_v59 = vpop.permute.xlu1 %4262  ;;  %v4279_v50 = vpop.permute.xlu0 %4278 }
 0x929   : > { %4266 = vst.msk [vmem:[#allocation3] sm:$0xf] %vm4265_vm7, %v4263_v59 }
 0x92a   : > { %4274 = vst.msk [vmem:[#allocation3] sm:$0xf] %vm4273_vm8, %v4271_v14  ;;  %v4309_v33 = vld [vmem:[#allocation3 + $0x8] sm:$0xf] }
 0x92b   : > { %4282 = vst.msk [vmem:[#allocation3] sm:$0xf] %vm4281_vm1, %v4279_v50  ;;  %v4312_v3 = vpack.c.bf16 %v4309_v33, %v4309_v33 }
 0x92d   : > { %4482 = vmatmul.bf16.vlgmr.msrb.gmra.mxu2 %v4312_v3 }
 0x932   : > { %v4308_v48 = vld [vmem:[#allocation3] sm:$0xf] }
 0x933   : > { %v4311_v9 = vpack.c.bf16 %v4308_v48, %v4308_v48 }
 0x935   : > { %4469 = vmatmul.bf16.vlgmr.msrb.gmra.mxu1 %v4311_v9 }
 0x93c   : > { %v4496_v36 = vpop.f32.mrf.mxu3 }
 0x944   : > { %v4498_v41 = vpop.f32.mrf.mxu3 }
 0x9b0   : > { %v4483_v30 = vpop.f32.mrf.mxu2 }
 0x9b2   : > { %v4470_v35 = vpop.f32.mrf.mxu1 }
 0x9b3   : > { %v4484_v15 = vadd.f32 %v4483_v30, %v4470_v35 }
 0x9b5   : > { %v4497_v7 = vadd.f32 %v4496_v36, %v4484_v15 }
 0x9b7   : > { %v4504_v20 = vmul.f32 %v4954_v22, %v4497_v7 }
 0x9b8   : > { %v4485_v39 = vpop.f32.mrf.mxu2 }
 0x9b9   : > { %v4509_v43 = vadd.f32 %v4955_v17, %v4504_v20 }
 0x9ba   : > { %v4472_v44 = vpop.f32.mrf.mxu1 }
 0x9bb   : > { %v4510_v53 = vmax.f32 %v4509_v43, 0.0 }
 0x9bd   : > { %4511 = vst.msk [vmem:[#allocation4] sm:$0xf] %vm4250_vm10, %v4510_v53 }
 0x9c4   : > { %v4513_v52 = vld [vmem:[#allocation4] sm:$0xf] }
 0x9c5   : > { %v4514_v0 = vld [vmem:[#allocation4 + $0x1] sm:$0xf] }
 0x9c6   : > { %v4515_v47 = vmax.f32 %v4513_v52, %v4514_v0  ;;  %v4516_v37 = vld [vmem:[#allocation4 + $0x2] sm:$0xf] }
 0x9c7   : > { %v4518_v40 = vld [vmem:[#allocation4 + $0x3] sm:$0xf] }
 0x9c8   : > { %v4517_v21 = vmax.f32 %v4515_v47, %v4516_v37 }
 0x9ca   : > { %v4519_v10 = vmax.f32 %v4517_v21, %v4518_v40 }
 0x9cc   : > { %4833 = vmatpush.msk.msrb.mxu3 %vm3789_vm5, %v4519_v10  ;;  %vm4584_vm5 = vcmask 73728  }
 0x9cd   : > { %4834 = vmatmul.msk.f32.vlgmr.msrb.gmra.mxu3 %vm4523_vm13, %v4522_v28 }
 0x9ce   : > { %4577 = vmatpush.bf16.msra.mxu3 %v4881_v46 }
 0x9d2   : > { %4578 = vmatpush.bf16.msra.mxu3 %v4880_v2 }
 0xa50   : > { %v4547_v4 = vpop.f32.mrf.mxu3 }
 0xa51   : > { %v4550_v5 = vpack.c.bf16 %v4547_v4, %v4547_v4 }
 0xa53   : > { %4843 = vmatmul.msk.bf16.vlgmr.msra.gmra.mxu3 %vm4199_vm2, %v4550_v5 }
 0xad6   : > { %v4580_v16 = vpop.f32.mrf.mxu3 }
 0xad7   : > { %v4581_v51 = vadd.f32 %v4580_v16, %v4555_v1 }
 0xad9   : > { %4585 = vst.msk [vmem:[%s486_s20] sm:$0x1] %vm4584_vm5, %v4581_v51 }
 0xada   : > { %4985 = shalt.err (!%p4982_p3)
}
 0xadb   : > { %4888 = dma.vmem_to_hbm [thread:$0]  (%p5161_p5), %s4598_s26, 16, %s4600_s27, %s4587_s16  }
 0xade   : > { %v4582_v56 = vpop.f32.mrf.mxu3 }
 0xadf PF: > { %s7289_s24 = sld [smem:[#allocation10_spill]] }
 0xae0   : > { %s7290_s23 = sld [smem:[#allocation8_spill]] }
 0xae5   : > { %p4894_p4 = scmp.ge.s32.totalorder %s7289_s24, 2 }
 0xae6   : > { %s4611_s20 = sand.u32 1, %s7290_s23  }
 0xae7   : > { %p4891_p7 = pnand %p4894_p4, %p5165_p6  ;;  %s4612_s22 = scalar_lea.sflag [#allocation6], %s4611_s20 }
 0xae9   : > { %p4892_p8 = pneg %p4891_p7 }
 0xaeb   : > { %5003 = dma.done.wait (%p4892_p8), %s4612_s22, 16  }
 0xaec   : > { %5005 = vsyncadd (%p4892_p8), %s4612_s22, 4294967280  ;;  %s7292_s21 = sld [smem:[#allocation11_spill]]  ;;  %s7295_s18 = smov %s5012_s19 }
 0xaed   : > { %s7293_s17 = sld [smem:[#allocation9_spill]] }
 0xaee   : > { %s7294_s20 = sld [smem:[#allocation12_spill]] }
 0xaf2   : > { %p25_p9 = scmp.ge.s32.totalorder %s7292_s21, 4  }
 0xaf3   : > { %s7296_s19 = smov %s7293_s17 }
 0xaf4   :  { %27 = sbr.rel (!%p25_p9) target bundleno = 5 (0x5), region = 115 }
 0xaf9   :  { %4617 = vsyncpa [#allocation6], 1 }
 0xafa   :  { %4619 = vsyncpa [#allocation6 + $0x1], 1 }

</bundles_post_ra>
